<compile_context>
chip_gen: v5e
topology: v5e:2x2
jax: 0.10.0
libtpu: 0.0.40
codegen_flags: <defaults>
</compile_context>

<pallas_src>
import functools

import jax
import jax.numpy as jnp
from jax.experimental import pallas as pl
from jax.experimental.pallas import tpu as pltpu


def _cdiv(a, b):
    return (a + b - 1) // b


def _pick_batch_tile(bsz, max_tile):
    """Choose (batch_tile, padded_batch) -- batch_tile a multiple of 128."""
    lane_tiles = _cdiv(bsz, 128)                       # batch in 128-lane tiles
    target = max(1, min(max_tile // 128, lane_tiles))
    if lane_tiles > 1:
        # Keep >= 2 grid steps so the "parallel" batch axis can shard across
        # both TensorCores on v7x (harmless on single-TC v5e/v6e).
        target = min(target, _cdiv(lane_tiles, 2))
    # Prefer a tile count that divides the batch (no tail padding), unless the
    # only divisor is much smaller than the target tile size.
    tiles = next(d for d in range(target, 0, -1) if lane_tiles % d == 0)
    if 2 * tiles < target:
        tiles = target
    b_tile = tiles * 128
    bsz_p = _cdiv(lane_tiles, tiles) * b_tile
    return b_tile, bsz_p


def _aie_kernel(u_ref, i_ref, wau_t_ref, wi_t_ref, whu_ref, whi_ref,
                out_u_ref, out_i_ref):
    A, h1, _ = u_ref.shape
    h2 = wi_t_ref.shape[0]

    u_all = u_ref[...]                 # (A, h1, B)   P_u, batch on lanes
    i_all = i_ref[...]                 # (A, h1, B)   Q_i, batch on lanes
    w_au_t = wau_t_ref[...]            # (h1 + h2, h1) = [W_a^T ; W_u^T]
    w_i_t = wi_t_ref[...]              # (h2, h1)      = W_i^T
    w_hu = whu_ref[...]                # (h2, 1)
    w_hi = whi_ref[...]                # (h2, 1)

    # --- MXU projections, batch on the N / lane axis, fused W_a|W_u. --------
    uWa, uPu, iPi = [], [], []
    for a in range(A):
        pu = jnp.dot(w_au_t, u_all[a],
                     preferred_element_type=jnp.float32)       # (h1 + h2, B)
        uWa.append(pu[:h1, :])         # (W_a^T P_u[a])  (h1, B)
        uPu.append(pu[h1:, :])         # (W_u^T P_u[a])  (h2, B)
        iPi.append(jnp.dot(w_i_t, i_all[a],
                           preferred_element_type=jnp.float32))  # (h2, B)

    # --- Affinity S = relu((P_u W_a) Q_i^T): VPU multiply + sublane reduce. -
    # S_elems[au][ai] has shape (1, B) and equals S[:, au, ai] for the tile.
    S_elems = []
    for au in range(A):
        row = []
        for ai in range(A):
            s = jnp.sum(uWa[au] * i_all[ai], axis=0, keepdims=True)   # (1, B)
            row.append(jnp.maximum(s, 0.0))
        S_elems.append(row)

    # --- H_u / H_i + logits: A-term broadcast-multiply accumulation. --------
    logit_u_rows, logit_i_rows = [], []
    for a in range(A):
        acc_u = uPu[a]                 # accumulates H_u[:, a, :]   (h2, B)
        acc_i = iPi[a]                 # accumulates H_i[:, a, :]   (h2, B)
        for r in range(A):
            acc_u = acc_u + S_elems[r][a] * iPi[r]   # += S[:, r, a] * (Q_i W_i)[:, r, :]
            acc_i = acc_i + S_elems[a][r] * uPu[r]   # += S[:, a, r] * (P_u W_u)[:, r, :]
        h_u = jnp.maximum(acc_u, 0.0)
        h_i = jnp.maximum(acc_i, 0.0)
        logit_u_rows.append(jnp.sum(h_u * w_hu, axis=0, keepdims=True))  # (1, B)
        logit_i_rows.append(jnp.sum(h_i * w_hi, axis=0, keepdims=True))  # (1, B)

    logits_u = jnp.concatenate(logit_u_rows, axis=0)   # (A, B), aspects on sublanes
    logits_i = jnp.concatenate(logit_i_rows, axis=0)

    # --- Softmax over aspects (sublane axis); lane-dense stores. ------------
    def softmax_aspects(x):
        m = jnp.max(x, axis=0, keepdims=True)
        e = jnp.exp(x - m)
        s = jnp.sum(e, axis=0, keepdims=True)
        return e * pl.reciprocal(s, approx=True)

    out_u_ref[...] = softmax_aspects(logits_u)
    out_i_ref[...] = softmax_aspects(logits_i)


@functools.partial(jax.jit, static_argnames=("b_tile", "input_dtype"))
def anr_aie_forward(userAspRep, itemAspRep, params, *, b_tile=512,
                    input_dtype=jnp.float32):
    """Returns (userAspImpt, itemAspImpt), each (bsz, num_aspects)."""
    bsz, A, h1 = userAspRep.shape
    h2 = params["W_u"].shape[1]

    bt, bsz_p = _pick_batch_tile(bsz, b_tile)
    grid = bsz_p // bt

    # Batch-on-lanes relayout done once in the (jitted) wrapper:
    # (bsz, A, h1) -> (A, h1, bsz_p).  The kernel itself never relayouts.
    def prep(x):
        x = jnp.transpose(x, (1, 2, 0)).astype(input_dtype)
        return jnp.pad(x, ((0, 0), (0, 0), (0, bsz_p - bsz)))

    u_in, i_in = prep(userAspRep), prep(itemAspRep)

    # Fused / transposed weights: one matmul per user aspect gives both
    # W_a^T P_u and W_u^T P_u; item aspects use W_i^T.
    w_au_t = jnp.concatenate([params["W_a"].T, params["W_u"].T],
                             axis=0).astype(input_dtype)        # (h1 + h2, h1)
    w_i_t = params["W_i"].T.astype(input_dtype)                 # (h2, h1)
    w_hu = params["w_hu"].reshape(h2, 1).astype(jnp.float32)    # (h2, 1)
    w_hi = params["w_hi"].reshape(h2, 1).astype(jnp.float32)    # (h2, 1)

    grid_spec = pltpu.PrefetchScalarGridSpec(
        num_scalar_prefetch=0,
        grid=(grid,),
        in_specs=[
            pl.BlockSpec((A, h1, bt), lambda b: (0, 0, b)),     # P_u tile
            pl.BlockSpec((A, h1, bt), lambda b: (0, 0, b)),     # Q_i tile
            pl.BlockSpec((h1 + h2, h1), lambda b: (0, 0)),      # [W_a^T; W_u^T]
            pl.BlockSpec((h2, h1), lambda b: (0, 0)),           # W_i^T
            pl.BlockSpec((h2, 1), lambda b: (0, 0)),            # w_hu
            pl.BlockSpec((h2, 1), lambda b: (0, 0)),            # w_hi
        ],
        out_specs=[
            pl.BlockSpec((A, bt), lambda b: (0, b)),            # beta_u (lane-dense)
            pl.BlockSpec((A, bt), lambda b: (0, b)),            # beta_i (lane-dense)
        ],
    )

    u_imp, i_imp = pl.pallas_call(
        _aie_kernel,
        out_shape=(jax.ShapeDtypeStruct((A, bsz_p), jnp.float32),
                   jax.ShapeDtypeStruct((A, bsz_p), jnp.float32)),
        grid_spec=grid_spec,
        compiler_params=pltpu.CompilerParams(
            dimension_semantics=("parallel",)),
    )(u_in, i_in, w_au_t, w_i_t, w_hu, w_hi)

    # Back to the module's (bsz, A) layout; transposing the tiny (A, bsz)
    # output slab in the wrapper is negligible.
    return u_imp[:, :bsz].T, i_imp[:, :bsz].T


def _reference_forward(u, it, p):
    S = jax.nn.relu(jnp.einsum("bah,hk->bak", u, p["W_a"]) @
                    jnp.swapaxes(it, 1, 2))
    u_proj = u @ p["W_u"]
    i_proj = it @ p["W_i"]
    H_u = jax.nn.relu(u_proj + jnp.swapaxes(S, 1, 2) @ i_proj)
    H_i = jax.nn.relu(i_proj + S @ u_proj)
    beta_u = jax.nn.softmax(H_u @ p["w_hu"], axis=1)[..., 0]
    beta_i = jax.nn.softmax(H_i @ p["w_hi"], axis=1)[..., 0]
    return beta_u, beta_i


def _init_params(key, h1, h2, scale=0.01):
    ks = jax.random.split(key, 5)
    uni = lambda k, s: jax.random.uniform(k, s, jnp.float32, -scale, scale)
    return {
        "W_a": uni(ks[0], (h1, h1)),
        "W_u": uni(ks[1], (h1, h2)),
        "w_hu": uni(ks[2], (h2, 1)),
        "W_i": uni(ks[3], (h1, h2)),
        "w_hi": uni(ks[4], (h2, 1)),
    }


if __name__ == "__main__":
    num_aspects, h1, h2 = 8, 32, 16
    key = jax.random.PRNGKey(0)
    k_u, k_i, k_p, k_p2 = jax.random.split(key, 4)

    TOL = dict(atol=5e-3, rtol=5e-3)   # approx-reciprocal softmax denominator

    # Case 1: module-spec init (uniform +-0.01), tiny batch -- single tile.
    params = _init_params(k_p, h1, h2, scale=0.01)
    bsz = 2
    userAspRep = jax.random.normal(k_u, (bsz, num_aspects, h1), jnp.float32)
    itemAspRep = jax.random.normal(k_i, (bsz, num_aspects, h1), jnp.float32)
    u_imp, i_imp = anr_aie_forward(userAspRep, itemAspRep, params)
    jax.block_until_ready((u_imp, i_imp))
    u_ref, i_ref = _reference_forward(userAspRep, itemAspRep, params)
    assert u_imp.shape == (bsz, num_aspects) and i_imp.shape == (bsz, num_aspects)
    assert jnp.allclose(u_imp, u_ref, **TOL)
    assert jnp.allclose(i_imp, i_ref, **TOL)

    # Case 2: larger weights (structure-sensitive numerics) + multi-step
    # parallel grid with tail padding (bsz=200 -> 2 x 128-lane tiles).
    params2 = _init_params(k_p2, h1, h2, scale=0.1)
    bsz2 = 200
    k_u2, k_i2 = jax.random.split(jax.random.PRNGKey(1), 2)
    u2 = jax.random.normal(k_u2, (bsz2, num_aspects, h1), jnp.float32)
    i2 = jax.random.normal(k_i2, (bsz2, num_aspects, h1), jnp.float32)
    u_imp2, i_imp2 = anr_aie_forward(u2, i2, params2)
    jax.block_until_ready((u_imp2, i_imp2))
    u_ref2, i_ref2 = _reference_forward(u2, i2, params2)
    assert jnp.allclose(u_imp2, u_ref2, **TOL)
    assert jnp.allclose(i_imp2, i_ref2, **TOL)

    print("KERNEL_OK")
</pallas_src>

<mosaic_0001>
module attributes {stable_mosaic.version = 11 : i64} {
  func.func @_aie_kernel(%arg0: i32, %arg1: memref<8x32x128xf32, #tpu.memory_space<vmem>>, %arg2: memref<8x32x128xf32, #tpu.memory_space<vmem>>, %arg3: memref<48x32xf32, #tpu.memory_space<vmem>>, %arg4: memref<16x32xf32, #tpu.memory_space<vmem>>, %arg5: memref<16x1xf32, #tpu.memory_space<vmem>>, %arg6: memref<16x1xf32, #tpu.memory_space<vmem>>, %arg7: memref<8x128xf32, #tpu.memory_space<vmem>>, %arg8: memref<8x128xf32, #tpu.memory_space<vmem>>) attributes {dimension_semantics = [#tpu.dimension_semantics<parallel>], iteration_bounds = array<i64: 1>, scalar_prefetch = 0 : i64, scratch_operands = 0 : i64, tpu.core_type = #tpu.core_type<tc>, window_params = [{transform_indices = @transform_0, window_bounds = array<i64: 8, 32, 128>}, {transform_indices = @transform_1, window_bounds = array<i64: 8, 32, 128>}, {pipeline_mode = #tpu.pipeline_mode<synchronous>, transform_indices = @transform_2, window_bounds = array<i64: 48, 32>}, {pipeline_mode = #tpu.pipeline_mode<synchronous>, transform_indices = @transform_3, window_bounds = array<i64: 16, 32>}, {pipeline_mode = #tpu.pipeline_mode<synchronous>, transform_indices = @transform_4, window_bounds = array<i64: 16, 1>}, {pipeline_mode = #tpu.pipeline_mode<synchronous>, transform_indices = @transform_5, window_bounds = array<i64: 16, 1>}, {transform_indices = @transform_6, window_bounds = array<i64: 8, 128>}, {transform_indices = @transform_7, window_bounds = array<i64: 8, 128>}]} {
    %c0 = arith.constant 0 : index
    %c0_0 = arith.constant 0 : index
    %c0_1 = arith.constant 0 : index
    %0 = vector.load %arg1[%c0, %c0_0, %c0_1] : memref<8x32x128xf32, #tpu.memory_space<vmem>>, vector<8x32x128xf32>
    %c0_2 = arith.constant 0 : index
    %c0_3 = arith.constant 0 : index
    %c0_4 = arith.constant 0 : index
    %1 = vector.load %arg2[%c0_2, %c0_3, %c0_4] : memref<8x32x128xf32, #tpu.memory_space<vmem>>, vector<8x32x128xf32>
    %c0_5 = arith.constant 0 : index
    %c0_6 = arith.constant 0 : index
    %2 = vector.load %arg3[%c0_5, %c0_6] : memref<48x32xf32, #tpu.memory_space<vmem>>, vector<48x32xf32>
    %c0_7 = arith.constant 0 : index
    %c0_8 = arith.constant 0 : index
    %3 = vector.load %arg4[%c0_7, %c0_8] : memref<16x32xf32, #tpu.memory_space<vmem>>, vector<16x32xf32>
    %c0_9 = arith.constant 0 : index
    %c0_10 = arith.constant 0 : index
    %4 = vector.load %arg5[%c0_9, %c0_10] : memref<16x1xf32, #tpu.memory_space<vmem>>, vector<16x1xf32>
    %c0_11 = arith.constant 0 : index
    %c0_12 = arith.constant 0 : index
    %5 = vector.load %arg6[%c0_11, %c0_12] : memref<16x1xf32, #tpu.memory_space<vmem>>, vector<16x1xf32>
    %6 = vector.extract_strided_slice %0 {offsets = [0, 0, 0], sizes = [1, 32, 128], strides = [1, 1, 1]} : vector<8x32x128xf32> to vector<1x32x128xf32>
    %7 = vector.shape_cast %6 : vector<1x32x128xf32> to vector<32x128xf32>
    %cst = arith.constant dense<0.000000e+00> : vector<48x128xf32>
    %8 = tpu.matmul %2, %7, %cst {dimension_numbers = #tpu.dot_dimension_numbers<[1], [0], [0], [1], [0, 0, 1, 1], [], []>} : vector<48x32xf32>, vector<32x128xf32>, vector<48x128xf32> -> vector<48x128xf32>
    %9 = vector.extract_strided_slice %8 {offsets = [0, 0], sizes = [32, 128], strides = [1, 1]} : vector<48x128xf32> to vector<32x128xf32>
    %10 = vector.extract_strided_slice %8 {offsets = [32, 0], sizes = [16, 128], strides = [1, 1]} : vector<48x128xf32> to vector<16x128xf32>
    %11 = vector.extract_strided_slice %1 {offsets = [0, 0, 0], sizes = [1, 32, 128], strides = [1, 1, 1]} : vector<8x32x128xf32> to vector<1x32x128xf32>
    %12 = vector.shape_cast %11 : vector<1x32x128xf32> to vector<32x128xf32>
    %cst_13 = arith.constant dense<0.000000e+00> : vector<16x128xf32>
    %13 = tpu.matmul %3, %12, %cst_13 {dimension_numbers = #tpu.dot_dimension_numbers<[1], [0], [0], [1], [0, 0, 1, 1], [], []>} : vector<16x32xf32>, vector<32x128xf32>, vector<16x128xf32> -> vector<16x128xf32>
    %14 = vector.extract_strided_slice %0 {offsets = [1, 0, 0], sizes = [1, 32, 128], strides = [1, 1, 1]} : vector<8x32x128xf32> to vector<1x32x128xf32>
    %15 = vector.shape_cast %14 : vector<1x32x128xf32> to vector<32x128xf32>
    %cst_14 = arith.constant dense<0.000000e+00> : vector<48x128xf32>
    %16 = tpu.matmul %2, %15, %cst_14 {dimension_numbers = #tpu.dot_dimension_numbers<[1], [0], [0], [1], [0, 0, 1, 1], [], []>} : vector<48x32xf32>, vector<32x128xf32>, vector<48x128xf32> -> vector<48x128xf32>
    %17 = vector.extract_strided_slice %16 {offsets = [0, 0], sizes = [32, 128], strides = [1, 1]} : vector<48x128xf32> to vector<32x128xf32>
    %18 = vector.extract_strided_slice %16 {offsets = [32, 0], sizes = [16, 128], strides = [1, 1]} : vector<48x128xf32> to vector<16x128xf32>
    %19 = vector.extract_strided_slice %1 {offsets = [1, 0, 0], sizes = [1, 32, 128], strides = [1, 1, 1]} : vector<8x32x128xf32> to vector<1x32x128xf32>
    %20 = vector.shape_cast %19 : vector<1x32x128xf32> to vector<32x128xf32>
    %cst_15 = arith.constant dense<0.000000e+00> : vector<16x128xf32>
    %21 = tpu.matmul %3, %20, %cst_15 {dimension_numbers = #tpu.dot_dimension_numbers<[1], [0], [0], [1], [0, 0, 1, 1], [], []>} : vector<16x32xf32>, vector<32x128xf32>, vector<16x128xf32> -> vector<16x128xf32>
    %22 = vector.extract_strided_slice %0 {offsets = [2, 0, 0], sizes = [1, 32, 128], strides = [1, 1, 1]} : vector<8x32x128xf32> to vector<1x32x128xf32>
    %23 = vector.shape_cast %22 : vector<1x32x128xf32> to vector<32x128xf32>
    %cst_16 = arith.constant dense<0.000000e+00> : vector<48x128xf32>
    %24 = tpu.matmul %2, %23, %cst_16 {dimension_numbers = #tpu.dot_dimension_numbers<[1], [0], [0], [1], [0, 0, 1, 1], [], []>} : vector<48x32xf32>, vector<32x128xf32>, vector<48x128xf32> -> vector<48x128xf32>
    %25 = vector.extract_strided_slice %24 {offsets = [0, 0], sizes = [32, 128], strides = [1, 1]} : vector<48x128xf32> to vector<32x128xf32>
    %26 = vector.extract_strided_slice %24 {offsets = [32, 0], sizes = [16, 128], strides = [1, 1]} : vector<48x128xf32> to vector<16x128xf32>
    %27 = vector.extract_strided_slice %1 {offsets = [2, 0, 0], sizes = [1, 32, 128], strides = [1, 1, 1]} : vector<8x32x128xf32> to vector<1x32x128xf32>
    %28 = vector.shape_cast %27 : vector<1x32x128xf32> to vector<32x128xf32>
    %cst_17 = arith.constant dense<0.000000e+00> : vector<16x128xf32>
    %29 = tpu.matmul %3, %28, %cst_17 {dimension_numbers = #tpu.dot_dimension_numbers<[1], [0], [0], [1], [0, 0, 1, 1], [], []>} : vector<16x32xf32>, vector<32x128xf32>, vector<16x128xf32> -> vector<16x128xf32>
    %30 = vector.extract_strided_slice %0 {offsets = [3, 0, 0], sizes = [1, 32, 128], strides = [1, 1, 1]} : vector<8x32x128xf32> to vector<1x32x128xf32>
    %31 = vector.shape_cast %30 : vector<1x32x128xf32> to vector<32x128xf32>
    %cst_18 = arith.constant dense<0.000000e+00> : vector<48x128xf32>
    %32 = tpu.matmul %2, %31, %cst_18 {dimension_numbers = #tpu.dot_dimension_numbers<[1], [0], [0], [1], [0, 0, 1, 1], [], []>} : vector<48x32xf32>, vector<32x128xf32>, vector<48x128xf32> -> vector<48x128xf32>
    %33 = vector.extract_strided_slice %32 {offsets = [0, 0], sizes = [32, 128], strides = [1, 1]} : vector<48x128xf32> to vector<32x128xf32>
    %34 = vector.extract_strided_slice %32 {offsets = [32, 0], sizes = [16, 128], strides = [1, 1]} : vector<48x128xf32> to vector<16x128xf32>
    %35 = vector.extract_strided_slice %1 {offsets = [3, 0, 0], sizes = [1, 32, 128], strides = [1, 1, 1]} : vector<8x32x128xf32> to vector<1x32x128xf32>
    %36 = vector.shape_cast %35 : vector<1x32x128xf32> to vector<32x128xf32>
    %cst_19 = arith.constant dense<0.000000e+00> : vector<16x128xf32>
    %37 = tpu.matmul %3, %36, %cst_19 {dimension_numbers = #tpu.dot_dimension_numbers<[1], [0], [0], [1], [0, 0, 1, 1], [], []>} : vector<16x32xf32>, vector<32x128xf32>, vector<16x128xf32> -> vector<16x128xf32>
    %38 = vector.extract_strided_slice %0 {offsets = [4, 0, 0], sizes = [1, 32, 128], strides = [1, 1, 1]} : vector<8x32x128xf32> to vector<1x32x128xf32>
    %39 = vector.shape_cast %38 : vector<1x32x128xf32> to vector<32x128xf32>
    %cst_20 = arith.constant dense<0.000000e+00> : vector<48x128xf32>
    %40 = tpu.matmul %2, %39, %cst_20 {dimension_numbers = #tpu.dot_dimension_numbers<[1], [0], [0], [1], [0, 0, 1, 1], [], []>} : vector<48x32xf32>, vector<32x128xf32>, vector<48x128xf32> -> vector<48x128xf32>
    %41 = vector.extract_strided_slice %40 {offsets = [0, 0], sizes = [32, 128], strides = [1, 1]} : vector<48x128xf32> to vector<32x128xf32>
    %42 = vector.extract_strided_slice %40 {offsets = [32, 0], sizes = [16, 128], strides = [1, 1]} : vector<48x128xf32> to vector<16x128xf32>
    %43 = vector.extract_strided_slice %1 {offsets = [4, 0, 0], sizes = [1, 32, 128], strides = [1, 1, 1]} : vector<8x32x128xf32> to vector<1x32x128xf32>
    %44 = vector.shape_cast %43 : vector<1x32x128xf32> to vector<32x128xf32>
    %cst_21 = arith.constant dense<0.000000e+00> : vector<16x128xf32>
    %45 = tpu.matmul %3, %44, %cst_21 {dimension_numbers = #tpu.dot_dimension_numbers<[1], [0], [0], [1], [0, 0, 1, 1], [], []>} : vector<16x32xf32>, vector<32x128xf32>, vector<16x128xf32> -> vector<16x128xf32>
    %46 = vector.extract_strided_slice %0 {offsets = [5, 0, 0], sizes = [1, 32, 128], strides = [1, 1, 1]} : vector<8x32x128xf32> to vector<1x32x128xf32>
    %47 = vector.shape_cast %46 : vector<1x32x128xf32> to vector<32x128xf32>
    %cst_22 = arith.constant dense<0.000000e+00> : vector<48x128xf32>
    %48 = tpu.matmul %2, %47, %cst_22 {dimension_numbers = #tpu.dot_dimension_numbers<[1], [0], [0], [1], [0, 0, 1, 1], [], []>} : vector<48x32xf32>, vector<32x128xf32>, vector<48x128xf32> -> vector<48x128xf32>
    %49 = vector.extract_strided_slice %48 {offsets = [0, 0], sizes = [32, 128], strides = [1, 1]} : vector<48x128xf32> to vector<32x128xf32>
    %50 = vector.extract_strided_slice %48 {offsets = [32, 0], sizes = [16, 128], strides = [1, 1]} : vector<48x128xf32> to vector<16x128xf32>
    %51 = vector.extract_strided_slice %1 {offsets = [5, 0, 0], sizes = [1, 32, 128], strides = [1, 1, 1]} : vector<8x32x128xf32> to vector<1x32x128xf32>
    %52 = vector.shape_cast %51 : vector<1x32x128xf32> to vector<32x128xf32>
    %cst_23 = arith.constant dense<0.000000e+00> : vector<16x128xf32>
    %53 = tpu.matmul %3, %52, %cst_23 {dimension_numbers = #tpu.dot_dimension_numbers<[1], [0], [0], [1], [0, 0, 1, 1], [], []>} : vector<16x32xf32>, vector<32x128xf32>, vector<16x128xf32> -> vector<16x128xf32>
    %54 = vector.extract_strided_slice %0 {offsets = [6, 0, 0], sizes = [1, 32, 128], strides = [1, 1, 1]} : vector<8x32x128xf32> to vector<1x32x128xf32>
    %55 = vector.shape_cast %54 : vector<1x32x128xf32> to vector<32x128xf32>
    %cst_24 = arith.constant dense<0.000000e+00> : vector<48x128xf32>
    %56 = tpu.matmul %2, %55, %cst_24 {dimension_numbers = #tpu.dot_dimension_numbers<[1], [0], [0], [1], [0, 0, 1, 1], [], []>} : vector<48x32xf32>, vector<32x128xf32>, vector<48x128xf32> -> vector<48x128xf32>
    %57 = vector.extract_strided_slice %56 {offsets = [0, 0], sizes = [32, 128], strides = [1, 1]} : vector<48x128xf32> to vector<32x128xf32>
    %58 = vector.extract_strided_slice %56 {offsets = [32, 0], sizes = [16, 128], strides = [1, 1]} : vector<48x128xf32> to vector<16x128xf32>
    %59 = vector.extract_strided_slice %1 {offsets = [6, 0, 0], sizes = [1, 32, 128], strides = [1, 1, 1]} : vector<8x32x128xf32> to vector<1x32x128xf32>
    %60 = vector.shape_cast %59 : vector<1x32x128xf32> to vector<32x128xf32>
    %cst_25 = arith.constant dense<0.000000e+00> : vector<16x128xf32>
    %61 = tpu.matmul %3, %60, %cst_25 {dimension_numbers = #tpu.dot_dimension_numbers<[1], [0], [0], [1], [0, 0, 1, 1], [], []>} : vector<16x32xf32>, vector<32x128xf32>, vector<16x128xf32> -> vector<16x128xf32>
    %62 = vector.extract_strided_slice %0 {offsets = [7, 0, 0], sizes = [1, 32, 128], strides = [1, 1, 1]} : vector<8x32x128xf32> to vector<1x32x128xf32>
    %63 = vector.shape_cast %62 : vector<1x32x128xf32> to vector<32x128xf32>
    %cst_26 = arith.constant dense<0.000000e+00> : vector<48x128xf32>
    %64 = tpu.matmul %2, %63, %cst_26 {dimension_numbers = #tpu.dot_dimension_numbers<[1], [0], [0], [1], [0, 0, 1, 1], [], []>} : vector<48x32xf32>, vector<32x128xf32>, vector<48x128xf32> -> vector<48x128xf32>
    %65 = vector.extract_strided_slice %64 {offsets = [0, 0], sizes = [32, 128], strides = [1, 1]} : vector<48x128xf32> to vector<32x128xf32>
    %66 = vector.extract_strided_slice %64 {offsets = [32, 0], sizes = [16, 128], strides = [1, 1]} : vector<48x128xf32> to vector<16x128xf32>
    %67 = vector.extract_strided_slice %1 {offsets = [7, 0, 0], sizes = [1, 32, 128], strides = [1, 1, 1]} : vector<8x32x128xf32> to vector<1x32x128xf32>
    %68 = vector.shape_cast %67 : vector<1x32x128xf32> to vector<32x128xf32>
    %cst_27 = arith.constant dense<0.000000e+00> : vector<16x128xf32>
    %69 = tpu.matmul %3, %68, %cst_27 {dimension_numbers = #tpu.dot_dimension_numbers<[1], [0], [0], [1], [0, 0, 1, 1], [], []>} : vector<16x32xf32>, vector<32x128xf32>, vector<16x128xf32> -> vector<16x128xf32>
    %70 = vector.extract_strided_slice %1 {offsets = [0, 0, 0], sizes = [1, 32, 128], strides = [1, 1, 1]} : vector<8x32x128xf32> to vector<1x32x128xf32>
    %71 = vector.shape_cast %70 : vector<1x32x128xf32> to vector<32x128xf32>
    %72 = arith.mulf %9, %71 : vector<32x128xf32>
    %cst_28 = arith.constant dense<0.000000e+00> : vector<128xf32>
    %73 = vector.multi_reduction <add>, %72, %cst_28 [0] : vector<32x128xf32> to vector<128xf32>
    %74 = vector.shape_cast %73 : vector<128xf32> to vector<1x128xf32>
    %cst_29 = arith.constant 0.000000e+00 : f32
    %75 = vector.broadcast %cst_29 : f32 to vector<1x128xf32>
    %76 = arith.maximumf %74, %75 : vector<1x128xf32>
    %77 = vector.extract_strided_slice %1 {offsets = [1, 0, 0], sizes = [1, 32, 128], strides = [1, 1, 1]} : vector<8x32x128xf32> to vector<1x32x128xf32>
    %78 = vector.shape_cast %77 : vector<1x32x128xf32> to vector<32x128xf32>
    %79 = arith.mulf %9, %78 : vector<32x128xf32>
    %cst_30 = arith.constant dense<0.000000e+00> : vector<128xf32>
    %80 = vector.multi_reduction <add>, %79, %cst_30 [0] : vector<32x128xf32> to vector<128xf32>
    %81 = vector.shape_cast %80 : vector<128xf32> to vector<1x128xf32>
    %cst_31 = arith.constant 0.000000e+00 : f32
    %82 = vector.broadcast %cst_31 : f32 to vector<1x128xf32>
    %83 = arith.maximumf %81, %82 : vector<1x128xf32>
    %84 = vector.extract_strided_slice %1 {offsets = [2, 0, 0], sizes = [1, 32, 128], strides = [1, 1, 1]} : vector<8x32x128xf32> to vector<1x32x128xf32>
    %85 = vector.shape_cast %84 : vector<1x32x128xf32> to vector<32x128xf32>
    %86 = arith.mulf %9, %85 : vector<32x128xf32>
    %cst_32 = arith.constant dense<0.000000e+00> : vector<128xf32>
    %87 = vector.multi_reduction <add>, %86, %cst_32 [0] : vector<32x128xf32> to vector<128xf32>
    %88 = vector.shape_cast %87 : vector<128xf32> to vector<1x128xf32>
    %cst_33 = arith.constant 0.000000e+00 : f32
    %89 = vector.broadcast %cst_33 : f32 to vector<1x128xf32>
    %90 = arith.maximumf %88, %89 : vector<1x128xf32>
    %91 = vector.extract_strided_slice %1 {offsets = [3, 0, 0], sizes = [1, 32, 128], strides = [1, 1, 1]} : vector<8x32x128xf32> to vector<1x32x128xf32>
    %92 = vector.shape_cast %91 : vector<1x32x128xf32> to vector<32x128xf32>
    %93 = arith.mulf %9, %92 : vector<32x128xf32>
    %cst_34 = arith.constant dense<0.000000e+00> : vector<128xf32>
    %94 = vector.multi_reduction <add>, %93, %cst_34 [0] : vector<32x128xf32> to vector<128xf32>
    %95 = vector.shape_cast %94 : vector<128xf32> to vector<1x128xf32>
    %cst_35 = arith.constant 0.000000e+00 : f32
    %96 = vector.broadcast %cst_35 : f32 to vector<1x128xf32>
    %97 = arith.maximumf %95, %96 : vector<1x128xf32>
    %98 = vector.extract_strided_slice %1 {offsets = [4, 0, 0], sizes = [1, 32, 128], strides = [1, 1, 1]} : vector<8x32x128xf32> to vector<1x32x128xf32>
    %99 = vector.shape_cast %98 : vector<1x32x128xf32> to vector<32x128xf32>
    %100 = arith.mulf %9, %99 : vector<32x128xf32>
    %cst_36 = arith.constant dense<0.000000e+00> : vector<128xf32>
    %101 = vector.multi_reduction <add>, %100, %cst_36 [0] : vector<32x128xf32> to vector<128xf32>
    %102 = vector.shape_cast %101 : vector<128xf32> to vector<1x128xf32>
    %cst_37 = arith.constant 0.000000e+00 : f32
    %103 = vector.broadcast %cst_37 : f32 to vector<1x128xf32>
    %104 = arith.maximumf %102, %103 : vector<1x128xf32>
    %105 = vector.extract_strided_slice %1 {offsets = [5, 0, 0], sizes = [1, 32, 128], strides = [1, 1, 1]} : vector<8x32x128xf32> to vector<1x32x128xf32>
    %106 = vector.shape_cast %105 : vector<1x32x128xf32> to vector<32x128xf32>
    %107 = arith.mulf %9, %106 : vector<32x128xf32>
    %cst_38 = arith.constant dense<0.000000e+00> : vector<128xf32>
    %108 = vector.multi_reduction <add>, %107, %cst_38 [0] : vector<32x128xf32> to vector<128xf32>
    %109 = vector.shape_cast %108 : vector<128xf32> to vector<1x128xf32>
    %cst_39 = arith.constant 0.000000e+00 : f32
    %110 = vector.broadcast %cst_39 : f32 to vector<1x128xf32>
    %111 = arith.maximumf %109, %110 : vector<1x128xf32>
    %112 = vector.extract_strided_slice %1 {offsets = [6, 0, 0], sizes = [1, 32, 128], strides = [1, 1, 1]} : vector<8x32x128xf32> to vector<1x32x128xf32>
    %113 = vector.shape_cast %112 : vector<1x32x128xf32> to vector<32x128xf32>
    %114 = arith.mulf %9, %113 : vector<32x128xf32>
    %cst_40 = arith.constant dense<0.000000e+00> : vector<128xf32>
    %115 = vector.multi_reduction <add>, %114, %cst_40 [0] : vector<32x128xf32> to vector<128xf32>
    %116 = vector.shape_cast %115 : vector<128xf32> to vector<1x128xf32>
    %cst_41 = arith.constant 0.000000e+00 : f32
    %117 = vector.broadcast %cst_41 : f32 to vector<1x128xf32>
    %118 = arith.maximumf %116, %117 : vector<1x128xf32>
    %119 = vector.extract_strided_slice %1 {offsets = [7, 0, 0], sizes = [1, 32, 128], strides = [1, 1, 1]} : vector<8x32x128xf32> to vector<1x32x128xf32>
    %120 = vector.shape_cast %119 : vector<1x32x128xf32> to vector<32x128xf32>
    %121 = arith.mulf %9, %120 : vector<32x128xf32>
    %cst_42 = arith.constant dense<0.000000e+00> : vector<128xf32>
    %122 = vector.multi_reduction <add>, %121, %cst_42 [0] : vector<32x128xf32> to vector<128xf32>
    %123 = vector.shape_cast %122 : vector<128xf32> to vector<1x128xf32>
    %cst_43 = arith.constant 0.000000e+00 : f32
    %124 = vector.broadcast %cst_43 : f32 to vector<1x128xf32>
    %125 = arith.maximumf %123, %124 : vector<1x128xf32>
    %126 = vector.extract_strided_slice %1 {offsets = [0, 0, 0], sizes = [1, 32, 128], strides = [1, 1, 1]} : vector<8x32x128xf32> to vector<1x32x128xf32>
    %127 = vector.shape_cast %126 : vector<1x32x128xf32> to vector<32x128xf32>
    %128 = arith.mulf %17, %127 : vector<32x128xf32>
    %cst_44 = arith.constant dense<0.000000e+00> : vector<128xf32>
    %129 = vector.multi_reduction <add>, %128, %cst_44 [0] : vector<32x128xf32> to vector<128xf32>
    %130 = vector.shape_cast %129 : vector<128xf32> to vector<1x128xf32>
    %cst_45 = arith.constant 0.000000e+00 : f32
    %131 = vector.broadcast %cst_45 : f32 to vector<1x128xf32>
    %132 = arith.maximumf %130, %131 : vector<1x128xf32>
    %133 = vector.extract_strided_slice %1 {offsets = [1, 0, 0], sizes = [1, 32, 128], strides = [1, 1, 1]} : vector<8x32x128xf32> to vector<1x32x128xf32>
    %134 = vector.shape_cast %133 : vector<1x32x128xf32> to vector<32x128xf32>
    %135 = arith.mulf %17, %134 : vector<32x128xf32>
    %cst_46 = arith.constant dense<0.000000e+00> : vector<128xf32>
    %136 = vector.multi_reduction <add>, %135, %cst_46 [0] : vector<32x128xf32> to vector<128xf32>
    %137 = vector.shape_cast %136 : vector<128xf32> to vector<1x128xf32>
    %cst_47 = arith.constant 0.000000e+00 : f32
    %138 = vector.broadcast %cst_47 : f32 to vector<1x128xf32>
    %139 = arith.maximumf %137, %138 : vector<1x128xf32>
    %140 = vector.extract_strided_slice %1 {offsets = [2, 0, 0], sizes = [1, 32, 128], strides = [1, 1, 1]} : vector<8x32x128xf32> to vector<1x32x128xf32>
    %141 = vector.shape_cast %140 : vector<1x32x128xf32> to vector<32x128xf32>
    %142 = arith.mulf %17, %141 : vector<32x128xf32>
    %cst_48 = arith.constant dense<0.000000e+00> : vector<128xf32>
    %143 = vector.multi_reduction <add>, %142, %cst_48 [0] : vector<32x128xf32> to vector<128xf32>
    %144 = vector.shape_cast %143 : vector<128xf32> to vector<1x128xf32>
    %cst_49 = arith.constant 0.000000e+00 : f32
    %145 = vector.broadcast %cst_49 : f32 to vector<1x128xf32>
    %146 = arith.maximumf %144, %145 : vector<1x128xf32>
    %147 = vector.extract_strided_slice %1 {offsets = [3, 0, 0], sizes = [1, 32, 128], strides = [1, 1, 1]} : vector<8x32x128xf32> to vector<1x32x128xf32>
    %148 = vector.shape_cast %147 : vector<1x32x128xf32> to vector<32x128xf32>
    %149 = arith.mulf %17, %148 : vector<32x128xf32>
    %cst_50 = arith.constant dense<0.000000e+00> : vector<128xf32>
    %150 = vector.multi_reduction <add>, %149, %cst_50 [0] : vector<32x128xf32> to vector<128xf32>
    %151 = vector.shape_cast %150 : vector<128xf32> to vector<1x128xf32>
    %cst_51 = arith.constant 0.000000e+00 : f32
    %152 = vector.broadcast %cst_51 : f32 to vector<1x128xf32>
    %153 = arith.maximumf %151, %152 : vector<1x128xf32>
    %154 = vector.extract_strided_slice %1 {offsets = [4, 0, 0], sizes = [1, 32, 128], strides = [1, 1, 1]} : vector<8x32x128xf32> to vector<1x32x128xf32>
    %155 = vector.shape_cast %154 : vector<1x32x128xf32> to vector<32x128xf32>
    %156 = arith.mulf %17, %155 : vector<32x128xf32>
    %cst_52 = arith.constant dense<0.000000e+00> : vector<128xf32>
    %157 = vector.multi_reduction <add>, %156, %cst_52 [0] : vector<32x128xf32> to vector<128xf32>
    %158 = vector.shape_cast %157 : vector<128xf32> to vector<1x128xf32>
    %cst_53 = arith.constant 0.000000e+00 : f32
    %159 = vector.broadcast %cst_53 : f32 to vector<1x128xf32>
    %160 = arith.maximumf %158, %159 : vector<1x128xf32>
    %161 = vector.extract_strided_slice %1 {offsets = [5, 0, 0], sizes = [1, 32, 128], strides = [1, 1, 1]} : vector<8x32x128xf32> to vector<1x32x128xf32>
    %162 = vector.shape_cast %161 : vector<1x32x128xf32> to vector<32x128xf32>
    %163 = arith.mulf %17, %162 : vector<32x128xf32>
    %cst_54 = arith.constant dense<0.000000e+00> : vector<128xf32>
    %164 = vector.multi_reduction <add>, %163, %cst_54 [0] : vector<32x128xf32> to vector<128xf32>
    %165 = vector.shape_cast %164 : vector<128xf32> to vector<1x128xf32>
    %cst_55 = arith.constant 0.000000e+00 : f32
    %166 = vector.broadcast %cst_55 : f32 to vector<1x128xf32>
    %167 = arith.maximumf %165, %166 : vector<1x128xf32>
    %168 = vector.extract_strided_slice %1 {offsets = [6, 0, 0], sizes = [1, 32, 128], strides = [1, 1, 1]} : vector<8x32x128xf32> to vector<1x32x128xf32>
    %169 = vector.shape_cast %168 : vector<1x32x128xf32> to vector<32x128xf32>
    %170 = arith.mulf %17, %169 : vector<32x128xf32>
    %cst_56 = arith.constant dense<0.000000e+00> : vector<128xf32>
    %171 = vector.multi_reduction <add>, %170, %cst_56 [0] : vector<32x128xf32> to vector<128xf32>
    %172 = vector.shape_cast %171 : vector<128xf32> to vector<1x128xf32>
    %cst_57 = arith.constant 0.000000e+00 : f32
    %173 = vector.broadcast %cst_57 : f32 to vector<1x128xf32>
    %174 = arith.maximumf %172, %173 : vector<1x128xf32>
    %175 = vector.extract_strided_slice %1 {offsets = [7, 0, 0], sizes = [1, 32, 128], strides = [1, 1, 1]} : vector<8x32x128xf32> to vector<1x32x128xf32>
    %176 = vector.shape_cast %175 : vector<1x32x128xf32> to vector<32x128xf32>
    %177 = arith.mulf %17, %176 : vector<32x128xf32>
    %cst_58 = arith.constant dense<0.000000e+00> : vector<128xf32>
    %178 = vector.multi_reduction <add>, %177, %cst_58 [0] : vector<32x128xf32> to vector<128xf32>
    %179 = vector.shape_cast %178 : vector<128xf32> to vector<1x128xf32>
    %cst_59 = arith.constant 0.000000e+00 : f32
    %180 = vector.broadcast %cst_59 : f32 to vector<1x128xf32>
    %181 = arith.maximumf %179, %180 : vector<1x128xf32>
    %182 = vector.extract_strided_slice %1 {offsets = [0, 0, 0], sizes = [1, 32, 128], strides = [1, 1, 1]} : vector<8x32x128xf32> to vector<1x32x128xf32>
    %183 = vector.shape_cast %182 : vector<1x32x128xf32> to vector<32x128xf32>
    %184 = arith.mulf %25, %183 : vector<32x128xf32>
    %cst_60 = arith.constant dense<0.000000e+00> : vector<128xf32>
    %185 = vector.multi_reduction <add>, %184, %cst_60 [0] : vector<32x128xf32> to vector<128xf32>
    %186 = vector.shape_cast %185 : vector<128xf32> to vector<1x128xf32>
    %cst_61 = arith.constant 0.000000e+00 : f32
    %187 = vector.broadcast %cst_61 : f32 to vector<1x128xf32>
    %188 = arith.maximumf %186, %187 : vector<1x128xf32>
    %189 = vector.extract_strided_slice %1 {offsets = [1, 0, 0], sizes = [1, 32, 128], strides = [1, 1, 1]} : vector<8x32x128xf32> to vector<1x32x128xf32>
    %190 = vector.shape_cast %189 : vector<1x32x128xf32> to vector<32x128xf32>
    %191 = arith.mulf %25, %190 : vector<32x128xf32>
    %cst_62 = arith.constant dense<0.000000e+00> : vector<128xf32>
    %192 = vector.multi_reduction <add>, %191, %cst_62 [0] : vector<32x128xf32> to vector<128xf32>
    %193 = vector.shape_cast %192 : vector<128xf32> to vector<1x128xf32>
    %cst_63 = arith.constant 0.000000e+00 : f32
    %194 = vector.broadcast %cst_63 : f32 to vector<1x128xf32>
    %195 = arith.maximumf %193, %194 : vector<1x128xf32>
    %196 = vector.extract_strided_slice %1 {offsets = [2, 0, 0], sizes = [1, 32, 128], strides = [1, 1, 1]} : vector<8x32x128xf32> to vector<1x32x128xf32>
    %197 = vector.shape_cast %196 : vector<1x32x128xf32> to vector<32x128xf32>
    %198 = arith.mulf %25, %197 : vector<32x128xf32>
    %cst_64 = arith.constant dense<0.000000e+00> : vector<128xf32>
    %199 = vector.multi_reduction <add>, %198, %cst_64 [0] : vector<32x128xf32> to vector<128xf32>
    %200 = vector.shape_cast %199 : vector<128xf32> to vector<1x128xf32>
    %cst_65 = arith.constant 0.000000e+00 : f32
    %201 = vector.broadcast %cst_65 : f32 to vector<1x128xf32>
    %202 = arith.maximumf %200, %201 : vector<1x128xf32>
    %203 = vector.extract_strided_slice %1 {offsets = [3, 0, 0], sizes = [1, 32, 128], strides = [1, 1, 1]} : vector<8x32x128xf32> to vector<1x32x128xf32>
    %204 = vector.shape_cast %203 : vector<1x32x128xf32> to vector<32x128xf32>
    %205 = arith.mulf %25, %204 : vector<32x128xf32>
    %cst_66 = arith.constant dense<0.000000e+00> : vector<128xf32>
    %206 = vector.multi_reduction <add>, %205, %cst_66 [0] : vector<32x128xf32> to vector<128xf32>
    %207 = vector.shape_cast %206 : vector<128xf32> to vector<1x128xf32>
    %cst_67 = arith.constant 0.000000e+00 : f32
    %208 = vector.broadcast %cst_67 : f32 to vector<1x128xf32>
    %209 = arith.maximumf %207, %208 : vector<1x128xf32>
    %210 = vector.extract_strided_slice %1 {offsets = [4, 0, 0], sizes = [1, 32, 128], strides = [1, 1, 1]} : vector<8x32x128xf32> to vector<1x32x128xf32>
    %211 = vector.shape_cast %210 : vector<1x32x128xf32> to vector<32x128xf32>
    %212 = arith.mulf %25, %211 : vector<32x128xf32>
    %cst_68 = arith.constant dense<0.000000e+00> : vector<128xf32>
    %213 = vector.multi_reduction <add>, %212, %cst_68 [0] : vector<32x128xf32> to vector<128xf32>
    %214 = vector.shape_cast %213 : vector<128xf32> to vector<1x128xf32>
    %cst_69 = arith.constant 0.000000e+00 : f32
    %215 = vector.broadcast %cst_69 : f32 to vector<1x128xf32>
    %216 = arith.maximumf %214, %215 : vector<1x128xf32>
    %217 = vector.extract_strided_slice %1 {offsets = [5, 0, 0], sizes = [1, 32, 128], strides = [1, 1, 1]} : vector<8x32x128xf32> to vector<1x32x128xf32>
    %218 = vector.shape_cast %217 : vector<1x32x128xf32> to vector<32x128xf32>
    %219 = arith.mulf %25, %218 : vector<32x128xf32>
    %cst_70 = arith.constant dense<0.000000e+00> : vector<128xf32>
    %220 = vector.multi_reduction <add>, %219, %cst_70 [0] : vector<32x128xf32> to vector<128xf32>
    %221 = vector.shape_cast %220 : vector<128xf32> to vector<1x128xf32>
    %cst_71 = arith.constant 0.000000e+00 : f32
    %222 = vector.broadcast %cst_71 : f32 to vector<1x128xf32>
    %223 = arith.maximumf %221, %222 : vector<1x128xf32>
    %224 = vector.extract_strided_slice %1 {offsets = [6, 0, 0], sizes = [1, 32, 128], strides = [1, 1, 1]} : vector<8x32x128xf32> to vector<1x32x128xf32>
    %225 = vector.shape_cast %224 : vector<1x32x128xf32> to vector<32x128xf32>
    %226 = arith.mulf %25, %225 : vector<32x128xf32>
    %cst_72 = arith.constant dense<0.000000e+00> : vector<128xf32>
    %227 = vector.multi_reduction <add>, %226, %cst_72 [0] : vector<32x128xf32> to vector<128xf32>
    %228 = vector.shape_cast %227 : vector<128xf32> to vector<1x128xf32>
    %cst_73 = arith.constant 0.000000e+00 : f32
    %229 = vector.broadcast %cst_73 : f32 to vector<1x128xf32>
    %230 = arith.maximumf %228, %229 : vector<1x128xf32>
    %231 = vector.extract_strided_slice %1 {offsets = [7, 0, 0], sizes = [1, 32, 128], strides = [1, 1, 1]} : vector<8x32x128xf32> to vector<1x32x128xf32>
    %232 = vector.shape_cast %231 : vector<1x32x128xf32> to vector<32x128xf32>
    %233 = arith.mulf %25, %232 : vector<32x128xf32>
    %cst_74 = arith.constant dense<0.000000e+00> : vector<128xf32>
    %234 = vector.multi_reduction <add>, %233, %cst_74 [0] : vector<32x128xf32> to vector<128xf32>
    %235 = vector.shape_cast %234 : vector<128xf32> to vector<1x128xf32>
    %cst_75 = arith.constant 0.000000e+00 : f32
    %236 = vector.broadcast %cst_75 : f32 to vector<1x128xf32>
    %237 = arith.maximumf %235, %236 : vector<1x128xf32>
    %238 = vector.extract_strided_slice %1 {offsets = [0, 0, 0], sizes = [1, 32, 128], strides = [1, 1, 1]} : vector<8x32x128xf32> to vector<1x32x128xf32>
    %239 = vector.shape_cast %238 : vector<1x32x128xf32> to vector<32x128xf32>
    %240 = arith.mulf %33, %239 : vector<32x128xf32>
    %cst_76 = arith.constant dense<0.000000e+00> : vector<128xf32>
    %241 = vector.multi_reduction <add>, %240, %cst_76 [0] : vector<32x128xf32> to vector<128xf32>
    %242 = vector.shape_cast %241 : vector<128xf32> to vector<1x128xf32>
    %cst_77 = arith.constant 0.000000e+00 : f32
    %243 = vector.broadcast %cst_77 : f32 to vector<1x128xf32>
    %244 = arith.maximumf %242, %243 : vector<1x128xf32>
    %245 = vector.extract_strided_slice %1 {offsets = [1, 0, 0], sizes = [1, 32, 128], strides = [1, 1, 1]} : vector<8x32x128xf32> to vector<1x32x128xf32>
    %246 = vector.shape_cast %245 : vector<1x32x128xf32> to vector<32x128xf32>
    %247 = arith.mulf %33, %246 : vector<32x128xf32>
    %cst_78 = arith.constant dense<0.000000e+00> : vector<128xf32>
    %248 = vector.multi_reduction <add>, %247, %cst_78 [0] : vector<32x128xf32> to vector<128xf32>
    %249 = vector.shape_cast %248 : vector<128xf32> to vector<1x128xf32>
    %cst_79 = arith.constant 0.000000e+00 : f32
    %250 = vector.broadcast %cst_79 : f32 to vector<1x128xf32>
    %251 = arith.maximumf %249, %250 : vector<1x128xf32>
    %252 = vector.extract_strided_slice %1 {offsets = [2, 0, 0], sizes = [1, 32, 128], strides = [1, 1, 1]} : vector<8x32x128xf32> to vector<1x32x128xf32>
    %253 = vector.shape_cast %252 : vector<1x32x128xf32> to vector<32x128xf32>
    %254 = arith.mulf %33, %253 : vector<32x128xf32>
    %cst_80 = arith.constant dense<0.000000e+00> : vector<128xf32>
    %255 = vector.multi_reduction <add>, %254, %cst_80 [0] : vector<32x128xf32> to vector<128xf32>
    %256 = vector.shape_cast %255 : vector<128xf32> to vector<1x128xf32>
    %cst_81 = arith.constant 0.000000e+00 : f32
    %257 = vector.broadcast %cst_81 : f32 to vector<1x128xf32>
    %258 = arith.maximumf %256, %257 : vector<1x128xf32>
    %259 = vector.extract_strided_slice %1 {offsets = [3, 0, 0], sizes = [1, 32, 128], strides = [1, 1, 1]} : vector<8x32x128xf32> to vector<1x32x128xf32>
    %260 = vector.shape_cast %259 : vector<1x32x128xf32> to vector<32x128xf32>
    %261 = arith.mulf %33, %260 : vector<32x128xf32>
    %cst_82 = arith.constant dense<0.000000e+00> : vector<128xf32>
    %262 = vector.multi_reduction <add>, %261, %cst_82 [0] : vector<32x128xf32> to vector<128xf32>
    %263 = vector.shape_cast %262 : vector<128xf32> to vector<1x128xf32>
    %cst_83 = arith.constant 0.000000e+00 : f32
    %264 = vector.broadcast %cst_83 : f32 to vector<1x128xf32>
    %265 = arith.maximumf %263, %264 : vector<1x128xf32>
    %266 = vector.extract_strided_slice %1 {offsets = [4, 0, 0], sizes = [1, 32, 128], strides = [1, 1, 1]} : vector<8x32x128xf32> to vector<1x32x128xf32>
    %267 = vector.shape_cast %266 : vector<1x32x128xf32> to vector<32x128xf32>
    %268 = arith.mulf %33, %267 : vector<32x128xf32>
    %cst_84 = arith.constant dense<0.000000e+00> : vector<128xf32>
    %269 = vector.multi_reduction <add>, %268, %cst_84 [0] : vector<32x128xf32> to vector<128xf32>
    %270 = vector.shape_cast %269 : vector<128xf32> to vector<1x128xf32>
    %cst_85 = arith.constant 0.000000e+00 : f32
    %271 = vector.broadcast %cst_85 : f32 to vector<1x128xf32>
    %272 = arith.maximumf %270, %271 : vector<1x128xf32>
    %273 = vector.extract_strided_slice %1 {offsets = [5, 0, 0], sizes = [1, 32, 128], strides = [1, 1, 1]} : vector<8x32x128xf32> to vector<1x32x128xf32>
    %274 = vector.shape_cast %273 : vector<1x32x128xf32> to vector<32x128xf32>
    %275 = arith.mulf %33, %274 : vector<32x128xf32>
    %cst_86 = arith.constant dense<0.000000e+00> : vector<128xf32>
    %276 = vector.multi_reduction <add>, %275, %cst_86 [0] : vector<32x128xf32> to vector<128xf32>
    %277 = vector.shape_cast %276 : vector<128xf32> to vector<1x128xf32>
    %cst_87 = arith.constant 0.000000e+00 : f32
    %278 = vector.broadcast %cst_87 : f32 to vector<1x128xf32>
    %279 = arith.maximumf %277, %278 : vector<1x128xf32>
    %280 = vector.extract_strided_slice %1 {offsets = [6, 0, 0], sizes = [1, 32, 128], strides = [1, 1, 1]} : vector<8x32x128xf32> to vector<1x32x128xf32>
    %281 = vector.shape_cast %280 : vector<1x32x128xf32> to vector<32x128xf32>
    %282 = arith.mulf %33, %281 : vector<32x128xf32>
    %cst_88 = arith.constant dense<0.000000e+00> : vector<128xf32>
    %283 = vector.multi_reduction <add>, %282, %cst_88 [0] : vector<32x128xf32> to vector<128xf32>
    %284 = vector.shape_cast %283 : vector<128xf32> to vector<1x128xf32>
    %cst_89 = arith.constant 0.000000e+00 : f32
    %285 = vector.broadcast %cst_89 : f32 to vector<1x128xf32>
    %286 = arith.maximumf %284, %285 : vector<1x128xf32>
    %287 = vector.extract_strided_slice %1 {offsets = [7, 0, 0], sizes = [1, 32, 128], strides = [1, 1, 1]} : vector<8x32x128xf32> to vector<1x32x128xf32>
    %288 = vector.shape_cast %287 : vector<1x32x128xf32> to vector<32x128xf32>
    %289 = arith.mulf %33, %288 : vector<32x128xf32>
    %cst_90 = arith.constant dense<0.000000e+00> : vector<128xf32>
    %290 = vector.multi_reduction <add>, %289, %cst_90 [0] : vector<32x128xf32> to vector<128xf32>
    %291 = vector.shape_cast %290 : vector<128xf32> to vector<1x128xf32>
    %cst_91 = arith.constant 0.000000e+00 : f32
    %292 = vector.broadcast %cst_91 : f32 to vector<1x128xf32>
    %293 = arith.maximumf %291, %292 : vector<1x128xf32>
    %294 = vector.extract_strided_slice %1 {offsets = [0, 0, 0], sizes = [1, 32, 128], strides = [1, 1, 1]} : vector<8x32x128xf32> to vector<1x32x128xf32>
    %295 = vector.shape_cast %294 : vector<1x32x128xf32> to vector<32x128xf32>
    %296 = arith.mulf %41, %295 : vector<32x128xf32>
    %cst_92 = arith.constant dense<0.000000e+00> : vector<128xf32>
    %297 = vector.multi_reduction <add>, %296, %cst_92 [0] : vector<32x128xf32> to vector<128xf32>
    %298 = vector.shape_cast %297 : vector<128xf32> to vector<1x128xf32>
    %cst_93 = arith.constant 0.000000e+00 : f32
    %299 = vector.broadcast %cst_93 : f32 to vector<1x128xf32>
    %300 = arith.maximumf %298, %299 : vector<1x128xf32>
    %301 = vector.extract_strided_slice %1 {offsets = [1, 0, 0], sizes = [1, 32, 128], strides = [1, 1, 1]} : vector<8x32x128xf32> to vector<1x32x128xf32>
    %302 = vector.shape_cast %301 : vector<1x32x128xf32> to vector<32x128xf32>
    %303 = arith.mulf %41, %302 : vector<32x128xf32>
    %cst_94 = arith.constant dense<0.000000e+00> : vector<128xf32>
    %304 = vector.multi_reduction <add>, %303, %cst_94 [0] : vector<32x128xf32> to vector<128xf32>
    %305 = vector.shape_cast %304 : vector<128xf32> to vector<1x128xf32>
    %cst_95 = arith.constant 0.000000e+00 : f32
    %306 = vector.broadcast %cst_95 : f32 to vector<1x128xf32>
    %307 = arith.maximumf %305, %306 : vector<1x128xf32>
    %308 = vector.extract_strided_slice %1 {offsets = [2, 0, 0], sizes = [1, 32, 128], strides = [1, 1, 1]} : vector<8x32x128xf32> to vector<1x32x128xf32>
    %309 = vector.shape_cast %308 : vector<1x32x128xf32> to vector<32x128xf32>
    %310 = arith.mulf %41, %309 : vector<32x128xf32>
    %cst_96 = arith.constant dense<0.000000e+00> : vector<128xf32>
    %311 = vector.multi_reduction <add>, %310, %cst_96 [0] : vector<32x128xf32> to vector<128xf32>
    %312 = vector.shape_cast %311 : vector<128xf32> to vector<1x128xf32>
    %cst_97 = arith.constant 0.000000e+00 : f32
    %313 = vector.broadcast %cst_97 : f32 to vector<1x128xf32>
    %314 = arith.maximumf %312, %313 : vector<1x128xf32>
    %315 = vector.extract_strided_slice %1 {offsets = [3, 0, 0], sizes = [1, 32, 128], strides = [1, 1, 1]} : vector<8x32x128xf32> to vector<1x32x128xf32>
    %316 = vector.shape_cast %315 : vector<1x32x128xf32> to vector<32x128xf32>
    %317 = arith.mulf %41, %316 : vector<32x128xf32>
    %cst_98 = arith.constant dense<0.000000e+00> : vector<128xf32>
    %318 = vector.multi_reduction <add>, %317, %cst_98 [0] : vector<32x128xf32> to vector<128xf32>
    %319 = vector.shape_cast %318 : vector<128xf32> to vector<1x128xf32>
    %cst_99 = arith.constant 0.000000e+00 : f32
    %320 = vector.broadcast %cst_99 : f32 to vector<1x128xf32>
    %321 = arith.maximumf %319, %320 : vector<1x128xf32>
    %322 = vector.extract_strided_slice %1 {offsets = [4, 0, 0], sizes = [1, 32, 128], strides = [1, 1, 1]} : vector<8x32x128xf32> to vector<1x32x128xf32>
    %323 = vector.shape_cast %322 : vector<1x32x128xf32> to vector<32x128xf32>
    %324 = arith.mulf %41, %323 : vector<32x128xf32>
    %cst_100 = arith.constant dense<0.000000e+00> : vector<128xf32>
    %325 = vector.multi_reduction <add>, %324, %cst_100 [0] : vector<32x128xf32> to vector<128xf32>
    %326 = vector.shape_cast %325 : vector<128xf32> to vector<1x128xf32>
    %cst_101 = arith.constant 0.000000e+00 : f32
    %327 = vector.broadcast %cst_101 : f32 to vector<1x128xf32>
    %328 = arith.maximumf %326, %327 : vector<1x128xf32>
    %329 = vector.extract_strided_slice %1 {offsets = [5, 0, 0], sizes = [1, 32, 128], strides = [1, 1, 1]} : vector<8x32x128xf32> to vector<1x32x128xf32>
    %330 = vector.shape_cast %329 : vector<1x32x128xf32> to vector<32x128xf32>
    %331 = arith.mulf %41, %330 : vector<32x128xf32>
    %cst_102 = arith.constant dense<0.000000e+00> : vector<128xf32>
    %332 = vector.multi_reduction <add>, %331, %cst_102 [0] : vector<32x128xf32> to vector<128xf32>
    %333 = vector.shape_cast %332 : vector<128xf32> to vector<1x128xf32>
    %cst_103 = arith.constant 0.000000e+00 : f32
    %334 = vector.broadcast %cst_103 : f32 to vector<1x128xf32>
    %335 = arith.maximumf %333, %334 : vector<1x128xf32>
    %336 = vector.extract_strided_slice %1 {offsets = [6, 0, 0], sizes = [1, 32, 128], strides = [1, 1, 1]} : vector<8x32x128xf32> to vector<1x32x128xf32>
    %337 = vector.shape_cast %336 : vector<1x32x128xf32> to vector<32x128xf32>
    %338 = arith.mulf %41, %337 : vector<32x128xf32>
    %cst_104 = arith.constant dense<0.000000e+00> : vector<128xf32>
    %339 = vector.multi_reduction <add>, %338, %cst_104 [0] : vector<32x128xf32> to vector<128xf32>
    %340 = vector.shape_cast %339 : vector<128xf32> to vector<1x128xf32>
    %cst_105 = arith.constant 0.000000e+00 : f32
    %341 = vector.broadcast %cst_105 : f32 to vector<1x128xf32>
    %342 = arith.maximumf %340, %341 : vector<1x128xf32>
    %343 = vector.extract_strided_slice %1 {offsets = [7, 0, 0], sizes = [1, 32, 128], strides = [1, 1, 1]} : vector<8x32x128xf32> to vector<1x32x128xf32>
    %344 = vector.shape_cast %343 : vector<1x32x128xf32> to vector<32x128xf32>
    %345 = arith.mulf %41, %344 : vector<32x128xf32>
    %cst_106 = arith.constant dense<0.000000e+00> : vector<128xf32>
    %346 = vector.multi_reduction <add>, %345, %cst_106 [0] : vector<32x128xf32> to vector<128xf32>
    %347 = vector.shape_cast %346 : vector<128xf32> to vector<1x128xf32>
    %cst_107 = arith.constant 0.000000e+00 : f32
    %348 = vector.broadcast %cst_107 : f32 to vector<1x128xf32>
    %349 = arith.maximumf %347, %348 : vector<1x128xf32>
    %350 = vector.extract_strided_slice %1 {offsets = [0, 0, 0], sizes = [1, 32, 128], strides = [1, 1, 1]} : vector<8x32x128xf32> to vector<1x32x128xf32>
    %351 = vector.shape_cast %350 : vector<1x32x128xf32> to vector<32x128xf32>
    %352 = arith.mulf %49, %351 : vector<32x128xf32>
    %cst_108 = arith.constant dense<0.000000e+00> : vector<128xf32>
    %353 = vector.multi_reduction <add>, %352, %cst_108 [0] : vector<32x128xf32> to vector<128xf32>
    %354 = vector.shape_cast %353 : vector<128xf32> to vector<1x128xf32>
    %cst_109 = arith.constant 0.000000e+00 : f32
    %355 = vector.broadcast %cst_109 : f32 to vector<1x128xf32>
    %356 = arith.maximumf %354, %355 : vector<1x128xf32>
    %357 = vector.extract_strided_slice %1 {offsets = [1, 0, 0], sizes = [1, 32, 128], strides = [1, 1, 1]} : vector<8x32x128xf32> to vector<1x32x128xf32>
    %358 = vector.shape_cast %357 : vector<1x32x128xf32> to vector<32x128xf32>
    %359 = arith.mulf %49, %358 : vector<32x128xf32>
    %cst_110 = arith.constant dense<0.000000e+00> : vector<128xf32>
    %360 = vector.multi_reduction <add>, %359, %cst_110 [0] : vector<32x128xf32> to vector<128xf32>
    %361 = vector.shape_cast %360 : vector<128xf32> to vector<1x128xf32>
    %cst_111 = arith.constant 0.000000e+00 : f32
    %362 = vector.broadcast %cst_111 : f32 to vector<1x128xf32>
    %363 = arith.maximumf %361, %362 : vector<1x128xf32>
    %364 = vector.extract_strided_slice %1 {offsets = [2, 0, 0], sizes = [1, 32, 128], strides = [1, 1, 1]} : vector<8x32x128xf32> to vector<1x32x128xf32>
    %365 = vector.shape_cast %364 : vector<1x32x128xf32> to vector<32x128xf32>
    %366 = arith.mulf %49, %365 : vector<32x128xf32>
    %cst_112 = arith.constant dense<0.000000e+00> : vector<128xf32>
    %367 = vector.multi_reduction <add>, %366, %cst_112 [0] : vector<32x128xf32> to vector<128xf32>
    %368 = vector.shape_cast %367 : vector<128xf32> to vector<1x128xf32>
    %cst_113 = arith.constant 0.000000e+00 : f32
    %369 = vector.broadcast %cst_113 : f32 to vector<1x128xf32>
    %370 = arith.maximumf %368, %369 : vector<1x128xf32>
    %371 = vector.extract_strided_slice %1 {offsets = [3, 0, 0], sizes = [1, 32, 128], strides = [1, 1, 1]} : vector<8x32x128xf32> to vector<1x32x128xf32>
    %372 = vector.shape_cast %371 : vector<1x32x128xf32> to vector<32x128xf32>
    %373 = arith.mulf %49, %372 : vector<32x128xf32>
    %cst_114 = arith.constant dense<0.000000e+00> : vector<128xf32>
    %374 = vector.multi_reduction <add>, %373, %cst_114 [0] : vector<32x128xf32> to vector<128xf32>
    %375 = vector.shape_cast %374 : vector<128xf32> to vector<1x128xf32>
    %cst_115 = arith.constant 0.000000e+00 : f32
    %376 = vector.broadcast %cst_115 : f32 to vector<1x128xf32>
    %377 = arith.maximumf %375, %376 : vector<1x128xf32>
    %378 = vector.extract_strided_slice %1 {offsets = [4, 0, 0], sizes = [1, 32, 128], strides = [1, 1, 1]} : vector<8x32x128xf32> to vector<1x32x128xf32>
    %379 = vector.shape_cast %378 : vector<1x32x128xf32> to vector<32x128xf32>
    %380 = arith.mulf %49, %379 : vector<32x128xf32>
    %cst_116 = arith.constant dense<0.000000e+00> : vector<128xf32>
    %381 = vector.multi_reduction <add>, %380, %cst_116 [0] : vector<32x128xf32> to vector<128xf32>
    %382 = vector.shape_cast %381 : vector<128xf32> to vector<1x128xf32>
    %cst_117 = arith.constant 0.000000e+00 : f32
    %383 = vector.broadcast %cst_117 : f32 to vector<1x128xf32>
    %384 = arith.maximumf %382, %383 : vector<1x128xf32>
    %385 = vector.extract_strided_slice %1 {offsets = [5, 0, 0], sizes = [1, 32, 128], strides = [1, 1, 1]} : vector<8x32x128xf32> to vector<1x32x128xf32>
    %386 = vector.shape_cast %385 : vector<1x32x128xf32> to vector<32x128xf32>
    %387 = arith.mulf %49, %386 : vector<32x128xf32>
    %cst_118 = arith.constant dense<0.000000e+00> : vector<128xf32>
    %388 = vector.multi_reduction <add>, %387, %cst_118 [0] : vector<32x128xf32> to vector<128xf32>
    %389 = vector.shape_cast %388 : vector<128xf32> to vector<1x128xf32>
    %cst_119 = arith.constant 0.000000e+00 : f32
    %390 = vector.broadcast %cst_119 : f32 to vector<1x128xf32>
    %391 = arith.maximumf %389, %390 : vector<1x128xf32>
    %392 = vector.extract_strided_slice %1 {offsets = [6, 0, 0], sizes = [1, 32, 128], strides = [1, 1, 1]} : vector<8x32x128xf32> to vector<1x32x128xf32>
    %393 = vector.shape_cast %392 : vector<1x32x128xf32> to vector<32x128xf32>
    %394 = arith.mulf %49, %393 : vector<32x128xf32>
    %cst_120 = arith.constant dense<0.000000e+00> : vector<128xf32>
    %395 = vector.multi_reduction <add>, %394, %cst_120 [0] : vector<32x128xf32> to vector<128xf32>
    %396 = vector.shape_cast %395 : vector<128xf32> to vector<1x128xf32>
    %cst_121 = arith.constant 0.000000e+00 : f32
    %397 = vector.broadcast %cst_121 : f32 to vector<1x128xf32>
    %398 = arith.maximumf %396, %397 : vector<1x128xf32>
    %399 = vector.extract_strided_slice %1 {offsets = [7, 0, 0], sizes = [1, 32, 128], strides = [1, 1, 1]} : vector<8x32x128xf32> to vector<1x32x128xf32>
    %400 = vector.shape_cast %399 : vector<1x32x128xf32> to vector<32x128xf32>
    %401 = arith.mulf %49, %400 : vector<32x128xf32>
    %cst_122 = arith.constant dense<0.000000e+00> : vector<128xf32>
    %402 = vector.multi_reduction <add>, %401, %cst_122 [0] : vector<32x128xf32> to vector<128xf32>
    %403 = vector.shape_cast %402 : vector<128xf32> to vector<1x128xf32>
    %cst_123 = arith.constant 0.000000e+00 : f32
    %404 = vector.broadcast %cst_123 : f32 to vector<1x128xf32>
    %405 = arith.maximumf %403, %404 : vector<1x128xf32>
    %406 = vector.extract_strided_slice %1 {offsets = [0, 0, 0], sizes = [1, 32, 128], strides = [1, 1, 1]} : vector<8x32x128xf32> to vector<1x32x128xf32>
    %407 = vector.shape_cast %406 : vector<1x32x128xf32> to vector<32x128xf32>
    %408 = arith.mulf %57, %407 : vector<32x128xf32>
    %cst_124 = arith.constant dense<0.000000e+00> : vector<128xf32>
    %409 = vector.multi_reduction <add>, %408, %cst_124 [0] : vector<32x128xf32> to vector<128xf32>
    %410 = vector.shape_cast %409 : vector<128xf32> to vector<1x128xf32>
    %cst_125 = arith.constant 0.000000e+00 : f32
    %411 = vector.broadcast %cst_125 : f32 to vector<1x128xf32>
    %412 = arith.maximumf %410, %411 : vector<1x128xf32>
    %413 = vector.extract_strided_slice %1 {offsets = [1, 0, 0], sizes = [1, 32, 128], strides = [1, 1, 1]} : vector<8x32x128xf32> to vector<1x32x128xf32>
    %414 = vector.shape_cast %413 : vector<1x32x128xf32> to vector<32x128xf32>
    %415 = arith.mulf %57, %414 : vector<32x128xf32>
    %cst_126 = arith.constant dense<0.000000e+00> : vector<128xf32>
    %416 = vector.multi_reduction <add>, %415, %cst_126 [0] : vector<32x128xf32> to vector<128xf32>
    %417 = vector.shape_cast %416 : vector<128xf32> to vector<1x128xf32>
    %cst_127 = arith.constant 0.000000e+00 : f32
    %418 = vector.broadcast %cst_127 : f32 to vector<1x128xf32>
    %419 = arith.maximumf %417, %418 : vector<1x128xf32>
    %420 = vector.extract_strided_slice %1 {offsets = [2, 0, 0], sizes = [1, 32, 128], strides = [1, 1, 1]} : vector<8x32x128xf32> to vector<1x32x128xf32>
    %421 = vector.shape_cast %420 : vector<1x32x128xf32> to vector<32x128xf32>
    %422 = arith.mulf %57, %421 : vector<32x128xf32>
    %cst_128 = arith.constant dense<0.000000e+00> : vector<128xf32>
    %423 = vector.multi_reduction <add>, %422, %cst_128 [0] : vector<32x128xf32> to vector<128xf32>
    %424 = vector.shape_cast %423 : vector<128xf32> to vector<1x128xf32>
    %cst_129 = arith.constant 0.000000e+00 : f32
    %425 = vector.broadcast %cst_129 : f32 to vector<1x128xf32>
    %426 = arith.maximumf %424, %425 : vector<1x128xf32>
    %427 = vector.extract_strided_slice %1 {offsets = [3, 0, 0], sizes = [1, 32, 128], strides = [1, 1, 1]} : vector<8x32x128xf32> to vector<1x32x128xf32>
    %428 = vector.shape_cast %427 : vector<1x32x128xf32> to vector<32x128xf32>
    %429 = arith.mulf %57, %428 : vector<32x128xf32>
    %cst_130 = arith.constant dense<0.000000e+00> : vector<128xf32>
    %430 = vector.multi_reduction <add>, %429, %cst_130 [0] : vector<32x128xf32> to vector<128xf32>
    %431 = vector.shape_cast %430 : vector<128xf32> to vector<1x128xf32>
    %cst_131 = arith.constant 0.000000e+00 : f32
    %432 = vector.broadcast %cst_131 : f32 to vector<1x128xf32>
    %433 = arith.maximumf %431, %432 : vector<1x128xf32>
    %434 = vector.extract_strided_slice %1 {offsets = [4, 0, 0], sizes = [1, 32, 128], strides = [1, 1, 1]} : vector<8x32x128xf32> to vector<1x32x128xf32>
    %435 = vector.shape_cast %434 : vector<1x32x128xf32> to vector<32x128xf32>
    %436 = arith.mulf %57, %435 : vector<32x128xf32>
    %cst_132 = arith.constant dense<0.000000e+00> : vector<128xf32>
    %437 = vector.multi_reduction <add>, %436, %cst_132 [0] : vector<32x128xf32> to vector<128xf32>
    %438 = vector.shape_cast %437 : vector<128xf32> to vector<1x128xf32>
    %cst_133 = arith.constant 0.000000e+00 : f32
    %439 = vector.broadcast %cst_133 : f32 to vector<1x128xf32>
    %440 = arith.maximumf %438, %439 : vector<1x128xf32>
    %441 = vector.extract_strided_slice %1 {offsets = [5, 0, 0], sizes = [1, 32, 128], strides = [1, 1, 1]} : vector<8x32x128xf32> to vector<1x32x128xf32>
    %442 = vector.shape_cast %441 : vector<1x32x128xf32> to vector<32x128xf32>
    %443 = arith.mulf %57, %442 : vector<32x128xf32>
    %cst_134 = arith.constant dense<0.000000e+00> : vector<128xf32>
    %444 = vector.multi_reduction <add>, %443, %cst_134 [0] : vector<32x128xf32> to vector<128xf32>
    %445 = vector.shape_cast %444 : vector<128xf32> to vector<1x128xf32>
    %cst_135 = arith.constant 0.000000e+00 : f32
    %446 = vector.broadcast %cst_135 : f32 to vector<1x128xf32>
    %447 = arith.maximumf %445, %446 : vector<1x128xf32>
    %448 = vector.extract_strided_slice %1 {offsets = [6, 0, 0], sizes = [1, 32, 128], strides = [1, 1, 1]} : vector<8x32x128xf32> to vector<1x32x128xf32>
    %449 = vector.shape_cast %448 : vector<1x32x128xf32> to vector<32x128xf32>
    %450 = arith.mulf %57, %449 : vector<32x128xf32>
    %cst_136 = arith.constant dense<0.000000e+00> : vector<128xf32>
    %451 = vector.multi_reduction <add>, %450, %cst_136 [0] : vector<32x128xf32> to vector<128xf32>
    %452 = vector.shape_cast %451 : vector<128xf32> to vector<1x128xf32>
    %cst_137 = arith.constant 0.000000e+00 : f32
    %453 = vector.broadcast %cst_137 : f32 to vector<1x128xf32>
    %454 = arith.maximumf %452, %453 : vector<1x128xf32>
    %455 = vector.extract_strided_slice %1 {offsets = [7, 0, 0], sizes = [1, 32, 128], strides = [1, 1, 1]} : vector<8x32x128xf32> to vector<1x32x128xf32>
    %456 = vector.shape_cast %455 : vector<1x32x128xf32> to vector<32x128xf32>
    %457 = arith.mulf %57, %456 : vector<32x128xf32>
    %cst_138 = arith.constant dense<0.000000e+00> : vector<128xf32>
    %458 = vector.multi_reduction <add>, %457, %cst_138 [0] : vector<32x128xf32> to vector<128xf32>
    %459 = vector.shape_cast %458 : vector<128xf32> to vector<1x128xf32>
    %cst_139 = arith.constant 0.000000e+00 : f32
    %460 = vector.broadcast %cst_139 : f32 to vector<1x128xf32>
    %461 = arith.maximumf %459, %460 : vector<1x128xf32>
    %462 = vector.extract_strided_slice %1 {offsets = [0, 0, 0], sizes = [1, 32, 128], strides = [1, 1, 1]} : vector<8x32x128xf32> to vector<1x32x128xf32>
    %463 = vector.shape_cast %462 : vector<1x32x128xf32> to vector<32x128xf32>
    %464 = arith.mulf %65, %463 : vector<32x128xf32>
    %cst_140 = arith.constant dense<0.000000e+00> : vector<128xf32>
    %465 = vector.multi_reduction <add>, %464, %cst_140 [0] : vector<32x128xf32> to vector<128xf32>
    %466 = vector.shape_cast %465 : vector<128xf32> to vector<1x128xf32>
    %cst_141 = arith.constant 0.000000e+00 : f32
    %467 = vector.broadcast %cst_141 : f32 to vector<1x128xf32>
    %468 = arith.maximumf %466, %467 : vector<1x128xf32>
    %469 = vector.extract_strided_slice %1 {offsets = [1, 0, 0], sizes = [1, 32, 128], strides = [1, 1, 1]} : vector<8x32x128xf32> to vector<1x32x128xf32>
    %470 = vector.shape_cast %469 : vector<1x32x128xf32> to vector<32x128xf32>
    %471 = arith.mulf %65, %470 : vector<32x128xf32>
    %cst_142 = arith.constant dense<0.000000e+00> : vector<128xf32>
    %472 = vector.multi_reduction <add>, %471, %cst_142 [0] : vector<32x128xf32> to vector<128xf32>
    %473 = vector.shape_cast %472 : vector<128xf32> to vector<1x128xf32>
    %cst_143 = arith.constant 0.000000e+00 : f32
    %474 = vector.broadcast %cst_143 : f32 to vector<1x128xf32>
    %475 = arith.maximumf %473, %474 : vector<1x128xf32>
    %476 = vector.extract_strided_slice %1 {offsets = [2, 0, 0], sizes = [1, 32, 128], strides = [1, 1, 1]} : vector<8x32x128xf32> to vector<1x32x128xf32>
    %477 = vector.shape_cast %476 : vector<1x32x128xf32> to vector<32x128xf32>
    %478 = arith.mulf %65, %477 : vector<32x128xf32>
    %cst_144 = arith.constant dense<0.000000e+00> : vector<128xf32>
    %479 = vector.multi_reduction <add>, %478, %cst_144 [0] : vector<32x128xf32> to vector<128xf32>
    %480 = vector.shape_cast %479 : vector<128xf32> to vector<1x128xf32>
    %cst_145 = arith.constant 0.000000e+00 : f32
    %481 = vector.broadcast %cst_145 : f32 to vector<1x128xf32>
    %482 = arith.maximumf %480, %481 : vector<1x128xf32>
    %483 = vector.extract_strided_slice %1 {offsets = [3, 0, 0], sizes = [1, 32, 128], strides = [1, 1, 1]} : vector<8x32x128xf32> to vector<1x32x128xf32>
    %484 = vector.shape_cast %483 : vector<1x32x128xf32> to vector<32x128xf32>
    %485 = arith.mulf %65, %484 : vector<32x128xf32>
    %cst_146 = arith.constant dense<0.000000e+00> : vector<128xf32>
    %486 = vector.multi_reduction <add>, %485, %cst_146 [0] : vector<32x128xf32> to vector<128xf32>
    %487 = vector.shape_cast %486 : vector<128xf32> to vector<1x128xf32>
    %cst_147 = arith.constant 0.000000e+00 : f32
    %488 = vector.broadcast %cst_147 : f32 to vector<1x128xf32>
    %489 = arith.maximumf %487, %488 : vector<1x128xf32>
    %490 = vector.extract_strided_slice %1 {offsets = [4, 0, 0], sizes = [1, 32, 128], strides = [1, 1, 1]} : vector<8x32x128xf32> to vector<1x32x128xf32>
    %491 = vector.shape_cast %490 : vector<1x32x128xf32> to vector<32x128xf32>
    %492 = arith.mulf %65, %491 : vector<32x128xf32>
    %cst_148 = arith.constant dense<0.000000e+00> : vector<128xf32>
    %493 = vector.multi_reduction <add>, %492, %cst_148 [0] : vector<32x128xf32> to vector<128xf32>
    %494 = vector.shape_cast %493 : vector<128xf32> to vector<1x128xf32>
    %cst_149 = arith.constant 0.000000e+00 : f32
    %495 = vector.broadcast %cst_149 : f32 to vector<1x128xf32>
    %496 = arith.maximumf %494, %495 : vector<1x128xf32>
    %497 = vector.extract_strided_slice %1 {offsets = [5, 0, 0], sizes = [1, 32, 128], strides = [1, 1, 1]} : vector<8x32x128xf32> to vector<1x32x128xf32>
    %498 = vector.shape_cast %497 : vector<1x32x128xf32> to vector<32x128xf32>
    %499 = arith.mulf %65, %498 : vector<32x128xf32>
    %cst_150 = arith.constant dense<0.000000e+00> : vector<128xf32>
    %500 = vector.multi_reduction <add>, %499, %cst_150 [0] : vector<32x128xf32> to vector<128xf32>
    %501 = vector.shape_cast %500 : vector<128xf32> to vector<1x128xf32>
    %cst_151 = arith.constant 0.000000e+00 : f32
    %502 = vector.broadcast %cst_151 : f32 to vector<1x128xf32>
    %503 = arith.maximumf %501, %502 : vector<1x128xf32>
    %504 = vector.extract_strided_slice %1 {offsets = [6, 0, 0], sizes = [1, 32, 128], strides = [1, 1, 1]} : vector<8x32x128xf32> to vector<1x32x128xf32>
    %505 = vector.shape_cast %504 : vector<1x32x128xf32> to vector<32x128xf32>
    %506 = arith.mulf %65, %505 : vector<32x128xf32>
    %cst_152 = arith.constant dense<0.000000e+00> : vector<128xf32>
    %507 = vector.multi_reduction <add>, %506, %cst_152 [0] : vector<32x128xf32> to vector<128xf32>
    %508 = vector.shape_cast %507 : vector<128xf32> to vector<1x128xf32>
    %cst_153 = arith.constant 0.000000e+00 : f32
    %509 = vector.broadcast %cst_153 : f32 to vector<1x128xf32>
    %510 = arith.maximumf %508, %509 : vector<1x128xf32>
    %511 = vector.extract_strided_slice %1 {offsets = [7, 0, 0], sizes = [1, 32, 128], strides = [1, 1, 1]} : vector<8x32x128xf32> to vector<1x32x128xf32>
    %512 = vector.shape_cast %511 : vector<1x32x128xf32> to vector<32x128xf32>
    %513 = arith.mulf %65, %512 : vector<32x128xf32>
    %cst_154 = arith.constant dense<0.000000e+00> : vector<128xf32>
    %514 = vector.multi_reduction <add>, %513, %cst_154 [0] : vector<32x128xf32> to vector<128xf32>
    %515 = vector.shape_cast %514 : vector<128xf32> to vector<1x128xf32>
    %cst_155 = arith.constant 0.000000e+00 : f32
    %516 = vector.broadcast %cst_155 : f32 to vector<1x128xf32>
    %517 = arith.maximumf %515, %516 : vector<1x128xf32>
    %518 = vector.broadcast %76 : vector<1x128xf32> to vector<16x128xf32>
    %519 = arith.mulf %518, %13 : vector<16x128xf32>
    %520 = arith.addf %10, %519 : vector<16x128xf32>
    %521 = vector.broadcast %76 : vector<1x128xf32> to vector<16x128xf32>
    %522 = arith.mulf %521, %10 : vector<16x128xf32>
    %523 = arith.addf %13, %522 : vector<16x128xf32>
    %524 = vector.broadcast %132 : vector<1x128xf32> to vector<16x128xf32>
    %525 = arith.mulf %524, %21 : vector<16x128xf32>
    %526 = arith.addf %520, %525 : vector<16x128xf32>
    %527 = vector.broadcast %83 : vector<1x128xf32> to vector<16x128xf32>
    %528 = arith.mulf %527, %18 : vector<16x128xf32>
    %529 = arith.addf %523, %528 : vector<16x128xf32>
    %530 = vector.broadcast %188 : vector<1x128xf32> to vector<16x128xf32>
    %531 = arith.mulf %530, %29 : vector<16x128xf32>
    %532 = arith.addf %526, %531 : vector<16x128xf32>
    %533 = vector.broadcast %90 : vector<1x128xf32> to vector<16x128xf32>
    %534 = arith.mulf %533, %26 : vector<16x128xf32>
    %535 = arith.addf %529, %534 : vector<16x128xf32>
    %536 = vector.broadcast %244 : vector<1x128xf32> to vector<16x128xf32>
    %537 = arith.mulf %536, %37 : vector<16x128xf32>
    %538 = arith.addf %532, %537 : vector<16x128xf32>
    %539 = vector.broadcast %97 : vector<1x128xf32> to vector<16x128xf32>
    %540 = arith.mulf %539, %34 : vector<16x128xf32>
    %541 = arith.addf %535, %540 : vector<16x128xf32>
    %542 = vector.broadcast %300 : vector<1x128xf32> to vector<16x128xf32>
    %543 = arith.mulf %542, %45 : vector<16x128xf32>
    %544 = arith.addf %538, %543 : vector<16x128xf32>
    %545 = vector.broadcast %104 : vector<1x128xf32> to vector<16x128xf32>
    %546 = arith.mulf %545, %42 : vector<16x128xf32>
    %547 = arith.addf %541, %546 : vector<16x128xf32>
    %548 = vector.broadcast %356 : vector<1x128xf32> to vector<16x128xf32>
    %549 = arith.mulf %548, %53 : vector<16x128xf32>
    %550 = arith.addf %544, %549 : vector<16x128xf32>
    %551 = vector.broadcast %111 : vector<1x128xf32> to vector<16x128xf32>
    %552 = arith.mulf %551, %50 : vector<16x128xf32>
    %553 = arith.addf %547, %552 : vector<16x128xf32>
    %554 = vector.broadcast %412 : vector<1x128xf32> to vector<16x128xf32>
    %555 = arith.mulf %554, %61 : vector<16x128xf32>
    %556 = arith.addf %550, %555 : vector<16x128xf32>
    %557 = vector.broadcast %118 : vector<1x128xf32> to vector<16x128xf32>
    %558 = arith.mulf %557, %58 : vector<16x128xf32>
    %559 = arith.addf %553, %558 : vector<16x128xf32>
    %560 = vector.broadcast %468 : vector<1x128xf32> to vector<16x128xf32>
    %561 = arith.mulf %560, %69 : vector<16x128xf32>
    %562 = arith.addf %556, %561 : vector<16x128xf32>
    %563 = vector.broadcast %125 : vector<1x128xf32> to vector<16x128xf32>
    %564 = arith.mulf %563, %66 : vector<16x128xf32>
    %565 = arith.addf %559, %564 : vector<16x128xf32>
    %cst_156 = arith.constant 0.000000e+00 : f32
    %566 = vector.broadcast %cst_156 : f32 to vector<16x128xf32>
    %567 = arith.maximumf %562, %566 : vector<16x128xf32>
    %cst_157 = arith.constant 0.000000e+00 : f32
    %568 = vector.broadcast %cst_157 : f32 to vector<16x128xf32>
    %569 = arith.maximumf %565, %568 : vector<16x128xf32>
    %570 = vector.broadcast %4 : vector<16x1xf32> to vector<16x128xf32>
    %571 = arith.mulf %567, %570 : vector<16x128xf32>
    %cst_158 = arith.constant dense<0.000000e+00> : vector<128xf32>
    %572 = vector.multi_reduction <add>, %571, %cst_158 [0] : vector<16x128xf32> to vector<128xf32>
    %573 = vector.shape_cast %572 : vector<128xf32> to vector<1x128xf32>
    %574 = vector.broadcast %5 : vector<16x1xf32> to vector<16x128xf32>
    %575 = arith.mulf %569, %574 : vector<16x128xf32>
    %cst_159 = arith.constant dense<0.000000e+00> : vector<128xf32>
    %576 = vector.multi_reduction <add>, %575, %cst_159 [0] : vector<16x128xf32> to vector<128xf32>
    %577 = vector.shape_cast %576 : vector<128xf32> to vector<1x128xf32>
    %578 = vector.broadcast %83 : vector<1x128xf32> to vector<16x128xf32>
    %579 = arith.mulf %578, %13 : vector<16x128xf32>
    %580 = arith.addf %18, %579 : vector<16x128xf32>
    %581 = vector.broadcast %132 : vector<1x128xf32> to vector<16x128xf32>
    %582 = arith.mulf %581, %10 : vector<16x128xf32>
    %583 = arith.addf %21, %582 : vector<16x128xf32>
    %584 = vector.broadcast %139 : vector<1x128xf32> to vector<16x128xf32>
    %585 = arith.mulf %584, %21 : vector<16x128xf32>
    %586 = arith.addf %580, %585 : vector<16x128xf32>
    %587 = vector.broadcast %139 : vector<1x128xf32> to vector<16x128xf32>
    %588 = arith.mulf %587, %18 : vector<16x128xf32>
    %589 = arith.addf %583, %588 : vector<16x128xf32>
    %590 = vector.broadcast %195 : vector<1x128xf32> to vector<16x128xf32>
    %591 = arith.mulf %590, %29 : vector<16x128xf32>
    %592 = arith.addf %586, %591 : vector<16x128xf32>
    %593 = vector.broadcast %146 : vector<1x128xf32> to vector<16x128xf32>
    %594 = arith.mulf %593, %26 : vector<16x128xf32>
    %595 = arith.addf %589, %594 : vector<16x128xf32>
    %596 = vector.broadcast %251 : vector<1x128xf32> to vector<16x128xf32>
    %597 = arith.mulf %596, %37 : vector<16x128xf32>
    %598 = arith.addf %592, %597 : vector<16x128xf32>
    %599 = vector.broadcast %153 : vector<1x128xf32> to vector<16x128xf32>
    %600 = arith.mulf %599, %34 : vector<16x128xf32>
    %601 = arith.addf %595, %600 : vector<16x128xf32>
    %602 = vector.broadcast %307 : vector<1x128xf32> to vector<16x128xf32>
    %603 = arith.mulf %602, %45 : vector<16x128xf32>
    %604 = arith.addf %598, %603 : vector<16x128xf32>
    %605 = vector.broadcast %160 : vector<1x128xf32> to vector<16x128xf32>
    %606 = arith.mulf %605, %42 : vector<16x128xf32>
    %607 = arith.addf %601, %606 : vector<16x128xf32>
    %608 = vector.broadcast %363 : vector<1x128xf32> to vector<16x128xf32>
    %609 = arith.mulf %608, %53 : vector<16x128xf32>
    %610 = arith.addf %604, %609 : vector<16x128xf32>
    %611 = vector.broadcast %167 : vector<1x128xf32> to vector<16x128xf32>
    %612 = arith.mulf %611, %50 : vector<16x128xf32>
    %613 = arith.addf %607, %612 : vector<16x128xf32>
    %614 = vector.broadcast %419 : vector<1x128xf32> to vector<16x128xf32>
    %615 = arith.mulf %614, %61 : vector<16x128xf32>
    %616 = arith.addf %610, %615 : vector<16x128xf32>
    %617 = vector.broadcast %174 : vector<1x128xf32> to vector<16x128xf32>
    %618 = arith.mulf %617, %58 : vector<16x128xf32>
    %619 = arith.addf %613, %618 : vector<16x128xf32>
    %620 = vector.broadcast %475 : vector<1x128xf32> to vector<16x128xf32>
    %621 = arith.mulf %620, %69 : vector<16x128xf32>
    %622 = arith.addf %616, %621 : vector<16x128xf32>
    %623 = vector.broadcast %181 : vector<1x128xf32> to vector<16x128xf32>
    %624 = arith.mulf %623, %66 : vector<16x128xf32>
    %625 = arith.addf %619, %624 : vector<16x128xf32>
    %cst_160 = arith.constant 0.000000e+00 : f32
    %626 = vector.broadcast %cst_160 : f32 to vector<16x128xf32>
    %627 = arith.maximumf %622, %626 : vector<16x128xf32>
    %cst_161 = arith.constant 0.000000e+00 : f32
    %628 = vector.broadcast %cst_161 : f32 to vector<16x128xf32>
    %629 = arith.maximumf %625, %628 : vector<16x128xf32>
    %630 = vector.broadcast %4 : vector<16x1xf32> to vector<16x128xf32>
    %631 = arith.mulf %627, %630 : vector<16x128xf32>
    %cst_162 = arith.constant dense<0.000000e+00> : vector<128xf32>
    %632 = vector.multi_reduction <add>, %631, %cst_162 [0] : vector<16x128xf32> to vector<128xf32>
    %633 = vector.shape_cast %632 : vector<128xf32> to vector<1x128xf32>
    %634 = vector.broadcast %5 : vector<16x1xf32> to vector<16x128xf32>
    %635 = arith.mulf %629, %634 : vector<16x128xf32>
    %cst_163 = arith.constant dense<0.000000e+00> : vector<128xf32>
    %636 = vector.multi_reduction <add>, %635, %cst_163 [0] : vector<16x128xf32> to vector<128xf32>
    %637 = vector.shape_cast %636 : vector<128xf32> to vector<1x128xf32>
    %638 = vector.broadcast %90 : vector<1x128xf32> to vector<16x128xf32>
    %639 = arith.mulf %638, %13 : vector<16x128xf32>
    %640 = arith.addf %26, %639 : vector<16x128xf32>
    %641 = vector.broadcast %188 : vector<1x128xf32> to vector<16x128xf32>
    %642 = arith.mulf %641, %10 : vector<16x128xf32>
    %643 = arith.addf %29, %642 : vector<16x128xf32>
    %644 = vector.broadcast %146 : vector<1x128xf32> to vector<16x128xf32>
    %645 = arith.mulf %644, %21 : vector<16x128xf32>
    %646 = arith.addf %640, %645 : vector<16x128xf32>
    %647 = vector.broadcast %195 : vector<1x128xf32> to vector<16x128xf32>
    %648 = arith.mulf %647, %18 : vector<16x128xf32>
    %649 = arith.addf %643, %648 : vector<16x128xf32>
    %650 = vector.broadcast %202 : vector<1x128xf32> to vector<16x128xf32>
    %651 = arith.mulf %650, %29 : vector<16x128xf32>
    %652 = arith.addf %646, %651 : vector<16x128xf32>
    %653 = vector.broadcast %202 : vector<1x128xf32> to vector<16x128xf32>
    %654 = arith.mulf %653, %26 : vector<16x128xf32>
    %655 = arith.addf %649, %654 : vector<16x128xf32>
    %656 = vector.broadcast %258 : vector<1x128xf32> to vector<16x128xf32>
    %657 = arith.mulf %656, %37 : vector<16x128xf32>
    %658 = arith.addf %652, %657 : vector<16x128xf32>
    %659 = vector.broadcast %209 : vector<1x128xf32> to vector<16x128xf32>
    %660 = arith.mulf %659, %34 : vector<16x128xf32>
    %661 = arith.addf %655, %660 : vector<16x128xf32>
    %662 = vector.broadcast %314 : vector<1x128xf32> to vector<16x128xf32>
    %663 = arith.mulf %662, %45 : vector<16x128xf32>
    %664 = arith.addf %658, %663 : vector<16x128xf32>
    %665 = vector.broadcast %216 : vector<1x128xf32> to vector<16x128xf32>
    %666 = arith.mulf %665, %42 : vector<16x128xf32>
    %667 = arith.addf %661, %666 : vector<16x128xf32>
    %668 = vector.broadcast %370 : vector<1x128xf32> to vector<16x128xf32>
    %669 = arith.mulf %668, %53 : vector<16x128xf32>
    %670 = arith.addf %664, %669 : vector<16x128xf32>
    %671 = vector.broadcast %223 : vector<1x128xf32> to vector<16x128xf32>
    %672 = arith.mulf %671, %50 : vector<16x128xf32>
    %673 = arith.addf %667, %672 : vector<16x128xf32>
    %674 = vector.broadcast %426 : vector<1x128xf32> to vector<16x128xf32>
    %675 = arith.mulf %674, %61 : vector<16x128xf32>
    %676 = arith.addf %670, %675 : vector<16x128xf32>
    %677 = vector.broadcast %230 : vector<1x128xf32> to vector<16x128xf32>
    %678 = arith.mulf %677, %58 : vector<16x128xf32>
    %679 = arith.addf %673, %678 : vector<16x128xf32>
    %680 = vector.broadcast %482 : vector<1x128xf32> to vector<16x128xf32>
    %681 = arith.mulf %680, %69 : vector<16x128xf32>
    %682 = arith.addf %676, %681 : vector<16x128xf32>
    %683 = vector.broadcast %237 : vector<1x128xf32> to vector<16x128xf32>
    %684 = arith.mulf %683, %66 : vector<16x128xf32>
    %685 = arith.addf %679, %684 : vector<16x128xf32>
    %cst_164 = arith.constant 0.000000e+00 : f32
    %686 = vector.broadcast %cst_164 : f32 to vector<16x128xf32>
    %687 = arith.maximumf %682, %686 : vector<16x128xf32>
    %cst_165 = arith.constant 0.000000e+00 : f32
    %688 = vector.broadcast %cst_165 : f32 to vector<16x128xf32>
    %689 = arith.maximumf %685, %688 : vector<16x128xf32>
    %690 = vector.broadcast %4 : vector<16x1xf32> to vector<16x128xf32>
    %691 = arith.mulf %687, %690 : vector<16x128xf32>
    %cst_166 = arith.constant dense<0.000000e+00> : vector<128xf32>
    %692 = vector.multi_reduction <add>, %691, %cst_166 [0] : vector<16x128xf32> to vector<128xf32>
    %693 = vector.shape_cast %692 : vector<128xf32> to vector<1x128xf32>
    %694 = vector.broadcast %5 : vector<16x1xf32> to vector<16x128xf32>
    %695 = arith.mulf %689, %694 : vector<16x128xf32>
    %cst_167 = arith.constant dense<0.000000e+00> : vector<128xf32>
    %696 = vector.multi_reduction <add>, %695, %cst_167 [0] : vector<16x128xf32> to vector<128xf32>
    %697 = vector.shape_cast %696 : vector<128xf32> to vector<1x128xf32>
    %698 = vector.broadcast %97 : vector<1x128xf32> to vector<16x128xf32>
    %699 = arith.mulf %698, %13 : vector<16x128xf32>
    %700 = arith.addf %34, %699 : vector<16x128xf32>
    %701 = vector.broadcast %244 : vector<1x128xf32> to vector<16x128xf32>
    %702 = arith.mulf %701, %10 : vector<16x128xf32>
    %703 = arith.addf %37, %702 : vector<16x128xf32>
    %704 = vector.broadcast %153 : vector<1x128xf32> to vector<16x128xf32>
    %705 = arith.mulf %704, %21 : vector<16x128xf32>
    %706 = arith.addf %700, %705 : vector<16x128xf32>
    %707 = vector.broadcast %251 : vector<1x128xf32> to vector<16x128xf32>
    %708 = arith.mulf %707, %18 : vector<16x128xf32>
    %709 = arith.addf %703, %708 : vector<16x128xf32>
    %710 = vector.broadcast %209 : vector<1x128xf32> to vector<16x128xf32>
    %711 = arith.mulf %710, %29 : vector<16x128xf32>
    %712 = arith.addf %706, %711 : vector<16x128xf32>
    %713 = vector.broadcast %258 : vector<1x128xf32> to vector<16x128xf32>
    %714 = arith.mulf %713, %26 : vector<16x128xf32>
    %715 = arith.addf %709, %714 : vector<16x128xf32>
    %716 = vector.broadcast %265 : vector<1x128xf32> to vector<16x128xf32>
    %717 = arith.mulf %716, %37 : vector<16x128xf32>
    %718 = arith.addf %712, %717 : vector<16x128xf32>
    %719 = vector.broadcast %265 : vector<1x128xf32> to vector<16x128xf32>
    %720 = arith.mulf %719, %34 : vector<16x128xf32>
    %721 = arith.addf %715, %720 : vector<16x128xf32>
    %722 = vector.broadcast %321 : vector<1x128xf32> to vector<16x128xf32>
    %723 = arith.mulf %722, %45 : vector<16x128xf32>
    %724 = arith.addf %718, %723 : vector<16x128xf32>
    %725 = vector.broadcast %272 : vector<1x128xf32> to vector<16x128xf32>
    %726 = arith.mulf %725, %42 : vector<16x128xf32>
    %727 = arith.addf %721, %726 : vector<16x128xf32>
    %728 = vector.broadcast %377 : vector<1x128xf32> to vector<16x128xf32>
    %729 = arith.mulf %728, %53 : vector<16x128xf32>
    %730 = arith.addf %724, %729 : vector<16x128xf32>
    %731 = vector.broadcast %279 : vector<1x128xf32> to vector<16x128xf32>
    %732 = arith.mulf %731, %50 : vector<16x128xf32>
    %733 = arith.addf %727, %732 : vector<16x128xf32>
    %734 = vector.broadcast %433 : vector<1x128xf32> to vector<16x128xf32>
    %735 = arith.mulf %734, %61 : vector<16x128xf32>
    %736 = arith.addf %730, %735 : vector<16x128xf32>
    %737 = vector.broadcast %286 : vector<1x128xf32> to vector<16x128xf32>
    %738 = arith.mulf %737, %58 : vector<16x128xf32>
    %739 = arith.addf %733, %738 : vector<16x128xf32>
    %740 = vector.broadcast %489 : vector<1x128xf32> to vector<16x128xf32>
    %741 = arith.mulf %740, %69 : vector<16x128xf32>
    %742 = arith.addf %736, %741 : vector<16x128xf32>
    %743 = vector.broadcast %293 : vector<1x128xf32> to vector<16x128xf32>
    %744 = arith.mulf %743, %66 : vector<16x128xf32>
    %745 = arith.addf %739, %744 : vector<16x128xf32>
    %cst_168 = arith.constant 0.000000e+00 : f32
    %746 = vector.broadcast %cst_168 : f32 to vector<16x128xf32>
    %747 = arith.maximumf %742, %746 : vector<16x128xf32>
    %cst_169 = arith.constant 0.000000e+00 : f32
    %748 = vector.broadcast %cst_169 : f32 to vector<16x128xf32>
    %749 = arith.maximumf %745, %748 : vector<16x128xf32>
    %750 = vector.broadcast %4 : vector<16x1xf32> to vector<16x128xf32>
    %751 = arith.mulf %747, %750 : vector<16x128xf32>
    %cst_170 = arith.constant dense<0.000000e+00> : vector<128xf32>
    %752 = vector.multi_reduction <add>, %751, %cst_170 [0] : vector<16x128xf32> to vector<128xf32>
    %753 = vector.shape_cast %752 : vector<128xf32> to vector<1x128xf32>
    %754 = vector.broadcast %5 : vector<16x1xf32> to vector<16x128xf32>
    %755 = arith.mulf %749, %754 : vector<16x128xf32>
    %cst_171 = arith.constant dense<0.000000e+00> : vector<128xf32>
    %756 = vector.multi_reduction <add>, %755, %cst_171 [0] : vector<16x128xf32> to vector<128xf32>
    %757 = vector.shape_cast %756 : vector<128xf32> to vector<1x128xf32>
    %758 = vector.broadcast %104 : vector<1x128xf32> to vector<16x128xf32>
    %759 = arith.mulf %758, %13 : vector<16x128xf32>
    %760 = arith.addf %42, %759 : vector<16x128xf32>
    %761 = vector.broadcast %300 : vector<1x128xf32> to vector<16x128xf32>
    %762 = arith.mulf %761, %10 : vector<16x128xf32>
    %763 = arith.addf %45, %762 : vector<16x128xf32>
    %764 = vector.broadcast %160 : vector<1x128xf32> to vector<16x128xf32>
    %765 = arith.mulf %764, %21 : vector<16x128xf32>
    %766 = arith.addf %760, %765 : vector<16x128xf32>
    %767 = vector.broadcast %307 : vector<1x128xf32> to vector<16x128xf32>
    %768 = arith.mulf %767, %18 : vector<16x128xf32>
    %769 = arith.addf %763, %768 : vector<16x128xf32>
    %770 = vector.broadcast %216 : vector<1x128xf32> to vector<16x128xf32>
    %771 = arith.mulf %770, %29 : vector<16x128xf32>
    %772 = arith.addf %766, %771 : vector<16x128xf32>
    %773 = vector.broadcast %314 : vector<1x128xf32> to vector<16x128xf32>
    %774 = arith.mulf %773, %26 : vector<16x128xf32>
    %775 = arith.addf %769, %774 : vector<16x128xf32>
    %776 = vector.broadcast %272 : vector<1x128xf32> to vector<16x128xf32>
    %777 = arith.mulf %776, %37 : vector<16x128xf32>
    %778 = arith.addf %772, %777 : vector<16x128xf32>
    %779 = vector.broadcast %321 : vector<1x128xf32> to vector<16x128xf32>
    %780 = arith.mulf %779, %34 : vector<16x128xf32>
    %781 = arith.addf %775, %780 : vector<16x128xf32>
    %782 = vector.broadcast %328 : vector<1x128xf32> to vector<16x128xf32>
    %783 = arith.mulf %782, %45 : vector<16x128xf32>
    %784 = arith.addf %778, %783 : vector<16x128xf32>
    %785 = vector.broadcast %328 : vector<1x128xf32> to vector<16x128xf32>
    %786 = arith.mulf %785, %42 : vector<16x128xf32>
    %787 = arith.addf %781, %786 : vector<16x128xf32>
    %788 = vector.broadcast %384 : vector<1x128xf32> to vector<16x128xf32>
    %789 = arith.mulf %788, %53 : vector<16x128xf32>
    %790 = arith.addf %784, %789 : vector<16x128xf32>
    %791 = vector.broadcast %335 : vector<1x128xf32> to vector<16x128xf32>
    %792 = arith.mulf %791, %50 : vector<16x128xf32>
    %793 = arith.addf %787, %792 : vector<16x128xf32>
    %794 = vector.broadcast %440 : vector<1x128xf32> to vector<16x128xf32>
    %795 = arith.mulf %794, %61 : vector<16x128xf32>
    %796 = arith.addf %790, %795 : vector<16x128xf32>
    %797 = vector.broadcast %342 : vector<1x128xf32> to vector<16x128xf32>
    %798 = arith.mulf %797, %58 : vector<16x128xf32>
    %799 = arith.addf %793, %798 : vector<16x128xf32>
    %800 = vector.broadcast %496 : vector<1x128xf32> to vector<16x128xf32>
    %801 = arith.mulf %800, %69 : vector<16x128xf32>
    %802 = arith.addf %796, %801 : vector<16x128xf32>
    %803 = vector.broadcast %349 : vector<1x128xf32> to vector<16x128xf32>
    %804 = arith.mulf %803, %66 : vector<16x128xf32>
    %805 = arith.addf %799, %804 : vector<16x128xf32>
    %cst_172 = arith.constant 0.000000e+00 : f32
    %806 = vector.broadcast %cst_172 : f32 to vector<16x128xf32>
    %807 = arith.maximumf %802, %806 : vector<16x128xf32>
    %cst_173 = arith.constant 0.000000e+00 : f32
    %808 = vector.broadcast %cst_173 : f32 to vector<16x128xf32>
    %809 = arith.maximumf %805, %808 : vector<16x128xf32>
    %810 = vector.broadcast %4 : vector<16x1xf32> to vector<16x128xf32>
    %811 = arith.mulf %807, %810 : vector<16x128xf32>
    %cst_174 = arith.constant dense<0.000000e+00> : vector<128xf32>
    %812 = vector.multi_reduction <add>, %811, %cst_174 [0] : vector<16x128xf32> to vector<128xf32>
    %813 = vector.shape_cast %812 : vector<128xf32> to vector<1x128xf32>
    %814 = vector.broadcast %5 : vector<16x1xf32> to vector<16x128xf32>
    %815 = arith.mulf %809, %814 : vector<16x128xf32>
    %cst_175 = arith.constant dense<0.000000e+00> : vector<128xf32>
    %816 = vector.multi_reduction <add>, %815, %cst_175 [0] : vector<16x128xf32> to vector<128xf32>
    %817 = vector.shape_cast %816 : vector<128xf32> to vector<1x128xf32>
    %818 = vector.broadcast %111 : vector<1x128xf32> to vector<16x128xf32>
    %819 = arith.mulf %818, %13 : vector<16x128xf32>
    %820 = arith.addf %50, %819 : vector<16x128xf32>
    %821 = vector.broadcast %356 : vector<1x128xf32> to vector<16x128xf32>
    %822 = arith.mulf %821, %10 : vector<16x128xf32>
    %823 = arith.addf %53, %822 : vector<16x128xf32>
    %824 = vector.broadcast %167 : vector<1x128xf32> to vector<16x128xf32>
    %825 = arith.mulf %824, %21 : vector<16x128xf32>
    %826 = arith.addf %820, %825 : vector<16x128xf32>
    %827 = vector.broadcast %363 : vector<1x128xf32> to vector<16x128xf32>
    %828 = arith.mulf %827, %18 : vector<16x128xf32>
    %829 = arith.addf %823, %828 : vector<16x128xf32>
    %830 = vector.broadcast %223 : vector<1x128xf32> to vector<16x128xf32>
    %831 = arith.mulf %830, %29 : vector<16x128xf32>
    %832 = arith.addf %826, %831 : vector<16x128xf32>
    %833 = vector.broadcast %370 : vector<1x128xf32> to vector<16x128xf32>
    %834 = arith.mulf %833, %26 : vector<16x128xf32>
    %835 = arith.addf %829, %834 : vector<16x128xf32>
    %836 = vector.broadcast %279 : vector<1x128xf32> to vector<16x128xf32>
    %837 = arith.mulf %836, %37 : vector<16x128xf32>
    %838 = arith.addf %832, %837 : vector<16x128xf32>
    %839 = vector.broadcast %377 : vector<1x128xf32> to vector<16x128xf32>
    %840 = arith.mulf %839, %34 : vector<16x128xf32>
    %841 = arith.addf %835, %840 : vector<16x128xf32>
    %842 = vector.broadcast %335 : vector<1x128xf32> to vector<16x128xf32>
    %843 = arith.mulf %842, %45 : vector<16x128xf32>
    %844 = arith.addf %838, %843 : vector<16x128xf32>
    %845 = vector.broadcast %384 : vector<1x128xf32> to vector<16x128xf32>
    %846 = arith.mulf %845, %42 : vector<16x128xf32>
    %847 = arith.addf %841, %846 : vector<16x128xf32>
    %848 = vector.broadcast %391 : vector<1x128xf32> to vector<16x128xf32>
    %849 = arith.mulf %848, %53 : vector<16x128xf32>
    %850 = arith.addf %844, %849 : vector<16x128xf32>
    %851 = vector.broadcast %391 : vector<1x128xf32> to vector<16x128xf32>
    %852 = arith.mulf %851, %50 : vector<16x128xf32>
    %853 = arith.addf %847, %852 : vector<16x128xf32>
    %854 = vector.broadcast %447 : vector<1x128xf32> to vector<16x128xf32>
    %855 = arith.mulf %854, %61 : vector<16x128xf32>
    %856 = arith.addf %850, %855 : vector<16x128xf32>
    %857 = vector.broadcast %398 : vector<1x128xf32> to vector<16x128xf32>
    %858 = arith.mulf %857, %58 : vector<16x128xf32>
    %859 = arith.addf %853, %858 : vector<16x128xf32>
    %860 = vector.broadcast %503 : vector<1x128xf32> to vector<16x128xf32>
    %861 = arith.mulf %860, %69 : vector<16x128xf32>
    %862 = arith.addf %856, %861 : vector<16x128xf32>
    %863 = vector.broadcast %405 : vector<1x128xf32> to vector<16x128xf32>
    %864 = arith.mulf %863, %66 : vector<16x128xf32>
    %865 = arith.addf %859, %864 : vector<16x128xf32>
    %cst_176 = arith.constant 0.000000e+00 : f32
    %866 = vector.broadcast %cst_176 : f32 to vector<16x128xf32>
    %867 = arith.maximumf %862, %866 : vector<16x128xf32>
    %cst_177 = arith.constant 0.000000e+00 : f32
    %868 = vector.broadcast %cst_177 : f32 to vector<16x128xf32>
    %869 = arith.maximumf %865, %868 : vector<16x128xf32>
    %870 = vector.broadcast %4 : vector<16x1xf32> to vector<16x128xf32>
    %871 = arith.mulf %867, %870 : vector<16x128xf32>
    %cst_178 = arith.constant dense<0.000000e+00> : vector<128xf32>
    %872 = vector.multi_reduction <add>, %871, %cst_178 [0] : vector<16x128xf32> to vector<128xf32>
    %873 = vector.shape_cast %872 : vector<128xf32> to vector<1x128xf32>
    %874 = vector.broadcast %5 : vector<16x1xf32> to vector<16x128xf32>
    %875 = arith.mulf %869, %874 : vector<16x128xf32>
    %cst_179 = arith.constant dense<0.000000e+00> : vector<128xf32>
    %876 = vector.multi_reduction <add>, %875, %cst_179 [0] : vector<16x128xf32> to vector<128xf32>
    %877 = vector.shape_cast %876 : vector<128xf32> to vector<1x128xf32>
    %878 = vector.broadcast %118 : vector<1x128xf32> to vector<16x128xf32>
    %879 = arith.mulf %878, %13 : vector<16x128xf32>
    %880 = arith.addf %58, %879 : vector<16x128xf32>
    %881 = vector.broadcast %412 : vector<1x128xf32> to vector<16x128xf32>
    %882 = arith.mulf %881, %10 : vector<16x128xf32>
    %883 = arith.addf %61, %882 : vector<16x128xf32>
    %884 = vector.broadcast %174 : vector<1x128xf32> to vector<16x128xf32>
    %885 = arith.mulf %884, %21 : vector<16x128xf32>
    %886 = arith.addf %880, %885 : vector<16x128xf32>
    %887 = vector.broadcast %419 : vector<1x128xf32> to vector<16x128xf32>
    %888 = arith.mulf %887, %18 : vector<16x128xf32>
    %889 = arith.addf %883, %888 : vector<16x128xf32>
    %890 = vector.broadcast %230 : vector<1x128xf32> to vector<16x128xf32>
    %891 = arith.mulf %890, %29 : vector<16x128xf32>
    %892 = arith.addf %886, %891 : vector<16x128xf32>
    %893 = vector.broadcast %426 : vector<1x128xf32> to vector<16x128xf32>
    %894 = arith.mulf %893, %26 : vector<16x128xf32>
    %895 = arith.addf %889, %894 : vector<16x128xf32>
    %896 = vector.broadcast %286 : vector<1x128xf32> to vector<16x128xf32>
    %897 = arith.mulf %896, %37 : vector<16x128xf32>
    %898 = arith.addf %892, %897 : vector<16x128xf32>
    %899 = vector.broadcast %433 : vector<1x128xf32> to vector<16x128xf32>
    %900 = arith.mulf %899, %34 : vector<16x128xf32>
    %901 = arith.addf %895, %900 : vector<16x128xf32>
    %902 = vector.broadcast %342 : vector<1x128xf32> to vector<16x128xf32>
    %903 = arith.mulf %902, %45 : vector<16x128xf32>
    %904 = arith.addf %898, %903 : vector<16x128xf32>
    %905 = vector.broadcast %440 : vector<1x128xf32> to vector<16x128xf32>
    %906 = arith.mulf %905, %42 : vector<16x128xf32>
    %907 = arith.addf %901, %906 : vector<16x128xf32>
    %908 = vector.broadcast %398 : vector<1x128xf32> to vector<16x128xf32>
    %909 = arith.mulf %908, %53 : vector<16x128xf32>
    %910 = arith.addf %904, %909 : vector<16x128xf32>
    %911 = vector.broadcast %447 : vector<1x128xf32> to vector<16x128xf32>
    %912 = arith.mulf %911, %50 : vector<16x128xf32>
    %913 = arith.addf %907, %912 : vector<16x128xf32>
    %914 = vector.broadcast %454 : vector<1x128xf32> to vector<16x128xf32>
    %915 = arith.mulf %914, %61 : vector<16x128xf32>
    %916 = arith.addf %910, %915 : vector<16x128xf32>
    %917 = vector.broadcast %454 : vector<1x128xf32> to vector<16x128xf32>
    %918 = arith.mulf %917, %58 : vector<16x128xf32>
    %919 = arith.addf %913, %918 : vector<16x128xf32>
    %920 = vector.broadcast %510 : vector<1x128xf32> to vector<16x128xf32>
    %921 = arith.mulf %920, %69 : vector<16x128xf32>
    %922 = arith.addf %916, %921 : vector<16x128xf32>
    %923 = vector.broadcast %461 : vector<1x128xf32> to vector<16x128xf32>
    %924 = arith.mulf %923, %66 : vector<16x128xf32>
    %925 = arith.addf %919, %924 : vector<16x128xf32>
    %cst_180 = arith.constant 0.000000e+00 : f32
    %926 = vector.broadcast %cst_180 : f32 to vector<16x128xf32>
    %927 = arith.maximumf %922, %926 : vector<16x128xf32>
    %cst_181 = arith.constant 0.000000e+00 : f32
    %928 = vector.broadcast %cst_181 : f32 to vector<16x128xf32>
    %929 = arith.maximumf %925, %928 : vector<16x128xf32>
    %930 = vector.broadcast %4 : vector<16x1xf32> to vector<16x128xf32>
    %931 = arith.mulf %927, %930 : vector<16x128xf32>
    %cst_182 = arith.constant dense<0.000000e+00> : vector<128xf32>
    %932 = vector.multi_reduction <add>, %931, %cst_182 [0] : vector<16x128xf32> to vector<128xf32>
    %933 = vector.shape_cast %932 : vector<128xf32> to vector<1x128xf32>
    %934 = vector.broadcast %5 : vector<16x1xf32> to vector<16x128xf32>
    %935 = arith.mulf %929, %934 : vector<16x128xf32>
    %cst_183 = arith.constant dense<0.000000e+00> : vector<128xf32>
    %936 = vector.multi_reduction <add>, %935, %cst_183 [0] : vector<16x128xf32> to vector<128xf32>
    %937 = vector.shape_cast %936 : vector<128xf32> to vector<1x128xf32>
    %938 = vector.broadcast %125 : vector<1x128xf32> to vector<16x128xf32>
    %939 = arith.mulf %938, %13 : vector<16x128xf32>
    %940 = arith.addf %66, %939 : vector<16x128xf32>
    %941 = vector.broadcast %468 : vector<1x128xf32> to vector<16x128xf32>
    %942 = arith.mulf %941, %10 : vector<16x128xf32>
    %943 = arith.addf %69, %942 : vector<16x128xf32>
    %944 = vector.broadcast %181 : vector<1x128xf32> to vector<16x128xf32>
    %945 = arith.mulf %944, %21 : vector<16x128xf32>
    %946 = arith.addf %940, %945 : vector<16x128xf32>
    %947 = vector.broadcast %475 : vector<1x128xf32> to vector<16x128xf32>
    %948 = arith.mulf %947, %18 : vector<16x128xf32>
    %949 = arith.addf %943, %948 : vector<16x128xf32>
    %950 = vector.broadcast %237 : vector<1x128xf32> to vector<16x128xf32>
    %951 = arith.mulf %950, %29 : vector<16x128xf32>
    %952 = arith.addf %946, %951 : vector<16x128xf32>
    %953 = vector.broadcast %482 : vector<1x128xf32> to vector<16x128xf32>
    %954 = arith.mulf %953, %26 : vector<16x128xf32>
    %955 = arith.addf %949, %954 : vector<16x128xf32>
    %956 = vector.broadcast %293 : vector<1x128xf32> to vector<16x128xf32>
    %957 = arith.mulf %956, %37 : vector<16x128xf32>
    %958 = arith.addf %952, %957 : vector<16x128xf32>
    %959 = vector.broadcast %489 : vector<1x128xf32> to vector<16x128xf32>
    %960 = arith.mulf %959, %34 : vector<16x128xf32>
    %961 = arith.addf %955, %960 : vector<16x128xf32>
    %962 = vector.broadcast %349 : vector<1x128xf32> to vector<16x128xf32>
    %963 = arith.mulf %962, %45 : vector<16x128xf32>
    %964 = arith.addf %958, %963 : vector<16x128xf32>
    %965 = vector.broadcast %496 : vector<1x128xf32> to vector<16x128xf32>
    %966 = arith.mulf %965, %42 : vector<16x128xf32>
    %967 = arith.addf %961, %966 : vector<16x128xf32>
    %968 = vector.broadcast %405 : vector<1x128xf32> to vector<16x128xf32>
    %969 = arith.mulf %968, %53 : vector<16x128xf32>
    %970 = arith.addf %964, %969 : vector<16x128xf32>
    %971 = vector.broadcast %503 : vector<1x128xf32> to vector<16x128xf32>
    %972 = arith.mulf %971, %50 : vector<16x128xf32>
    %973 = arith.addf %967, %972 : vector<16x128xf32>
    %974 = vector.broadcast %461 : vector<1x128xf32> to vector<16x128xf32>
    %975 = arith.mulf %974, %61 : vector<16x128xf32>
    %976 = arith.addf %970, %975 : vector<16x128xf32>
    %977 = vector.broadcast %510 : vector<1x128xf32> to vector<16x128xf32>
    %978 = arith.mulf %977, %58 : vector<16x128xf32>
    %979 = arith.addf %973, %978 : vector<16x128xf32>
    %980 = vector.broadcast %517 : vector<1x128xf32> to vector<16x128xf32>
    %981 = arith.mulf %980, %69 : vector<16x128xf32>
    %982 = arith.addf %976, %981 : vector<16x128xf32>
    %983 = vector.broadcast %517 : vector<1x128xf32> to vector<16x128xf32>
    %984 = arith.mulf %983, %66 : vector<16x128xf32>
    %985 = arith.addf %979, %984 : vector<16x128xf32>
    %cst_184 = arith.constant 0.000000e+00 : f32
    %986 = vector.broadcast %cst_184 : f32 to vector<16x128xf32>
    %987 = arith.maximumf %982, %986 : vector<16x128xf32>
    %cst_185 = arith.constant 0.000000e+00 : f32
    %988 = vector.broadcast %cst_185 : f32 to vector<16x128xf32>
    %989 = arith.maximumf %985, %988 : vector<16x128xf32>
    %990 = vector.broadcast %4 : vector<16x1xf32> to vector<16x128xf32>
    %991 = arith.mulf %987, %990 : vector<16x128xf32>
    %cst_186 = arith.constant dense<0.000000e+00> : vector<128xf32>
    %992 = vector.multi_reduction <add>, %991, %cst_186 [0] : vector<16x128xf32> to vector<128xf32>
    %993 = vector.shape_cast %992 : vector<128xf32> to vector<1x128xf32>
    %994 = vector.broadcast %5 : vector<16x1xf32> to vector<16x128xf32>
    %995 = arith.mulf %989, %994 : vector<16x128xf32>
    %cst_187 = arith.constant dense<0.000000e+00> : vector<128xf32>
    %996 = vector.multi_reduction <add>, %995, %cst_187 [0] : vector<16x128xf32> to vector<128xf32>
    %997 = vector.shape_cast %996 : vector<128xf32> to vector<1x128xf32>
    %998 = tpu.concatenate %573, %633, %693, %753, %813, %873, %933, %993 in 0 : vector<1x128xf32>, vector<1x128xf32>, vector<1x128xf32>, vector<1x128xf32>, vector<1x128xf32>, vector<1x128xf32>, vector<1x128xf32>, vector<1x128xf32> -> vector<8x128xf32>
    %999 = tpu.concatenate %577, %637, %697, %757, %817, %877, %937, %997 in 0 : vector<1x128xf32>, vector<1x128xf32>, vector<1x128xf32>, vector<1x128xf32>, vector<1x128xf32>, vector<1x128xf32>, vector<1x128xf32>, vector<1x128xf32> -> vector<8x128xf32>
    %cst_188 = arith.constant dense<0xFF800000> : vector<128xf32>
    %1000 = vector.multi_reduction <maximumf>, %998, %cst_188 [0] : vector<8x128xf32> to vector<128xf32>
    %1001 = vector.shape_cast %1000 : vector<128xf32> to vector<1x128xf32>
    %1002 = vector.broadcast %1001 : vector<1x128xf32> to vector<8x128xf32>
    %1003 = arith.subf %998, %1002 : vector<8x128xf32>
    %1004 = math.exp %1003 : vector<8x128xf32>
    %cst_189 = arith.constant dense<0.000000e+00> : vector<128xf32>
    %1005 = vector.multi_reduction <add>, %1004, %cst_189 [0] : vector<8x128xf32> to vector<128xf32>
    %1006 = vector.shape_cast %1005 : vector<128xf32> to vector<1x128xf32>
    %1007 = tpu.reciprocal %1006 {approx = true} : vector<1x128xf32> -> vector<1x128xf32>
    %1008 = vector.broadcast %1007 : vector<1x128xf32> to vector<8x128xf32>
    %1009 = arith.mulf %1004, %1008 : vector<8x128xf32>
    %c0_190 = arith.constant 0 : index
    %c0_191 = arith.constant 0 : index
    %1010 = vector.load %arg7[%c0_190, %c0_191] : memref<8x128xf32, #tpu.memory_space<vmem>>, vector<8x128xf32>
    tpu.vector_store %arg7[%c0_190, %c0_191], %1009 {strides = array<i32>} : memref<8x128xf32, #tpu.memory_space<vmem>>, vector<8x128xf32>,
    %cst_192 = arith.constant dense<0xFF800000> : vector<128xf32>
    %1011 = vector.multi_reduction <maximumf>, %999, %cst_192 [0] : vector<8x128xf32> to vector<128xf32>
    %1012 = vector.shape_cast %1011 : vector<128xf32> to vector<1x128xf32>
    %1013 = vector.broadcast %1012 : vector<1x128xf32> to vector<8x128xf32>
    %1014 = arith.subf %999, %1013 : vector<8x128xf32>
    %1015 = math.exp %1014 : vector<8x128xf32>
    %cst_193 = arith.constant dense<0.000000e+00> : vector<128xf32>
    %1016 = vector.multi_reduction <add>, %1015, %cst_193 [0] : vector<8x128xf32> to vector<128xf32>
    %1017 = vector.shape_cast %1016 : vector<128xf32> to vector<1x128xf32>
    %1018 = tpu.reciprocal %1017 {approx = true} : vector<1x128xf32> -> vector<1x128xf32>
    %1019 = vector.broadcast %1018 : vector<1x128xf32> to vector<8x128xf32>
    %1020 = arith.mulf %1015, %1019 : vector<8x128xf32>
    %c0_194 = arith.constant 0 : index
    %c0_195 = arith.constant 0 : index
    %1021 = vector.load %arg8[%c0_194, %c0_195] : memref<8x128xf32, #tpu.memory_space<vmem>>, vector<8x128xf32>
    tpu.vector_store %arg8[%c0_194, %c0_195], %1020 {strides = array<i32>} : memref<8x128xf32, #tpu.memory_space<vmem>>, vector<8x128xf32>,
    return
  }
  func.func @transform_0(%arg0: i32) -> (i32, i32, i32) {
    %c0_i32 = arith.constant 0 : i32
    %c0_i32_0 = arith.constant 0 : i32
    %c0_i32_1 = arith.constant 0 : i32
    return %c0_i32, %c0_i32_0, %arg0 : i32, i32, i32
  }
  func.func @transform_1(%arg0: i32) -> (i32, i32, i32) {
    %c0_i32 = arith.constant 0 : i32
    %c0_i32_0 = arith.constant 0 : i32
    %c0_i32_1 = arith.constant 0 : i32
    return %c0_i32, %c0_i32_0, %arg0 : i32, i32, i32
  }
  func.func @transform_2(%arg0: i32) -> (i32, i32) {
    %c0_i32 = arith.constant 0 : i32
    %c0_i32_0 = arith.constant 0 : i32
    %c0_i32_1 = arith.constant 0 : i32
    return %c0_i32, %c0_i32_0 : i32, i32
  }
  func.func @transform_3(%arg0: i32) -> (i32, i32) {
    %c0_i32 = arith.constant 0 : i32
    %c0_i32_0 = arith.constant 0 : i32
    %c0_i32_1 = arith.constant 0 : i32
    return %c0_i32, %c0_i32_0 : i32, i32
  }
  func.func @transform_4(%arg0: i32) -> (i32, i32) {
    %c0_i32 = arith.constant 0 : i32
    %c0_i32_0 = arith.constant 0 : i32
    %c0_i32_1 = arith.constant 0 : i32
    return %c0_i32, %c0_i32_0 : i32, i32
  }
  func.func @transform_5(%arg0: i32) -> (i32, i32) {
    %c0_i32 = arith.constant 0 : i32
    %c0_i32_0 = arith.constant 0 : i32
    %c0_i32_1 = arith.constant 0 : i32
    return %c0_i32, %c0_i32_0 : i32, i32
  }
  func.func @transform_6(%arg0: i32) -> (i32, i32) {
    %c0_i32 = arith.constant 0 : i32
    %c0_i32_0 = arith.constant 0 : i32
    return %c0_i32, %arg0 : i32, i32
  }
  func.func @transform_7(%arg0: i32) -> (i32, i32) {
    %c0_i32 = arith.constant 0 : i32
    %c0_i32_0 = arith.constant 0 : i32
    return %c0_i32, %arg0 : i32, i32
  }
}

</mosaic_0001>

<bundles_post_ra>
// kernel: anr_aie_forward.1
= control target key start
LH: loop header
LB: loop body
LE: loop exit
PB: predicated region body
PF: predicated region fallthrough
CT: control target
= control target key end

     0   :  { %vm101_vm0 = vcmask 261120   ;;  %vm2194_vm1 = vcmask 1040384   ;;  %vm2196_vm2 = vcmask 1041408   ;;  %vm2198_vm3 = vcmask 1042432   ;;  %s4814_s0 = inlined_call_operand.vmem [shape: f32[8,32,128], index: 0, kind: input, shape index: {}]   ;;  %s4815_s1 = inlined_call_operand.vmem [shape: f32[8,32,128], index: 1, kind: input, shape index: {}]   ;;  %s4816_s2 = inlined_call_operand.vmem [shape: f32[48,32], index: 2, kind: input, shape index: {}]   ;;  %s4817_s3 = inlined_call_operand.vmem [shape: f32[16,32], index: 3, kind: input, shape index: {}]   ;;  %s4818_s5 = inlined_call_operand.vmem [shape: f32[16,1], index: 5, kind: input, shape index: {}]   ;;  %s4819_s4 = inlined_call_operand.vmem [shape: f32[16,1], index: 4, kind: input, shape index: {}]   ;;  %s4820_s7 = inlined_call_operand.vmem [shape: f32[8,128], index: 7, kind: output, shape index: {1}]   ;;  %s4821_s6 = inlined_call_operand.vmem [shape: f32[8,128], index: 6, kind: output, shape index: {0}]  }
   0x1   :  { %v28_v0 = vld [vmem:[%s4814_s0 + $0x18] sm:$0xff]  ;;  %v27_v4 = vld [vmem:[%s4814_s0 + $0x10] sm:$0xff]  ;;  %v26_v8 = vld [vmem:[%s4814_s0 + $0x8] sm:$0xff]  ;;  %vm2200_vm4 = vcmask 1043456   ;;  %vm2202_vm5 = vcmask 1044480   ;;  %vm2204_vm6 = vcmask 1045504  }
   0x2   :  { %v2431_v1 = vld [vmem:[%s4815_s1 + $0x18] sm:$0xff]  ;;  %132 = vmatpush.msra.mxu0 %v28_v0  ;;  %v2448_v5 = vld [vmem:[%s4815_s1 + $0x10] sm:$0xff]  ;;  %v2466_v9 = vld [vmem:[%s4815_s1 + $0x8] sm:$0xff]  ;;  %vm2206_vm7 = vcmask 1046528  }
   0x3   :  { %v32_v2 = vld [vmem:[%s4814_s0 + $0x38] sm:$0xff]  ;;  %173 = vmatpush.msra.mxu1 %v2431_v1  ;;  %v31_v6 = vld [vmem:[%s4814_s0 + $0x30] sm:$0xff]  ;;  %v30_v10 = vld [vmem:[%s4814_s0 + $0x28] sm:$0xff] }
   0x4   :  { %v2440_v3 = vld [vmem:[%s4815_s1 + $0x38] sm:$0xff]  ;;  %2323 = vmatpush.msra.mxu2 %v32_v2  ;;  %v2457_v7 = vld [vmem:[%s4815_s1 + $0x30] sm:$0xff]  ;;  %133 = vmatpush.msra.mxu0 %v27_v4  ;;  %v2474_v11 = vld [vmem:[%s4815_s1 + $0x28] sm:$0xff] }
   0x5   :  { %231 = vmatpush.msra.mxu3 %v2440_v3  ;;  %174 = vmatpush.msra.mxu1 %v2448_v5  ;;  %v25_v12 = vld [vmem:[%s4814_s0] sm:$0xff]  ;;  %v2509_v18 = vld [vmem:[%s4816_s2 + $0x10] sm:$0xff]  ;;  %v2515_v19 = vld [vmem:[%s4815_s1 + $0x58] sm:$0xff] }
   0x6   :  { %2324 = vmatpush.msra.mxu2 %v31_v6  ;;  %v2483_v13 = vld [vmem:[%s4815_s1] sm:$0xff]  ;;  %134 = vmatpush.msra.mxu0 %v26_v8  ;;  %v44_v20 = vld [vmem:[%s4814_s0 + $0x98] sm:$0xff]  ;;  %v2536_v22 = vld [vmem:[%s4815_s1 + $0x50] sm:$0xff] }
   0x7   :  { %232 = vmatpush.msra.mxu3 %v2457_v7  ;;  %175 = vmatpush.msra.mxu1 %v2466_v9  ;;  %v29_v14 = vld [vmem:[%s4814_s0 + $0x20] sm:$0xff]  ;;  %v2527_v21 = vld [vmem:[%s4815_s1 + $0x78] sm:$0xff]  ;;  %v43_v23 = vld [vmem:[%s4814_s0 + $0x90] sm:$0xff] }
   0x8   :  { %v2492_v15 = vld [vmem:[%s4815_s1 + $0x20] sm:$0xff]  ;;  %2325 = vmatpush.msra.mxu2 %v30_v10  ;;  %135 = vmatpush.msra.mxu0 %v25_v12  ;;  %v2545_v24 = vld [vmem:[%s4815_s1 + $0x70] sm:$0xff]  ;;  %v2550_v25 = vld [vmem:[%s4815_s1 + $0x48] sm:$0xff] }
   0x9   :  { %233 = vmatpush.msra.mxu3 %v2474_v11  ;;  %v2498_v16 = vld [vmem:[%s4816_s2] sm:$0xff]  ;;  %176 = vmatpush.msra.mxu1 %v2483_v13  ;;  %v42_v26 = vld [vmem:[%s4814_s0 + $0x88] sm:$0xff]  ;;  %v2576_v30 = vld [vmem:[%s4816_s2 + $0x18] sm:$0xff] }
   0xa   :  { %v2503_v17 = vld [vmem:[%s4817_s3] sm:$0xff]  ;;  %2326 = vmatpush.msra.mxu2 %v29_v14  ;;  %2259 = vmatmul.msk.f32.vlgmr.msra.gmra.mxu0 %vm101_vm0, %v2498_v16  ;;  %v2560_v27 = vld [vmem:[%s4816_s2 + $0x8] sm:$0xff]  ;;  %v40_v32 = vld [vmem:[%s4814_s0 + $0x78] sm:$0xff] }
   0xb   :  { %234 = vmatpush.msra.mxu3 %v2492_v15  ;;  %2265 = vmatmul.msk.f32.vlgmr.msra.gmra.mxu1 %vm101_vm0, %v2503_v17  ;;  %v2565_v28 = vld [vmem:[%s4817_s3 + $0x8] sm:$0xff]  ;;  %v2582_v31 = vld [vmem:[%s4815_s1 + $0x40] sm:$0xff]  ;;  %v36_v33 = vld [vmem:[%s4814_s0 + $0x58] sm:$0xff] }
   0xc   :  { %2269 = vmatmul.msk.f32.vlgmr.msra.gmra.mxu2 %vm101_vm0, %v2509_v18  ;;  %2273 = vmatmul.msk.f32.vlgmr.msra.gmra.mxu3 %vm101_vm0, %v2503_v17  ;;  %v2571_v29 = vld [vmem:[%s4815_s1 + $0x68] sm:$0xff]  ;;  %v41_v34 = vld [vmem:[%s4814_s0 + $0x80] sm:$0xff]  ;;  %v39_v36 = vld [vmem:[%s4814_s0 + $0x70] sm:$0xff] }
   0xd   :  { %289 = vmatpush.msrb.mxu3 %v2515_v19  ;;  %370 = vmatpush.msrb.mxu2 %v44_v20  ;;  %4958 = vst [vmem:[#allocation2_spill] sm:$0xff] %v2571_v29  ;;  %v2605_v35 = vld [vmem:[%s4815_s1 + $0x60] sm:$0xff]  ;;  %v35_v37 = vld [vmem:[%s4814_s0 + $0x50] sm:$0xff]  ;;  %v56_v38 = vld [vmem:[%s4814_s0 + $0xf8] sm:$0xff]  ;;  %v2384_v20 = vmov 0  }
   0xe   :  { %196 = vmatpush.msrb.mxu1 %v32_v2  ;;  %347 = vmatpush.msrb.mxu0 %v2527_v21  ;;  %v38_v39 = vld [vmem:[%s4814_s0 + $0x68] sm:$0xff]  ;;  %v2627_v41 = vld [vmem:[%s4816_s2 + $0x20] sm:$0xff]  ;;  %v52_v44 = vld [vmem:[%s4814_s0 + $0xd8] sm:$0xff] }
   0xf   :  { %290 = vmatpush.msrb.mxu3 %v2536_v22  ;;  %371 = vmatpush.msrb.mxu2 %v43_v23  ;;  %v34_v40 = vld [vmem:[%s4814_s0 + $0x48] sm:$0xff]  ;;  %v37_v42 = vld [vmem:[%s4814_s0 + $0x60] sm:$0xff]  ;;  %v48_v45 = vld [vmem:[%s4814_s0 + $0xb8] sm:$0xff] }
  0x10   :  { %197 = vmatpush.msrb.mxu1 %v31_v6  ;;  %348 = vmatpush.msrb.mxu0 %v2545_v24  ;;  %v33_v43 = vld [vmem:[%s4814_s0 + $0x40] sm:$0xff]  ;;  %v55_v46 = vld [vmem:[%s4814_s0 + $0xf0] sm:$0xff]  ;;  %v2661_v49 = vld [vmem:[%s4816_s2 + $0x28] sm:$0xff] }
  0x11   :  { %291 = vmatpush.msrb.mxu3 %v2550_v25  ;;  %372 = vmatpush.msrb.mxu2 %v42_v26  ;;  %v51_v47 = vld [vmem:[%s4814_s0 + $0xd0] sm:$0xff]  ;;  %v50_v50 = vld [vmem:[%s4814_s0 + $0xc8] sm:$0xff]  ;;  %v2680_v52 = vld [vmem:[%s4815_s1 + $0x98] sm:$0xff] }
  0x12   :  { %198 = vmatpush.msrb.mxu1 %v30_v10  ;;  %349 = vmatpush.msrb.mxu0 %v2571_v29  ;;  %v47_v48 = vld [vmem:[%s4814_s0 + $0xb0] sm:$0xff]  ;;  %v54_v51 = vld [vmem:[%s4814_s0 + $0xe8] sm:$0xff]  ;;  %4959 = vst [vmem:[#allocation3_spill] sm:$0xff] %v2680_v52  ;;  %v49_v56 = vld [vmem:[%s4814_s0 + $0xc0] sm:$0xff] }
  0x13   :  { %2260 = vmatmul.msk.f32.gmra.mxu0 %vm101_vm0, %v2560_v27  ;;  %2266 = vmatmul.msk.f32.gmra.mxu1 %vm101_vm0, %v2565_v28  ;;  %v46_v53 = vld [vmem:[%s4814_s0 + $0xa8] sm:$0xff]  ;;  %v2688_v54 = vld [vmem:[%s4815_s1 + $0x90] sm:$0xff]  ;;  %v53_v57 = vld [vmem:[%s4814_s0 + $0xe0] sm:$0xff] }
  0x14   :  { %2270 = vmatmul.msk.f32.gmra.mxu2 %vm101_vm0, %v2576_v30  ;;  %2274 = vmatmul.msk.f32.gmra.mxu3 %vm101_vm0, %v2565_v28  ;;  %4960 = vst [vmem:[#allocation4_spill] sm:$0xff] %v2688_v54  ;;  %v2703_v55 = vld [vmem:[%s4815_s1 + $0x88] sm:$0xff]  ;;  %v2715_v58 = vld [vmem:[%s4815_s1 + $0x80] sm:$0xff]  ;;  %v2732_v60 = vld [vmem:[%s4815_s1 + $0xb8] sm:$0xff] }
  0x15   :  { %292 = vmatpush.msrb.mxu3 %v2582_v31  ;;  %199 = vmatpush.msrb.mxu1 %v29_v14  ;;  %v45_v59 = vld [vmem:[%s4814_s0 + $0xa0] sm:$0xff]  ;;  %4961 = vst [vmem:[#allocation5_spill] sm:$0xff] %v2732_v60  ;;  %v2745_v61 = vld [vmem:[%s4815_s1 + $0xb0] sm:$0xff]  ;;  %v2751_v62 = vld [vmem:[%s4815_s1 + $0xa8] sm:$0xff] }
  0x16   :  { %373 = vmatpush.msrb.mxu2 %v41_v34  ;;  %350 = vmatpush.msrb.mxu0 %v2605_v35  ;;  %4962 = vst [vmem:[#allocation6_spill] sm:$0xff] %v2745_v61  ;;  %v2758_v63 = vld [vmem:[%s4815_s1 + $0xa0] sm:$0xff]  ;;  %v2772_v0 = vld [vmem:[%s4815_s1 + $0xd8] sm:$0xff]  ;;  %v2785_v2 = vld [vmem:[%s4815_s1 + $0xd0] sm:$0xff] }
  0x17   :  { %312 = vmatpush.msra.mxu3 %v40_v32  ;;  %254 = vmatpush.msra.mxu1 %v36_v33  ;;  %4963 = vst [vmem:[#allocation7_spill] sm:$0xff] %v2772_v0  ;;  %v2791_v4 = vld [vmem:[%s4815_s1 + $0xc8] sm:$0xff]  ;;  %v2798_v6 = vld [vmem:[%s4815_s1 + $0xc0] sm:$0xff]  ;;  %v2812_v8 = vld [vmem:[%s4815_s1 + $0xf8] sm:$0xff] }
  0x18   :  { %544 = vmatpush.msra.mxu2 %v56_v38  ;;  %405 = vmatpush.msra.mxu0 %v2680_v52  ;;  %4964 = vst [vmem:[#allocation8_spill] sm:$0xff] %v2785_v2  ;;  %v2825_v10 = vld [vmem:[%s4815_s1 + $0xf0] sm:$0xff]  ;;  %v2831_v12 = vld [vmem:[%s4815_s1 + $0xe8] sm:$0xff]  ;;  %v2838_v14 = vld [vmem:[%s4815_s1 + $0xe0] sm:$0xff] }
  0x19   :  { %313 = vmatpush.msra.mxu3 %v39_v36  ;;  %255 = vmatpush.msra.mxu1 %v35_v37  ;;  %4965 = vst [vmem:[#allocation9_spill] sm:$0xff] %v2812_v8  ;;  %v100_v23 = vld [vmem:[%s4818_s5 + $0x8] sm:$0xff] }
  0x1a   :  { %545 = vmatpush.msra.mxu2 %v55_v46  ;;  %406 = vmatpush.msra.mxu0 %v2688_v54  ;;  %4966 = vst [vmem:[#allocation10_spill] sm:$0xff] %v2825_v10  ;;  %v98_v26 = vld [vmem:[%s4819_s4 + $0x8] sm:$0xff] }
  0x1b   :  { %314 = vmatpush.msra.mxu3 %v38_v39  ;;  %256 = vmatpush.msra.mxu1 %v34_v40 }
  0x1c   :  { %2261 = vmatmul.msk.f32.gmra.mxu0 %vm101_vm0, %v2509_v18  ;;  %2267 = vmatmul.msk.f32.vlgmr.msrb.gmra.mxu1 %vm101_vm0, %v2498_v16 }
  0x1d   :  { %2271 = vmatmul.msk.f32.gmra.mxu2 %vm101_vm0, %v2627_v41  ;;  %2281 = vmatmul.msk.f32.vlgmr.msrb.gmra.mxu3 %vm101_vm0, %v2503_v17 }
  0x1e   :  { %315 = vmatpush.msra.mxu3 %v37_v42  ;;  %257 = vmatpush.msra.mxu1 %v33_v43 }
  0x1f   :  { %546 = vmatpush.msra.mxu2 %v54_v51  ;;  %407 = vmatpush.msra.mxu0 %v2703_v55 }
  0x20   :  { %486 = vmatpush.msrb.mxu3 %v52_v44  ;;  %428 = vmatpush.msrb.mxu1 %v48_v45 }
  0x21   :  { %547 = vmatpush.msra.mxu2 %v53_v57  ;;  %408 = vmatpush.msra.mxu0 %v2715_v58 }
  0x22   :  { %487 = vmatpush.msrb.mxu3 %v51_v47  ;;  %429 = vmatpush.msrb.mxu1 %v47_v48 }
  0x23   :  { %2329 = vset.pattern.permute.xlu1 %v2384_v20  ;;  %2328 = vset.pattern.permute.xlu0 %v2384_v20 }
  0x24   :  { %2262 = vmatmul.msk.f32.gmra.mxu0 %vm101_vm0, %v2576_v30  ;;  %2268 = vmatmul.msk.f32.gmra.mxu1 %vm101_vm0, %v2560_v27 }
  0x25   :  { %2272 = vmatmul.msk.f32.gmra.mxu2 %vm101_vm0, %v2661_v49  ;;  %2282 = vmatmul.msk.f32.gmra.mxu3 %vm101_vm0, %v2565_v28 }
  0x26   :  { %488 = vmatpush.msrb.mxu3 %v50_v50  ;;  %430 = vmatpush.msrb.mxu1 %v46_v53 }
  0x28   :  { %489 = vmatpush.msrb.mxu3 %v49_v56  ;;  %431 = vmatpush.msrb.mxu1 %v45_v59 }
  0x2c   :  { %2275 = vmatmul.msk.f32.vlgmr.msra.gmra.mxu1 %vm101_vm0, %v2498_v16  ;;  %2263 = vmatmul.msk.f32.gmra.mxu0 %vm101_vm0, %v2627_v41 }
  0x2d   :  { %2283 = vmatmul.msk.f32.vlgmr.msra.gmra.mxu3 %vm101_vm0, %v2498_v16  ;;  %2291 = vmatmul.msk.f32.vlgmr.msrb.gmra.mxu2 %vm101_vm0, %v2498_v16 }
  0x34   :  { %2276 = vmatmul.msk.f32.gmra.mxu1 %vm101_vm0, %v2560_v27  ;;  %2264 = vmatmul.msk.f32.gmra.mxu0 %vm101_vm0, %v2661_v49 }
  0x35   :  { %2284 = vmatmul.msk.f32.gmra.mxu3 %vm101_vm0, %v2560_v27  ;;  %2292 = vmatmul.msk.f32.gmra.mxu2 %vm101_vm0, %v2560_v27 }
  0x3c   :  { %2277 = vmatmul.msk.f32.gmra.mxu1 %vm101_vm0, %v2509_v18  ;;  %2289 = vmatmul.msk.f32.vlgmr.msrb.gmra.mxu0 %vm101_vm0, %v2503_v17 }
  0x3d   :  { %2285 = vmatmul.msk.f32.gmra.mxu3 %vm101_vm0, %v2509_v18  ;;  %2293 = vmatmul.msk.f32.gmra.mxu2 %vm101_vm0, %v2509_v18 }
  0x3e   :  { %463 = vmatpush.msrb.mxu0 %v2732_v60 }
  0x40   :  { %464 = vmatpush.msrb.mxu0 %v2745_v61 }
  0x42   :  { %465 = vmatpush.msrb.mxu0 %v2751_v62 }
  0x44   :  { %2278 = vmatmul.msk.f32.gmra.mxu1 %vm101_vm0, %v2576_v30  ;;  %2290 = vmatmul.msk.f32.gmra.mxu0 %vm101_vm0, %v2565_v28 }
  0x45   :  { %2286 = vmatmul.msk.f32.gmra.mxu3 %vm101_vm0, %v2576_v30  ;;  %2294 = vmatmul.msk.f32.gmra.mxu2 %vm101_vm0, %v2576_v30 }
  0x46   :  { %466 = vmatpush.msrb.mxu0 %v2758_v63 }
  0x4c   :  { %2279 = vmatmul.msk.f32.gmra.mxu1 %vm101_vm0, %v2627_v41  ;;  %2297 = vmatmul.msk.f32.vlgmr.msra.gmra.mxu0 %vm101_vm0, %v2503_v17 }
  0x4d   :  { %2287 = vmatmul.msk.f32.gmra.mxu3 %vm101_vm0, %v2627_v41  ;;  %2295 = vmatmul.msk.f32.gmra.mxu2 %vm101_vm0, %v2627_v41 }
  0x4e   :  { %521 = vmatpush.msra.mxu0 %v2772_v0 }
  0x50   :  { %522 = vmatpush.msra.mxu0 %v2785_v2 }
  0x52   :  { %523 = vmatpush.msra.mxu0 %v2791_v4 }
  0x54   :  { %2280 = vmatmul.msk.f32.gmra.mxu1 %vm101_vm0, %v2661_v49  ;;  %2298 = vmatmul.msk.f32.gmra.mxu0 %vm101_vm0, %v2565_v28 }
  0x55   :  { %2288 = vmatmul.msk.f32.gmra.mxu3 %vm101_vm0, %v2661_v49  ;;  %2296 = vmatmul.msk.f32.gmra.mxu2 %vm101_vm0, %v2661_v49 }
  0x56   :  { %524 = vmatpush.msra.mxu0 %v2798_v6 }
  0x5c   :  { %2299 = vmatmul.msk.f32.vlgmr.msrb.gmra.mxu1 %vm101_vm0, %v2498_v16  ;;  %2305 = vmatmul.msk.f32.vlgmr.msrb.gmra.mxu0 %vm101_vm0, %v2503_v17 }
  0x5d   :  { %2307 = vmatmul.msk.f32.vlgmr.msrb.gmra.mxu3 %vm101_vm0, %v2498_v16  ;;  %2315 = vmatmul.msk.f32.vlgmr.msra.gmra.mxu2 %vm101_vm0, %v2498_v16  ;;  %v99_v16 = vld [vmem:[%s4818_s5] sm:$0xff] }
  0x5e   :  { %579 = vmatpush.msrb.mxu0 %v2812_v8  ;;  %1575 = vperm.xlu1 %2329, %v99_v16  }
  0x60   :  { %580 = vmatpush.msrb.mxu0 %v2825_v10 }
  0x62   :  { %581 = vmatpush.msrb.mxu0 %v2831_v12 }
  0x64   :  { %2300 = vmatmul.msk.f32.gmra.mxu1 %vm101_vm0, %v2560_v27  ;;  %2306 = vmatmul.msk.f32.gmra.mxu0 %vm101_vm0, %v2565_v28 }
  0x65   :  { %2308 = vmatmul.msk.f32.gmra.mxu3 %vm101_vm0, %v2560_v27  ;;  %2316 = vmatmul.msk.f32.gmra.mxu2 %vm101_vm0, %v2560_v27 }
  0x66   :  { %582 = vmatpush.msrb.mxu0 %v2838_v14  ;;  %1580 = vperm.xlu1 %2329, %v100_v23  }
  0x6c   :  { %2301 = vmatmul.msk.f32.gmra.mxu1 %vm101_vm0, %v2509_v18  ;;  %2313 = vmatmul.msk.f32.vlgmr.msra.gmra.mxu0 %vm101_vm0, %v2503_v17 }
  0x6d   :  { %2309 = vmatmul.msk.f32.gmra.mxu3 %vm101_vm0, %v2509_v18  ;;  %2317 = vmatmul.msk.f32.gmra.mxu2 %vm101_vm0, %v2509_v18  ;;  %v97_v18 = vld [vmem:[%s4819_s4] sm:$0xff] }
  0x6e   :  { %1556 = vperm.xlu0 %2328, %v97_v18  }
  0x74   :  { %2302 = vmatmul.msk.f32.gmra.mxu1 %vm101_vm0, %v2576_v30  ;;  %2314 = vmatmul.msk.f32.gmra.mxu0 %vm101_vm0, %v2565_v28 }
  0x75   :  { %2310 = vmatmul.msk.f32.gmra.mxu3 %vm101_vm0, %v2576_v30  ;;  %2318 = vmatmul.msk.f32.gmra.mxu2 %vm101_vm0, %v2576_v30 }
  0x76   :  { %1561 = vperm.xlu0 %2328, %v98_v26  }
  0x7c   :  { %2303 = vmatmul.msk.f32.gmra.mxu1 %vm101_vm0, %v2627_v41  ;;  %2321 = vmatmul.msk.f32.vlgmr.msrb.gmra.mxu0 %vm101_vm0, %v2503_v17 }
  0x7d   :  { %2311 = vmatmul.msk.f32.gmra.mxu3 %vm101_vm0, %v2627_v41  ;;  %2319 = vmatmul.msk.f32.gmra.mxu2 %vm101_vm0, %v2627_v41 }
  0x84   :  { %2304 = vmatmul.msk.f32.gmra.mxu1 %vm101_vm0, %v2661_v49  ;;  %2322 = vmatmul.msk.f32.gmra.mxu0 %vm101_vm0, %v2565_v28 }
  0x85   :  { %2312 = vmatmul.msk.f32.gmra.mxu3 %vm101_vm0, %v2661_v49  ;;  %2320 = vmatmul.msk.f32.gmra.mxu2 %vm101_vm0, %v2661_v49 }
  0x87   :  { %v137_v17 = vpop.f32.mrf.mxu0 }
  0x88   :  { %v590_v27 = vmul.f32 %v137_v17, %v2483_v13  ;;  %v604_v30 = vmul.f32 %v137_v17, %v2492_v15  ;;  %v618_v32 = vmul.f32 %v137_v17, %v2582_v31  ;;  %v632_v33 = vmul.f32 %v137_v17, %v2605_v35  ;;  %v2901_v39 = vpop.f32.mrf.mxu1 }
  0x89   :  { %v646_v36 = vmul.f32 %v137_v17, %v2715_v58  ;;  %v660_v28 = vmul.f32 %v137_v17, %v2758_v63  ;;  %v674_v37 = vmul.f32 %v137_v17, %v2798_v6  ;;  %v688_v38 = vmul.f32 %v137_v17, %v2838_v14  ;;  %4967 = vst [vmem:[#allocation11_spill] sm:$0xff] %v2901_v39 }
  0x8f   :  { %v207_v44 = vpop.f32.mrf.mxu2 }
  0x90   :  { %v140_v34 = vpop.f32.mrf.mxu0 }
  0x91   :  { %v591_v40 = vmul.f32 %v140_v34, %v2466_v9  ;;  %v605_v41 = vmul.f32 %v140_v34, %v2474_v11  ;;  %v619_v42 = vmul.f32 %v140_v34, %v2550_v25  ;;  %v633_v43 = vmul.f32 %v140_v34, %v2571_v29 }
  0x92   :  { %v647_v45 = vmul.f32 %v140_v34, %v2703_v55  ;;  %v661_v46 = vmul.f32 %v140_v34, %v2751_v62  ;;  %v675_v47 = vmul.f32 %v140_v34, %v2791_v4  ;;  %v689_v48 = vmul.f32 %v140_v34, %v2831_v12 }
  0x93   :  { %v594_v49 = vadd.f32 %v591_v40, %v590_v27  ;;  %v608_v50 = vadd.f32 %v605_v41, %v604_v30  ;;  %v622_v51 = vadd.f32 %v619_v42, %v618_v32  ;;  %v636_v53 = vadd.f32 %v633_v43, %v632_v33  ;;  %v2919_v33 = vpop.f32.mrf.mxu1 }
  0x94   :  { %v650_v56 = vadd.f32 %v647_v45, %v646_v36  ;;  %v664_v57 = vadd.f32 %v661_v46, %v660_v28  ;;  %v678_v59 = vadd.f32 %v675_v47, %v674_v37  ;;  %v692_v16 = vadd.f32 %v689_v48, %v688_v38  ;;  %4968 = vst [vmem:[#allocation12_spill] sm:$0xff] %v2919_v33 }
  0x95   :  { %v2924_v45 = vmul.f32 %v207_v44, %v2448_v5  ;;  %v2927_v46 = vmul.f32 %v207_v44, %v2457_v7  ;;  %v2930_v47 = vmul.f32 %v207_v44, %v2536_v22  ;;  %v2933_v48 = vmul.f32 %v207_v44, %v2545_v24 }
  0x97   :  { %v2921_v38 = vpop.f32.mrf.mxu2 }
  0x99   :  { %v143_v20 = vpop.f32.mrf.mxu0 }
  0x9a   :  { %v592_v18 = vmul.f32 %v143_v20, %v2448_v5  ;;  %v606_v23 = vmul.f32 %v143_v20, %v2457_v7  ;;  %v620_v26 = vmul.f32 %v143_v20, %v2536_v22  ;;  %v634_v17 = vmul.f32 %v143_v20, %v2545_v24 }
  0x9b   :  { %v648_v39 = vmul.f32 %v143_v20, %v2688_v54  ;;  %v662_v27 = vmul.f32 %v143_v20, %v2745_v61  ;;  %v676_v30 = vmul.f32 %v143_v20, %v2785_v2  ;;  %v690_v32 = vmul.f32 %v143_v20, %v2825_v10  ;;  %v201_v33 = vpop.f32.mrf.mxu1 }
  0x9c   :  { %v595_v34 = vadd.f32 %v594_v49, %v592_v18  ;;  %v609_v36 = vadd.f32 %v608_v50, %v606_v23  ;;  %v623_v28 = vadd.f32 %v622_v51, %v620_v26  ;;  %v637_v37 = vadd.f32 %v636_v53, %v634_v17 }
  0x9d   :  { %v651_v40 = vadd.f32 %v650_v56, %v648_v39  ;;  %v665_v41 = vadd.f32 %v664_v57, %v662_v27  ;;  %v679_v42 = vadd.f32 %v678_v59, %v676_v30  ;;  %v693_v43 = vadd.f32 %v692_v16, %v690_v32  ;;  %v2971_v32 = vpop.f32.mrf.mxu3 }
  0x9e   :  { %v2936_v49 = vmul.f32 %v207_v44, %v2688_v54  ;;  %v2939_v39 = vmul.f32 %v207_v44, %v2745_v61  ;;  %v2942_v50 = vmul.f32 %v207_v44, %v2785_v2  ;;  %v2945_v5 = vmul.f32 %v207_v44, %v2825_v10  ;;  %4975 = vst [vmem:[#allocation19_spill] sm:$0xff] %v2971_v32 }
  0x9f   :  { %v2949_v7 = vmul.f32 %v2921_v38, %v2431_v1  ;;  %v2953_v22 = vmul.f32 %v2921_v38, %v2440_v3  ;;  %v2957_v24 = vmul.f32 %v2921_v38, %v2515_v19  ;;  %v2961_v51 = vmul.f32 %v2921_v38, %v2527_v21 }
  0xa0   :  { %4969 = vst [vmem:[#allocation13_spill] sm:$0xff] %v2942_v50 }
  0xa1   :  { %4970 = vst [vmem:[#allocation14_spill] sm:$0xff] %v2945_v5  ;;  %v146_v53 = vpop.f32.mrf.mxu0 }
  0xa2   :  { %4971 = vst [vmem:[#allocation15_spill] sm:$0xff] %v2949_v7  ;;  %v593_v44 = vmul.f32 %v146_v53, %v2431_v1  ;;  %v607_v56 = vmul.f32 %v146_v53, %v2440_v3  ;;  %v621_v57 = vmul.f32 %v146_v53, %v2515_v19  ;;  %v635_v59 = vmul.f32 %v146_v53, %v2527_v21 }
  0xa3   :  { %4972 = vst [vmem:[#allocation16_spill] sm:$0xff] %v2953_v22  ;;  %v649_v16 = vmul.f32 %v146_v53, %v2680_v52  ;;  %v663_v20 = vmul.f32 %v146_v53, %v2732_v60  ;;  %v677_v18 = vmul.f32 %v146_v53, %v2772_v0  ;;  %v691_v23 = vmul.f32 %v146_v53, %v2812_v8 }
  0xa4   :  { %4973 = vst [vmem:[#allocation17_spill] sm:$0xff] %v2957_v24  ;;  %v596_v26 = vadd.f32 %v595_v34, %v593_v44  ;;  %v610_v17 = vadd.f32 %v609_v36, %v607_v56  ;;  %v624_v27 = vadd.f32 %v623_v28, %v621_v57  ;;  %v638_v30 = vadd.f32 %v637_v37, %v635_v59 }
  0xa5   :  { %4974 = vst [vmem:[#allocation18_spill] sm:$0xff] %v2961_v51  ;;  %v652_v1 = vadd.f32 %v651_v40, %v649_v16  ;;  %v666_v3 = vadd.f32 %v665_v41, %v663_v20  ;;  %v680_v2 = vadd.f32 %v679_v42, %v677_v18  ;;  %v694_v19 = vadd.f32 %v693_v43, %v691_v23 }
  0xa6   :  { %v597_v61 = vrot.slane %v596_v26, 4  ;;  %v611_v21 = vrot.slane %v610_v17, 4  ;;  %v625_v54 = vrot.slane %v624_v27, 4  ;;  %v639_v10 = vrot.slane %v638_v30, 4 }
  0xa7   :  { %v653_v51 = vrot.slane %v652_v1, 4  ;;  %v667_v5 = vrot.slane %v666_v3, 4  ;;  %v681_v24 = vrot.slane %v680_v2, 4  ;;  %v695_v22 = vrot.slane %v694_v19, 4 }
  0xa8   :  { %v598_v53 = vadd.f32 %v597_v61, %v596_v26  ;;  %v612_v34 = vadd.f32 %v611_v21, %v610_v17  ;;  %v626_v36 = vadd.f32 %v625_v54, %v624_v27  ;;  %v640_v28 = vadd.f32 %v639_v10, %v638_v30  ;;  %v2987_v26 = vpop.f32.mrf.mxu3 }
  0xa9   :  { %v654_v37 = vadd.f32 %v653_v51, %v652_v1  ;;  %v668_v44 = vadd.f32 %v667_v5, %v666_v3  ;;  %v682_v56 = vadd.f32 %v681_v24, %v680_v2  ;;  %v696_v40 = vadd.f32 %v695_v22, %v694_v19  ;;  %4976 = vst [vmem:[#allocation20_spill] sm:$0xff] %v2987_v26 }
  0xaa   :  { %v599_v41 = vrot.slane %v598_v53, 2  ;;  %v613_v42 = vrot.slane %v612_v34, 2  ;;  %v627_v43 = vrot.slane %v626_v36, 2  ;;  %v641_v57 = vrot.slane %v640_v28, 2 }
  0xab   :  { %v655_v59 = vrot.slane %v654_v37, 2  ;;  %v669_v16 = vrot.slane %v668_v44, 2  ;;  %v683_v20 = vrot.slane %v682_v56, 2  ;;  %v697_v18 = vrot.slane %v696_v40, 2 }
  0xac   :  { %v600_v23 = vadd.f32 %v599_v41, %v598_v53  ;;  %v614_v32 = vadd.f32 %v613_v42, %v612_v34  ;;  %v628_v7 = vadd.f32 %v627_v43, %v626_v36  ;;  %v642_v50 = vadd.f32 %v641_v57, %v640_v28 }
  0xad   :  { %v761_v54 = vmul.f32 %v2921_v38, %v2680_v52  ;;  %v775_v61 = vmul.f32 %v2921_v38, %v2732_v60  ;;  %v789_v2 = vmul.f32 %v2921_v38, %v2772_v0  ;;  %v656_v10 = vadd.f32 %v655_v59, %v654_v37  ;;  %v204_v37 = vpop.f32.mrf.mxu1 }
  0xae   :  { %v803_v5 = vmul.f32 %v2921_v38, %v2812_v8  ;;  %v2981_v22 = vadd.f32 %v669_v16, %v668_v44  ;;  %v2983_v24 = vadd.f32 %v683_v20, %v682_v56  ;;  %v2985_v51 = vadd.f32 %v697_v18, %v696_v40 }
  0xaf   :  { %v601_v17 = vrot.slane %v600_v23, 1  ;;  %v615_v27 = vrot.slane %v614_v32, 1  ;;  %v629_v30 = vrot.slane %v628_v7, 1  ;;  %v643_v1 = vrot.slane %v642_v50, 1 }
  0xb0   :  { %v702_v3 = vmul.f32 %v201_v33, %v2483_v13  ;;  %v716_v19 = vmul.f32 %v201_v33, %v2492_v15  ;;  %v730_v21 = vmul.f32 %v201_v33, %v2582_v31  ;;  %v657_v53 = vrot.slane %v656_v10, 1  ;;  %v3021_v52 = vpop.f32.mrf.mxu3 }
  0xb1   :  { %v744_v38 = vmul.f32 %v201_v33, %v2605_v35  ;;  %v758_v34 = vmul.f32 %v201_v33, %v2715_v58  ;;  %v772_v36 = vmul.f32 %v201_v33, %v2758_v63  ;;  %v786_v28 = vmul.f32 %v201_v33, %v2798_v6  ;;  %4977 = vst [vmem:[#allocation21_spill] sm:$0xff] %v3021_v52 }
  0xb2   :  { %v800_v44 = vmul.f32 %v201_v33, %v2838_v14  ;;  %v3000_v42 = vadd.f32 %v601_v17, %v600_v23  ;;  %v3002_v43 = vadd.f32 %v615_v27, %v614_v32  ;;  %v3004_v57 = vadd.f32 %v629_v30, %v628_v7 }
  0xb3   :  { %v3006_v59 = vadd.f32 %v643_v1, %v642_v50  ;;  %v3008_v16 = vadd.f32 %v657_v53, %v656_v10  ;;  %v703_v20 = vmul.f32 %v204_v37, %v2466_v9  ;;  %v717_v33 = vmul.f32 %v204_v37, %v2474_v11 }
  0xb4   :  { %v731_v18 = vmul.f32 %v204_v37, %v2550_v25  ;;  %v745_v40 = vmul.f32 %v204_v37, %v2571_v29  ;;  %v759_v41 = vmul.f32 %v204_v37, %v2703_v55  ;;  %v773_v23 = vmul.f32 %v204_v37, %v2751_v62 }
  0xb5   :  { %v787_v32 = vmul.f32 %v204_v37, %v2791_v4  ;;  %v706_v7 = vadd.f32 %v703_v20, %v702_v3  ;;  %v720_v17 = vadd.f32 %v717_v33, %v716_v19  ;;  %v801_v10 = vmul.f32 %v204_v37, %v2831_v12 }
  0xb6   :  { %v734_v50 = vadd.f32 %v731_v18, %v730_v21  ;;  %v748_v27 = vadd.f32 %v745_v40, %v744_v38  ;;  %v762_v30 = vadd.f32 %v759_v41, %v758_v34  ;;  %v776_v1 = vadd.f32 %v773_v23, %v772_v36  ;;  %v4978_v21 = vld [vmem:[#allocation13_spill] sm:$0xff]  ;;  %v4979_v34 = vld [vmem:[#allocation15_spill] sm:$0xff] }
  0xb7   :  { %v790_v53 = vadd.f32 %v787_v32, %v786_v28  ;;  %v707_v56 = vadd.f32 %v706_v7, %v2924_v45  ;;  %v721_v8 = vadd.f32 %v720_v17, %v2927_v46  ;;  %v804_v60 = vadd.f32 %v801_v10, %v800_v44  ;;  %v4980_v28 = vld [vmem:[#allocation16_spill] sm:$0xff]  ;;  %v4981_v45 = vld [vmem:[#allocation17_spill] sm:$0xff]  ;;  %v4982_v46 = vld [vmem:[#allocation14_spill] sm:$0xff] }
  0xb8   :  { %v735_v0 = vadd.f32 %v734_v50, %v2930_v47  ;;  %v749_v29 = vadd.f32 %v748_v27, %v2933_v48  ;;  %v763_v3 = vadd.f32 %v762_v30, %v2936_v49  ;;  %v777_v19 = vadd.f32 %v776_v1, %v2939_v39  ;;  %v4983_v47 = vld [vmem:[#allocation18_spill] sm:$0xff]  ;;  %v3032_v39 = vpop.f32.mrf.mxu2 }
  0xb9   :  { %v791_v38 = vadd.f32 %v790_v53, %v4978_v21  ;;  %v708_v36 = vadd.f32 %v707_v56, %v4979_v34  ;;  %v722_v37 = vadd.f32 %v721_v8, %v4980_v28  ;;  %v805_v41 = vadd.f32 %v804_v60, %v4982_v46  ;;  %4984 = vst [vmem:[#allocation13_spill] sm:$0xff] %v3032_v39 }
  0xba   :  { %v736_v40 = vadd.f32 %v735_v0, %v4981_v45  ;;  %v750_v44 = vadd.f32 %v749_v29, %v4983_v47  ;;  %v764_v20 = vadd.f32 %v763_v3, %v761_v54  ;;  %v778_v33 = vadd.f32 %v777_v19, %v775_v61 }
  0xbb   :  { %v792_v18 = vadd.f32 %v791_v38, %v789_v2  ;;  %v709_v48 = vrot.slane %v708_v36, 4  ;;  %v723_v23 = vrot.slane %v722_v37, 4  ;;  %v806_v32 = vadd.f32 %v805_v41, %v803_v5  ;;  %v3034_v41 = vpop.f32.mrf.mxu3 }
  0xbc   :  { %v737_v49 = vrot.slane %v736_v40, 4  ;;  %v751_v7 = vrot.slane %v750_v44, 4  ;;  %v765_v17 = vrot.slane %v764_v20, 4  ;;  %v779_v56 = vrot.slane %v778_v33, 4  ;;  %4985 = vst [vmem:[#allocation15_spill] sm:$0xff] %v3034_v41 }
  0xbd   :  { %v793_v50 = vrot.slane %v792_v18, 4  ;;  %v710_v8 = vadd.f32 %v709_v48, %v708_v36  ;;  %v724_v10 = vadd.f32 %v723_v23, %v722_v37  ;;  %v807_v27 = vrot.slane %v806_v32, 4 }
  0xbe   :  { %v738_v0 = vadd.f32 %v737_v49, %v736_v40  ;;  %v752_v60 = vadd.f32 %v751_v7, %v750_v44  ;;  %v766_v30 = vadd.f32 %v765_v17, %v764_v20  ;;  %v780_v29 = vadd.f32 %v779_v56, %v778_v33 }
  0xbf   :  { %v794_v54 = vadd.f32 %v793_v50, %v792_v18  ;;  %v711_v61 = vrot.slane %v710_v8, 2  ;;  %v725_v2 = vrot.slane %v724_v10, 2  ;;  %v808_v53 = vadd.f32 %v807_v27, %v806_v32 }
  0xc0   :  { %v739_v1 = vrot.slane %v738_v0, 2  ;;  %v753_v3 = vrot.slane %v752_v60, 2  ;;  %v767_v5 = vrot.slane %v766_v30, 2  ;;  %v781_v19 = vrot.slane %v780_v29, 2 }
  0xc1   :  { %v795_v21 = vrot.slane %v794_v54, 2  ;;  %v712_v38 = vadd.f32 %v711_v61, %v710_v8  ;;  %v726_v34 = vadd.f32 %v725_v2, %v724_v10  ;;  %v809_v45 = vrot.slane %v808_v53, 2 }
  0xc2   :  { %v740_v28 = vadd.f32 %v739_v1, %v738_v0  ;;  %v754_v36 = vadd.f32 %v753_v3, %v752_v60  ;;  %v768_v37 = vadd.f32 %v767_v5, %v766_v30  ;;  %v782_v40 = vadd.f32 %v781_v19, %v780_v29  ;;  %v259_v29 = vpop.f32.mrf.mxu1 }
  0xc3   :  { %v796_v46 = vadd.f32 %v795_v21, %v794_v54  ;;  %v713_v47 = vrot.slane %v712_v38, 1  ;;  %v727_v44 = vrot.slane %v726_v34, 1  ;;  %v810_v33 = vadd.f32 %v809_v45, %v808_v53 }
  0xc4   :  { %v741_v20 = vrot.slane %v740_v28, 1  ;;  %v755_v18 = vrot.slane %v754_v36, 1  ;;  %v769_v48 = vrot.slane %v768_v37, 1  ;;  %v783_v23 = vrot.slane %v782_v40, 1 }
  0xc5   :  { %v797_v49 = vrot.slane %v796_v46, 1  ;;  %v3037_v32 = vmax.f32 %v3002_v43, 0.0  ;;  %v714_v7 = vadd.f32 %v713_v47, %v712_v38  ;;  %v728_v17 = vadd.f32 %v727_v44, %v726_v34  ;;  %v3051_v43 = vpop.f32.mrf.mxu2  ;;  %v3091_v44 = vpop.f32.mrf.mxu0 }
  0xc6   :  { %v811_v56 = vrot.slane %v810_v33, 1  ;;  %v3040_v50 = vmax.f32 %v3000_v42, 0.0  ;;  %v4987_v8 = vrot.slane %v2981_v22, 1  ;;  %v4988_v0 = vrot.slane %v2983_v24, 1  ;;  %4990 = vst [vmem:[#allocation17_spill] sm:$0xff] %v3051_v43 }
  0xc7   :  { %4986 = vst [vmem:[#allocation16_spill] sm:$0xff] %v3037_v32  ;;  %v4989_v60 = vrot.slane %v2985_v51, 1  ;;  %v3054_v54 = vmax.f32 %v3004_v57, 0.0  ;;  %v3056_v42 = vmax.f32 %v728_v17, 0.0  ;;  %v742_v61 = vadd.f32 %v741_v20, %v740_v28  ;;  %v4999_v28 = vld [vmem:[#allocation11_spill] sm:$0xff] }
  0xc8   :  { %v672_v10 = vadd.f32 %v4987_v8, %v2981_v22  ;;  %v686_v27 = vadd.f32 %v4988_v0, %v2983_v24  ;;  %v756_v2 = vadd.f32 %v755_v18, %v754_v36  ;;  %v3059_v22 = vmax.f32 %v3006_v59, 0.0  ;;  %5006 = vst [vmem:[#allocation33_spill] sm:$0xff] %v3091_v44 }
  0xc9   :  { %v700_v30 = vadd.f32 %v4989_v60, %v2985_v51  ;;  %4991 = vst [vmem:[#allocation14_spill] sm:$0xff] %v3054_v54  ;;  %v770_v1 = vadd.f32 %v769_v48, %v768_v37  ;;  %v784_v53 = vadd.f32 %v783_v23, %v782_v40  ;;  %v798_v24 = vadd.f32 %v797_v49, %v796_v46  ;;  %v4994_v51 = vld [vmem:[#allocation12_spill] sm:$0xff]  ;;  %v5009_v49 = vld [vmem:[#allocation19_spill] sm:$0xff] }
  0xca   :  { %4992 = vst [vmem:[#allocation18_spill] sm:$0xff] %v3056_v42  ;;  %v3061_v3 = vmax.f32 %v714_v7, 0.0  ;;  %v812_v5 = vadd.f32 %v811_v56, %v810_v33  ;;  %v1593_v19 = vmul.f32 %v3037_v32, %v4994_v51  ;;  %v1601_v57 = vmul.f32 %v3056_v42, %v2987_v26  ;;  %v317_v33 = vpop.f32.mrf.mxu3 }
  0xcb   :  { %4993 = vst [vmem:[#allocation22_spill] sm:$0xff] %v3059_v22  ;;  %v3068_v21 = vmax.f32 %v3008_v16, 0.0  ;;  %v3070_v38 = vmax.f32 %v672_v10, 0.0  ;;  %v3072_v34 = vmax.f32 %v686_v27, 0.0  ;;  %v3074_v59 = vmax.f32 %v700_v30, 0.0 }
  0xcc   :  { %v3078_v45 = vmul.f32 %v3037_v32, %v4999_v28  ;;  %v3080_v36 = vmax.f32 %v742_v61, 0.0  ;;  %v3082_v37 = vmax.f32 %v756_v2, 0.0  ;;  %v1595_v40 = vadd.f32 %v1593_v19, %v3051_v43 }
  0xcd   :  { %4995 = vst [vmem:[#allocation23_spill] sm:$0xff] %v3068_v21  ;;  %v3085_v46 = vmax.f32 %v770_v1, 0.0  ;;  %v3087_v16 = vmax.f32 %v784_v53, 0.0  ;;  %v3089_v47 = vmax.f32 %v798_v24, 0.0  ;;  %v1486_v20 = vmul.f32 %v3040_v50, %v4999_v28  ;;  %v375_v24 = vpop.f32.mrf.mxu2 }
  0xce   :  { %4996 = vst [vmem:[#allocation24_spill] sm:$0xff] %v3070_v38  ;;  %v3095_v18 = vmax.f32 %v812_v5, 0.0  ;;  %v3097_v48 = vadd.f32 %v1601_v57, %v1595_v40  ;;  %v1490_v23 = vmul.f32 %v3040_v50, %v3091_v44  ;;  %v1494_v7 = vmul.f32 %v3061_v3, %v5009_v49  ;;  %v262_v5 = vpop.f32.mrf.mxu1 }
  0xcf   :  { %4997 = vst [vmem:[#allocation25_spill] sm:$0xff] %v3072_v34  ;;  %v3105_v17 = vmul.f32 %v3037_v32, %v3051_v43  ;;  %v3109_v56 = vmul.f32 %v3056_v42, %v3051_v43  ;;  %v1488_v8 = vadd.f32 %v1486_v20, %v3091_v44  ;;  %v1596_v10 = vmul.f32 %v3061_v3, %v3091_v44  ;;  %v5032_v44 = vld [vmem:[#allocation9_spill] sm:$0xff] }
  0xd0   :  { %4998 = vst [vmem:[#allocation26_spill] sm:$0xff] %v3074_v59  ;;  %v814_v0 = vmul.f32 %v259_v29, %v2483_v13  ;;  %v828_v27 = vmul.f32 %v259_v29, %v2492_v15  ;;  %v842_v60 = vmul.f32 %v259_v29, %v2582_v31  ;;  %v3118_v30 = vmul.f32 %v259_v29, %v2605_v35 }
  0xd1   :  { %5000 = vst [vmem:[#allocation27_spill] sm:$0xff] %v3078_v45  ;;  %v870_v61 = vmul.f32 %v259_v29, %v2715_v58  ;;  %v884_v2 = vmul.f32 %v259_v29, %v2758_v63  ;;  %v898_v1 = vmul.f32 %v259_v29, %v2798_v6  ;;  %v3123_v53 = vadd.f32 %v1494_v7, %v1488_v8 }
  0xd2   :  { %5001 = vst [vmem:[#allocation28_spill] sm:$0xff] %v3080_v36  ;;  %v912_v19 = vmul.f32 %v259_v29, %v2838_v14  ;;  %v3127_v57 = vadd.f32 %v1490_v23, %v4999_v28  ;;  %v3130_v40 = vmul.f32 %v317_v33, %v2483_v13  ;;  %v3133_v20 = vmul.f32 %v317_v33, %v2492_v15 }
  0xd3   :  { %5002 = vst [vmem:[#allocation29_spill] sm:$0xff] %v3082_v37  ;;  %v3142_v7 = vmul.f32 %v317_v33, %v2605_v35  ;;  %v982_v29 = vmul.f32 %v317_v33, %v2715_v58  ;;  %v996_v23 = vmul.f32 %v317_v33, %v2758_v63  ;;  %v1010_v8 = vmul.f32 %v317_v33, %v2798_v6 }
  0xd4   :  { %5003 = vst [vmem:[#allocation30_spill] sm:$0xff] %v3085_v46  ;;  %v1024_v59 = vmul.f32 %v317_v33, %v2838_v14  ;;  %v3150_v34 = vmul.f32 %v375_v24, %v2483_v13  ;;  %v913_v38 = vmul.f32 %v262_v5, %v2831_v12  ;;  %v815_v41 = vmul.f32 %v262_v5, %v2466_v9  ;;  %v320_v46 = vpop.f32.mrf.mxu3 }
  0xd5   :  { %5004 = vst [vmem:[#allocation31_spill] sm:$0xff] %v3087_v16  ;;  %v899_v16 = vmul.f32 %v262_v5, %v2791_v4  ;;  %v829_v45 = vmul.f32 %v262_v5, %v2474_v11  ;;  %v1052_v21 = vmul.f32 %v375_v24, %v2492_v15  ;;  %v3170_v9 = vmul.f32 %v375_v24, %v2582_v31 }
  0xd6   :  { %5005 = vst [vmem:[#allocation32_spill] sm:$0xff] %v3089_v47  ;;  %v871_v47 = vmul.f32 %v262_v5, %v2703_v55  ;;  %v3164_v13 = vadd.f32 %v913_v38, %v912_v19  ;;  %v3173_v11 = vmul.f32 %v375_v24, %v2605_v35  ;;  %v1094_v38 = vmul.f32 %v375_v24, %v2715_v58  ;;  %v5016_v19 = vld [vmem:[#allocation2_spill] sm:$0xff] }
  0xd7   :  { %5007 = vst [vmem:[#allocation34_spill] sm:$0xff] %v3095_v18  ;;  %v3139_v18 = vmul.f32 %v317_v33, %v2582_v31  ;;  %v1136_v15 = vmul.f32 %v375_v24, %v2838_v14  ;;  %v3184_v31 = vadd.f32 %v815_v41, %v814_v0  ;;  %v857_v35 = vmul.f32 %v262_v5, %v5016_v19  ;;  %v3206_v0 = vld [vmem:[%s4815_s1 + $0x8] sm:$0xff] }
  0xd8   :  { %5008 = vst [vmem:[#allocation35_spill] sm:$0xff] %v3097_v48  ;;  %v3136_v48 = vadd.f32 %v1596_v10, %v5009_v49  ;;  %v885_v10 = vmul.f32 %v262_v5, %v2751_v62  ;;  %v3158_v43 = vadd.f32 %v871_v47, %v870_v61  ;;  %v3175_v47 = vpop.f32.mrf.mxu0  ;;  %v1108_v61 = vmul.f32 %v375_v24, %v2758_v63 }
  0xd9   :  { %5010 = vst [vmem:[#allocation36_spill] sm:$0xff] %v3105_v17  ;;  %v1487_v17 = vmul.f32 %v3040_v50, %v4994_v51  ;;  %v3188_v37 = vadd.f32 %v829_v45, %v828_v27  ;;  %v1491_v58 = vmul.f32 %v3040_v50, %v3175_v47  ;;  %v997_v14 = vmul.f32 %v320_v46, %v2751_v62  ;;  %v3212_v27 = vld [vmem:[%s4815_s1 + $0x28] sm:$0xff] }
  0xda   :  { %5011 = vst [vmem:[#allocation37_spill] sm:$0xff] %v3109_v56  ;;  %v3160_v33 = vadd.f32 %v885_v10, %v884_v2  ;;  %v3162_v56 = vadd.f32 %v899_v16, %v898_v1  ;;  %v1495_v16 = vmul.f32 %v3061_v3, %v2987_v26  ;;  %v1122_v2 = vmul.f32 %v375_v24, %v2798_v6  ;;  %v378_v6 = vpop.f32.mrf.mxu2 }
  0xdb   :  { %5012 = vst [vmem:[#allocation38_spill] sm:$0xff] %v3123_v53  ;;  %v843_v53 = vmul.f32 %v262_v5, %v2550_v25  ;;  %v1489_v1 = vadd.f32 %v1487_v17, %v3175_v47  ;;  %v983_v10 = vmul.f32 %v320_v46, %v2703_v55  ;;  %v1011_v41 = vmul.f32 %v320_v46, %v2791_v4 }
  0xdc   :  { %5013 = vst [vmem:[#allocation39_spill] sm:$0xff] %v3127_v57  ;;  %v1025_v17 = vmul.f32 %v320_v46, %v2831_v12  ;;  %v1597_v45 = vmul.f32 %v3061_v3, %v3175_v47  ;;  %v927_v50 = vmul.f32 %v3206_v0, %v320_v46  ;;  %v3216_v24 = vadd.f32 %v997_v14, %v996_v23  ;;  %v265_v14 = vpop.f32.mrf.mxu1 }
  0xdd   :  { %5014 = vst [vmem:[#allocation40_spill] sm:$0xff] %v3136_v48  ;;  %v3190_v22 = vadd.f32 %v843_v53, %v842_v60  ;;  %v3194_v63 = vadd.f32 %v1495_v16, %v1489_v1  ;;  %v3196_v52 = vadd.f32 %v983_v10, %v982_v29  ;;  %v941_v60 = vmul.f32 %v3212_v27, %v320_v46 }
  0xde   :  { %5015 = vst [vmem:[#allocation41_spill] sm:$0xff] %v3175_v47  ;;  %v955_v53 = vmul.f32 %v320_v46, %v2550_v25  ;;  %v3218_v5 = vadd.f32 %v1011_v41, %v1010_v8  ;;  %v1028_v3 = vadd.f32 %v1025_v17, %v1024_v59  ;;  %v1095_v29 = vmul.f32 %v378_v6, %v2703_v55 }
  0xdf   :  { %5017 = vst [vmem:[#allocation2_spill] sm:$0xff] %v3194_v63  ;;  %v860_v16 = vadd.f32 %v857_v35, %v3118_v30  ;;  %v969_v1 = vmul.f32 %v320_v46, %v5016_v19  ;;  %v1039_v10 = vmul.f32 %v3206_v0, %v378_v6  ;;  %v1053_v63 = vmul.f32 %v3212_v27, %v378_v6 }
  0xe0   :  { %5018 = vst [vmem:[#allocation42_spill] sm:$0xff] %v3206_v0  ;;  %v3225_v47 = vadd.f32 %v1095_v29, %v1094_v38  ;;  %v1109_v49 = vmul.f32 %v378_v6, %v2751_v62  ;;  %v1123_v23 = vmul.f32 %v378_v6, %v2791_v4  ;;  %v1137_v8 = vmul.f32 %v378_v6, %v2831_v12 }
  0xe1   :  { %5019 = vst [vmem:[#allocation43_spill] sm:$0xff] %v3212_v27  ;;  %v3231_v59 = vadd.f32 %v1491_v58, %v4994_v51  ;;  %v3234_v55 = vadd.f32 %v1597_v45, %v2987_v26  ;;  %v930_v46 = vadd.f32 %v927_v50, %v3130_v40  ;;  %v944_v30 = vadd.f32 %v941_v60, %v3133_v20  ;;  %v323_v45 = vpop.f32.mrf.mxu3  ;;  %v2341_v20 = vld [vmem:[%s4815_s1 + $0x30] sm:$0xff] }
  0xe2   :  { %v958_v38 = vadd.f32 %v955_v53, %v3139_v18  ;;  %v3239_v35 = vadd.f32 %v1109_v49, %v1108_v61  ;;  %v3241_v62 = vadd.f32 %v1123_v23, %v1122_v2  ;;  %v1140_v4 = vadd.f32 %v1137_v8, %v1136_v15  ;;  %v2340_v18 = vld [vmem:[%s4815_s1 + $0x10] sm:$0xff]  ;;  %v5022_v61 = vld [vmem:[#allocation10_spill] sm:$0xff] }
  0xe3   :  { %5020 = vst [vmem:[#allocation44_spill] sm:$0xff] %v3231_v59  ;;  %v972_v12 = vadd.f32 %v969_v1, %v3142_v7  ;;  %v3245_v41 = vadd.f32 %v1039_v10, %v3150_v34  ;;  %v1067_v58 = vmul.f32 %v378_v6, %v2550_v25  ;;  %v1081_v17 = vmul.f32 %v378_v6, %v5016_v19  ;;  %v3261_v25 = vld [vmem:[%s4815_s1 + $0x50] sm:$0xff]  ;;  %v5026_v6 = vld [vmem:[#allocation6_spill] sm:$0xff]  ;;  %v3289_v59 = vpop.f32.mrf.mxu2 }
  0xe4   :  { %5021 = vst [vmem:[#allocation45_spill] sm:$0xff] %v3234_v55  ;;  %v3249_v40 = vadd.f32 %v1053_v63, %v1052_v21  ;;  %v816_v49 = vmul.f32 %v2340_v18, %v265_v14  ;;  %v830_v7 = vmul.f32 %v2341_v20, %v265_v14  ;;  %v914_v34 = vmul.f32 %v265_v14, %v5022_v61  ;;  %v3267_v2 = vld [vmem:[%s4815_s1 + $0x70] sm:$0xff] }
  0xe5   :  { %5023 = vst [vmem:[#allocation10_spill] sm:$0xff] %v3261_v25  ;;  %v844_v21 = vmul.f32 %v3261_v25, %v265_v14  ;;  %v858_v15 = vmul.f32 %v3267_v2, %v265_v14  ;;  %v5025_v19 = vld [vmem:[#allocation4_spill] sm:$0xff]  ;;  %v886_v50 = vmul.f32 %v265_v14, %v5026_v6  ;;  %v928_v1 = vmul.f32 %v2340_v18, %v323_v45 }
  0xe6   :  { %5024 = vst [vmem:[#allocation46_spill] sm:$0xff] %v3267_v2  ;;  %v872_v63 = vmul.f32 %v265_v14, %v5025_v19  ;;  %v5027_v60 = vld [vmem:[#allocation8_spill] sm:$0xff]  ;;  %v917_v29 = vadd.f32 %v3164_v13, %v914_v34  ;;  %v942_v10 = vmul.f32 %v2341_v20, %v323_v45  ;;  %v3275_v23 = vadd.f32 %v1067_v58, %v3170_v9 }
  0xe7   :  { %v900_v53 = vmul.f32 %v265_v14, %v5027_v60  ;;  %v956_v8 = vmul.f32 %v3261_v25, %v323_v45  ;;  %v970_v27 = vmul.f32 %v3267_v2, %v323_v45  ;;  %v984_v0 = vmul.f32 %v323_v45, %v5025_v19 }
  0xe8   :  { %v3281_v26 = vadd.f32 %v1081_v17, %v3173_v11  ;;  %v819_v51 = vadd.f32 %v3184_v31, %v816_v49  ;;  %v833_v14 = vadd.f32 %v3188_v37, %v830_v7  ;;  %v1026_v13 = vmul.f32 %v323_v45, %v5022_v61  ;;  %v268_v37 = vpop.f32.mrf.mxu1 }
  0xe9   :  { %v847_v34 = vadd.f32 %v3190_v22, %v844_v21  ;;  %v861_v55 = vadd.f32 %v860_v16, %v858_v15  ;;  %v875_v9 = vadd.f32 %v3158_v43, %v872_v63  ;;  %v889_v58 = vadd.f32 %v3160_v33, %v886_v50 }
  0xea   :  { %v903_v19 = vadd.f32 %v3162_v56, %v900_v53  ;;  %v3292_v48 = vadd.f32 %v930_v46, %v928_v1  ;;  %v3294_v11 = vadd.f32 %v944_v30, %v942_v10  ;;  %v3296_v31 = vadd.f32 %v1028_v3, %v1026_v13  ;;  %v3332_v30 = vld [vmem:[%s4815_s1 + $0x58] sm:$0xff]  ;;  %v5031_v13 = vld [vmem:[#allocation7_spill] sm:$0xff] }
  0xeb   :  { %v3298_v17 = vadd.f32 %v958_v38, %v956_v8  ;;  %v3300_v49 = vadd.f32 %v972_v12, %v970_v27  ;;  %v3303_v22 = vadd.f32 %v3196_v52, %v984_v0  ;;  %v998_v43 = vmul.f32 %v323_v45, %v5026_v6  ;;  %v3320_v27 = vld [vmem:[%s4815_s1 + $0x18] sm:$0xff] }
  0xec   :  { %v3307_v33 = vmul.f32 %v323_v45, %v5027_v60  ;;  %v3310_v56 = vmul.f32 %v2340_v18, %v3289_v59  ;;  %v3313_v16 = vmul.f32 %v2341_v20, %v3289_v59  ;;  %v1138_v3 = vmul.f32 %v3289_v59, %v5022_v61  ;;  %v3326_v0 = vld [vmem:[%s4815_s1 + $0x38] sm:$0xff]  ;;  %v5029_v61 = vld [vmem:[#allocation3_spill] sm:$0xff] }
  0xed   :  { %v817_v52 = vmul.f32 %v3320_v27, %v268_v37  ;;  %v831_v46 = vmul.f32 %v3326_v0, %v268_v37  ;;  %v845_v38 = vmul.f32 %v3332_v30, %v268_v37  ;;  %v3338_v12 = vld [vmem:[%s4815_s1 + $0x78] sm:$0xff]  ;;  %v1068_v18 = vmul.f32 %v3261_v25, %v3289_v59 }
  0xee   :  { %v859_v45 = vmul.f32 %v3338_v12, %v268_v37  ;;  %v1082_v20 = vmul.f32 %v3267_v2, %v3289_v59  ;;  %v3345_v7 = vadd.f32 %v1140_v4, %v1138_v3  ;;  %v873_v21 = vmul.f32 %v268_v37, %v5029_v61  ;;  %v5030_v10 = vld [vmem:[#allocation5_spill] sm:$0xff] }
  0xef   :  { %v820_v15 = vadd.f32 %v819_v51, %v817_v52  ;;  %v834_v63 = vadd.f32 %v833_v14, %v831_v46  ;;  %v848_v50 = vadd.f32 %v847_v34, %v845_v38  ;;  %v887_v8 = vmul.f32 %v268_v37, %v5030_v10 }
  0xf0   :  { %5028 = vst [vmem:[#allocation4_spill] sm:$0xff] %v3345_v7  ;;  %v862_v53 = vadd.f32 %v861_v55, %v859_v45  ;;  %v876_v1 = vadd.f32 %v875_v9, %v873_v21  ;;  %v901_v57 = vmul.f32 %v268_v37, %v5031_v13  ;;  %v915_v28 = vmul.f32 %v268_v37, %v5032_v44 }
  0xf1   :  { %v821_v36 = vrot.slane %v820_v15, 4  ;;  %v835_v25 = vrot.slane %v834_v63, 4  ;;  %v849_v42 = vrot.slane %v848_v50, 4  ;;  %v890_v4 = vadd.f32 %v889_v58, %v887_v8 }
  0xf2   :  { %v863_v54 = vrot.slane %v862_v53, 4  ;;  %v877_v2 = vrot.slane %v876_v1, 4  ;;  %v904_v3 = vadd.f32 %v903_v19, %v901_v57  ;;  %v918_v32 = vadd.f32 %v917_v29, %v915_v28 }
  0xf3   :  { %v822_v61 = vadd.f32 %v821_v36, %v820_v15  ;;  %v836_v51 = vadd.f32 %v835_v25, %v834_v63  ;;  %v850_v14 = vadd.f32 %v849_v42, %v848_v50  ;;  %v891_v9 = vrot.slane %v890_v4, 4 }
  0xf4   :  { %v864_v34 = vadd.f32 %v863_v54, %v862_v53  ;;  %v878_v55 = vadd.f32 %v877_v2, %v876_v1  ;;  %v905_v52 = vrot.slane %v904_v3, 4  ;;  %v919_v46 = vrot.slane %v918_v32, 4  ;;  %v3355_v54 = vld [vmem:[%s4815_s1 + $0x90] sm:$0xff] }
  0xf5   :  { %v823_v38 = vrot.slane %v822_v61, 2  ;;  %v837_v45 = vrot.slane %v836_v51, 2  ;;  %v851_v21 = vrot.slane %v850_v14, 2  ;;  %v892_v10 = vadd.f32 %v891_v9, %v890_v4 }
  0xf6   :  { %v865_v44 = vrot.slane %v864_v34, 2  ;;  %v879_v37 = vrot.slane %v878_v55, 2  ;;  %v906_v13 = vadd.f32 %v905_v52, %v904_v3  ;;  %v920_v39 = vadd.f32 %v919_v46, %v918_v32 }
  0xf7   :  { %v824_v7 = vadd.f32 %v823_v38, %v822_v61  ;;  %v838_v58 = vadd.f32 %v837_v45, %v836_v51  ;;  %v852_v57 = vadd.f32 %v851_v21, %v850_v14  ;;  %v1001_v36 = vadd.f32 %v3216_v24, %v998_v43  ;;  %v3420_v14 = vld [vmem:[%s4815_s1 + $0xb8] sm:$0xff] }
  0xf8   :  { %v866_v28 = vadd.f32 %v865_v44, %v864_v34  ;;  %v1096_v42 = vmul.f32 %v3355_v54, %v3289_v59  ;;  %v893_v25 = vrot.slane %v892_v10, 2  ;;  %v907_v2 = vrot.slane %v906_v13, 2  ;;  %v3431_v21 = vld [vmem:[%s4815_s1 + $0xd8] sm:$0xff] }
  0xf9   :  { %v1110_v29 = vmul.f32 %v3289_v59, %v5026_v6  ;;  %v1124_v32 = vmul.f32 %v3289_v59, %v5027_v60  ;;  %v3363_v19 = vadd.f32 %v879_v37, %v878_v55  ;;  %v921_v15 = vrot.slane %v920_v39, 2 }
  0xfa   :  { %v825_v24 = vrot.slane %v824_v7, 1  ;;  %v839_v43 = vrot.slane %v838_v58, 1  ;;  %v853_v63 = vrot.slane %v852_v57, 1  ;;  %v867_v50 = vrot.slane %v866_v28, 1 }
  0xfb   :  { %v1015_v53 = vadd.f32 %v3218_v5, %v3307_v33  ;;  %v3369_v1 = vadd.f32 %v3245_v41, %v3310_v56  ;;  %v3373_v6 = vadd.f32 %v3249_v40, %v3313_v16  ;;  %v3376_v59 = vadd.f32 %v3275_v23, %v1068_v18  ;;  %v326_v33 = vpop.f32.mrf.mxu3 }
  0xfc   :  { %v3379_v60 = vadd.f32 %v3281_v26, %v1082_v20  ;;  %v3382_v8 = vadd.f32 %v3225_v47, %v1096_v42  ;;  %v3384_v4 = vadd.f32 %v893_v25, %v892_v10  ;;  %v3386_v5 = vadd.f32 %v907_v2, %v906_v13 }
  0xfd   :  { %v3389_v41 = vadd.f32 %v3239_v35, %v1110_v29  ;;  %v3392_v40 = vadd.f32 %v3241_v62, %v1124_v32  ;;  %v881_v23 = vrot.slane %v3363_v19, 1  ;;  %v3395_v56 = vadd.f32 %v921_v15, %v920_v39 }
  0xfe   :  { %v3397_v26 = vadd.f32 %v825_v24, %v824_v7  ;;  %v3399_v16 = vadd.f32 %v839_v43, %v838_v58  ;;  %v3401_v47 = vadd.f32 %v853_v63, %v852_v57  ;;  %v3403_v18 = vadd.f32 %v867_v50, %v866_v28  ;;  %v3414_v7 = vld [vmem:[%s4815_s1 + $0x98] sm:$0xff] }
  0xff   :  { %v929_v20 = vmul.f32 %v3320_v27, %v326_v33  ;;  %v943_v35 = vmul.f32 %v3326_v0, %v326_v33  ;;  %v957_v3 = vmul.f32 %v3332_v30, %v326_v33  ;;  %v971_v62 = vmul.f32 %v3338_v12, %v326_v33 }
 0x100   :  { %v895_v61 = vrot.slane %v3384_v4, 1  ;;  %v909_v39 = vrot.slane %v3386_v5, 1  ;;  %v985_v51 = vmul.f32 %v3414_v7, %v326_v33  ;;  %v999_v34 = vmul.f32 %v3420_v14, %v326_v33 }
 0x101   :  { %v932_v55 = vadd.f32 %v3292_v48, %v929_v20  ;;  %v946_v9 = vadd.f32 %v3294_v11, %v943_v35  ;;  %v960_v52 = vadd.f32 %v3298_v17, %v957_v3  ;;  %v974_v46 = vadd.f32 %v3300_v49, %v971_v62  ;;  %v3437_v48 = vld [vmem:[%s4815_s1 + $0xf8] sm:$0xff] }
 0x102   :  { %v988_v38 = vadd.f32 %v3303_v22, %v985_v51  ;;  %v1002_v45 = vadd.f32 %v1001_v36, %v999_v34  ;;  %v1013_v44 = vmul.f32 %v3431_v21, %v326_v33  ;;  %v1027_v11 = vmul.f32 %v3437_v48, %v326_v33 }
 0x103   :  { %v933_v17 = vrot.slane %v932_v55, 4  ;;  %v947_v37 = vrot.slane %v946_v9, 4  ;;  %v961_v49 = vrot.slane %v960_v52, 4  ;;  %v975_v10 = vrot.slane %v974_v46, 4 }
 0x104   :  { %v989_v22 = vrot.slane %v988_v38, 4  ;;  %v1003_v13 = vrot.slane %v1002_v45, 4  ;;  %v1016_v58 = vadd.f32 %v1015_v53, %v1013_v44  ;;  %v1030_v57 = vadd.f32 %v3296_v31, %v1027_v11 }
 0x105   :  { %v934_v28 = vadd.f32 %v933_v17, %v932_v55  ;;  %v948_v36 = vadd.f32 %v947_v37, %v946_v9  ;;  %v962_v42 = vadd.f32 %v961_v49, %v960_v52  ;;  %v976_v25 = vadd.f32 %v975_v10, %v974_v46 }
 0x106   :  { %v990_v2 = vadd.f32 %v989_v22, %v988_v38  ;;  %v1004_v29 = vadd.f32 %v1003_v13, %v1002_v45  ;;  %v1017_v32 = vrot.slane %v1016_v58, 4  ;;  %v1031_v15 = vrot.slane %v1030_v57, 4  ;;  %v384_v13 = vpop.f32.mrf.mxu2 }
 0x107   :  { %v935_v24 = vrot.slane %v934_v28, 2  ;;  %v949_v43 = vrot.slane %v948_v36, 2  ;;  %v963_v63 = vrot.slane %v962_v42, 2  ;;  %v977_v50 = vrot.slane %v976_v25, 2 }
 0x108   :  { %v991_v33 = vrot.slane %v990_v2, 2  ;;  %v1005_v20 = vrot.slane %v1004_v29, 2  ;;  %v1018_v35 = vadd.f32 %v1017_v32, %v1016_v58  ;;  %v1032_v3 = vadd.f32 %v1031_v15, %v1030_v57 }
 0x109   :  { %v936_v62 = vadd.f32 %v935_v24, %v934_v28  ;;  %v950_v53 = vadd.f32 %v949_v43, %v948_v36  ;;  %v964_v51 = vadd.f32 %v963_v63, %v962_v42  ;;  %v978_v31 = vadd.f32 %v977_v50, %v976_v25 }
 0x10a   :  { %v882_v34 = vadd.f32 %v881_v23, %v3363_v19  ;;  %v923_v55 = vrot.slane %v3395_v56, 1  ;;  %v1019_v9 = vrot.slane %v1018_v35, 2  ;;  %v1033_v52 = vrot.slane %v1032_v3, 2 }
 0x10b   :  { %v896_v46 = vadd.f32 %v895_v61, %v3384_v4  ;;  %v910_v38 = vadd.f32 %v909_v39, %v3386_v5  ;;  %v3445_v45 = vadd.f32 %v991_v33, %v990_v2  ;;  %v3447_v44 = vadd.f32 %v1005_v20, %v1004_v29 }
 0x10c   :  { %v937_v11 = vrot.slane %v936_v62, 1  ;;  %v951_v17 = vrot.slane %v950_v53, 1  ;;  %v965_v37 = vrot.slane %v964_v51, 1  ;;  %v979_v49 = vrot.slane %v978_v31, 1 }
 0x10d   :  { %v3450_v10 = vmax.f32 %v3397_v26, 0.0  ;;  %v3453_v19 = vmax.f32 %v3399_v16, 0.0  ;;  %v3456_v23 = vmax.f32 %v3401_v47, 0.0  ;;  %v3459_v4 = vmax.f32 %v3403_v18, 0.0 }
 0x10e   :  { %v3461_v5 = vmax.f32 %v882_v34, 0.0  ;;  %v3464_v61 = vadd.f32 %v923_v55, %v3395_v56  ;;  %v1020_v39 = vadd.f32 %v1019_v9, %v1018_v35  ;;  %v1034_v22 = vadd.f32 %v1033_v52, %v1032_v3 }
 0x10f   :  { %5033 = vst [vmem:[#allocation6_spill] sm:$0xff] %v3450_v10  ;;  %v3466_v58 = vmax.f32 %v896_v46, 0.0  ;;  %v3468_v26 = vmax.f32 %v910_v38, 0.0  ;;  %v993_v16 = vrot.slane %v3445_v45, 1  ;;  %v1007_v47 = vrot.slane %v3447_v44, 1 }
 0x110   :  { %5034 = vst [vmem:[#allocation8_spill] sm:$0xff] %v3453_v19  ;;  %v938_v57 = vadd.f32 %v937_v11, %v936_v62  ;;  %v952_v28 = vadd.f32 %v951_v17, %v950_v53  ;;  %v966_v18 = vadd.f32 %v965_v37, %v964_v51  ;;  %v980_v36 = vadd.f32 %v979_v49, %v978_v31  ;;  %v5041_v51 = vld [vmem:[#allocation4_spill] sm:$0xff] }
 0x111   :  { %5035 = vst [vmem:[#allocation3_spill] sm:$0xff] %v3456_v23  ;;  %v1041_v42 = vmul.f32 %v3320_v27, %v384_v13  ;;  %v1055_v56 = vmul.f32 %v3326_v0, %v384_v13  ;;  %v1069_v25 = vmul.f32 %v3332_v30, %v384_v13  ;;  %v1083_v2 = vmul.f32 %v3338_v12, %v384_v13 }
 0x112   :  { %5036 = vst [vmem:[#allocation5_spill] sm:$0xff] %v3459_v4  ;;  %v1021_v29 = vrot.slane %v1020_v39, 1  ;;  %v1035_v32 = vrot.slane %v1034_v22, 1  ;;  %v1097_v15 = vmul.f32 %v3414_v7, %v384_v13  ;;  %v1111_v24 = vmul.f32 %v3420_v14, %v384_v13 }
 0x113   :  { %5037 = vst [vmem:[#allocation7_spill] sm:$0xff] %v3461_v5  ;;  %v1044_v43 = vadd.f32 %v3369_v1, %v1041_v42  ;;  %v1058_v63 = vadd.f32 %v3373_v6, %v1055_v56  ;;  %v1072_v50 = vadd.f32 %v3376_v59, %v1069_v25  ;;  %v1086_v27 = vadd.f32 %v3379_v60, %v1083_v2 }
 0x114   :  { %5038 = vst [vmem:[#allocation9_spill] sm:$0xff] %v3464_v61  ;;  %v1100_v0 = vadd.f32 %v3382_v8, %v1097_v15  ;;  %v1114_v30 = vadd.f32 %v3389_v41, %v1111_v24  ;;  %v1125_v12 = vmul.f32 %v3431_v21, %v384_v13  ;;  %v1139_v33 = vmul.f32 %v3437_v48, %v384_v13  ;;  %v5070_v61 = vld [vmem:[#allocation23_spill] sm:$0xff] }
 0x115   :  { %5039 = vst [vmem:[#allocation47_spill] sm:$0xff] %v3466_v58  ;;  %v1045_v20 = vrot.slane %v1044_v43, 4  ;;  %v1059_v35 = vrot.slane %v1058_v63, 4  ;;  %v1073_v3 = vrot.slane %v1072_v50, 4  ;;  %v1087_v62 = vrot.slane %v1086_v27, 4  ;;  %v5077_v58 = vld [vmem:[#allocation44_spill] sm:$0xff] }
 0x116   :  { %5040 = vst [vmem:[#allocation48_spill] sm:$0xff] %v3468_v26  ;;  %v1101_v53 = vrot.slane %v1100_v0, 4  ;;  %v1115_v1 = vrot.slane %v1114_v30, 4  ;;  %v1128_v6 = vadd.f32 %v3392_v40, %v1125_v12  ;;  %v1142_v59 = vadd.f32 %v5041_v51, %v1139_v33  ;;  %v3490_v12 = vpop.f32.mrf.mxu0 }
 0x117   :  { %v1046_v31 = vadd.f32 %v1045_v20, %v1044_v43  ;;  %v1060_v60 = vadd.f32 %v1059_v35, %v1058_v63  ;;  %v1074_v34 = vadd.f32 %v1073_v3, %v1072_v50  ;;  %v1088_v8 = vadd.f32 %v1087_v62, %v1086_v27  ;;  %5042 = vst [vmem:[#allocation4_spill] sm:$0xff] %v3490_v12 }
 0x118   :  { %v1102_v55 = vadd.f32 %v1101_v53, %v1100_v0  ;;  %v1116_v41 = vadd.f32 %v1115_v1, %v1114_v30  ;;  %v1129_v9 = vrot.slane %v1128_v6, 4  ;;  %v1143_v52 = vrot.slane %v1142_v59, 4 }
 0x119   :  { %v1047_v46 = vrot.slane %v1046_v31, 2  ;;  %v1061_v38 = vrot.slane %v1060_v60, 2  ;;  %v1075_v11 = vrot.slane %v1074_v34, 2  ;;  %v1089_v17 = vrot.slane %v1088_v8, 2 }
 0x11a   :  { %v1103_v37 = vrot.slane %v1102_v55, 2  ;;  %v1117_v49 = vrot.slane %v1116_v41, 2  ;;  %v1130_v13 = vadd.f32 %v1129_v9, %v1128_v6  ;;  %v1144_v42 = vadd.f32 %v1143_v52, %v1142_v59  ;;  %v5047_v59 = vld [vmem:[#allocation13_spill] sm:$0xff]  ;;  %v5051_v9 = vld [vmem:[#allocation28_spill] sm:$0xff] }
 0x11b   :  { %v1048_v56 = vadd.f32 %v1047_v46, %v1046_v31  ;;  %v1062_v40 = vadd.f32 %v1061_v38, %v1060_v60  ;;  %v1076_v25 = vadd.f32 %v1075_v11, %v1074_v34  ;;  %v1090_v2 = vadd.f32 %v1089_v17, %v1088_v8  ;;  %v5048_v31 = vld [vmem:[#allocation16_spill] sm:$0xff]  ;;  %v5049_v34 = vld [vmem:[#allocation14_spill] sm:$0xff]  ;;  %v5052_v11 = vld [vmem:[#allocation11_spill] sm:$0xff] }
 0x11c   :  { %v994_v15 = vadd.f32 %v993_v16, %v3445_v45  ;;  %v1008_v24 = vadd.f32 %v1007_v47, %v3447_v44  ;;  %v1104_v43 = vadd.f32 %v1103_v37, %v1102_v55  ;;  %v1118_v63 = vadd.f32 %v1117_v49, %v1116_v41  ;;  %v3504_v47 = vpop.f32.mrf.mxu1  ;;  %v5050_v55 = vld [vmem:[#allocation18_spill] sm:$0xff]  ;;  %v5053_v37 = vld [vmem:[#allocation33_spill] sm:$0xff] }
 0x11d   :  { %v1022_v50 = vadd.f32 %v1021_v29, %v1020_v39  ;;  %v1036_v27 = vadd.f32 %v1035_v32, %v1034_v22  ;;  %v1131_v0 = vrot.slane %v1130_v13, 2  ;;  %v1145_v30 = vrot.slane %v1144_v42, 2  ;;  %5044 = vst [vmem:[#allocation50_spill] sm:$0xff] %v3504_v47 }
 0x11e   :  { %v1049_v33 = vrot.slane %v1048_v56, 1  ;;  %v1063_v20 = vrot.slane %v1062_v40, 1  ;;  %v1077_v35 = vrot.slane %v1076_v25, 1  ;;  %v1091_v3 = vrot.slane %v1090_v2, 1 }
 0x11f   :  { %v3492_v62 = vmax.f32 %v938_v57, 0.0  ;;  %v3494_v53 = vmax.f32 %v952_v28, 0.0  ;;  %v3496_v1 = vmax.f32 %v966_v18, 0.0  ;;  %v3498_v45 = vmax.f32 %v980_v36, 0.0 }
 0x120   :  { %v3500_v44 = vmax.f32 %v994_v15, 0.0  ;;  %v3502_v39 = vmax.f32 %v1008_v24, 0.0  ;;  %v1105_v22 = vrot.slane %v1104_v43, 1  ;;  %v1119_v16 = vrot.slane %v1118_v63, 1 }
 0x121   :  { %v3506_v29 = vmax.f32 %v1022_v50, 0.0  ;;  %v3508_v32 = vmax.f32 %v1036_v27, 0.0  ;;  %v1132_v57 = vadd.f32 %v1131_v0, %v1130_v13  ;;  %v3510_v6 = vadd.f32 %v1145_v30, %v1144_v42  ;;  %v5054_v42 = vld [vmem:[#allocation39_spill] sm:$0xff] }
 0x122   :  { %5043 = vst [vmem:[#allocation49_spill] sm:$0xff] %v3502_v39  ;;  %v1050_v28 = vadd.f32 %v1049_v33, %v1048_v56  ;;  %v1064_v18 = vadd.f32 %v1063_v20, %v1062_v40  ;;  %v1078_v51 = vadd.f32 %v1077_v35, %v1076_v25  ;;  %v3512_v36 = vadd.f32 %v1091_v3, %v1090_v2  ;;  %v5055_v40 = vld [vmem:[#allocation40_spill] sm:$0xff]  ;;  %v5056_v2 = vld [vmem:[#allocation19_spill] sm:$0xff] }
 0x123   :  { %5045 = vst [vmem:[#allocation51_spill] sm:$0xff] %v3506_v29  ;;  %v1498_v60 = vmul.f32 %v5048_v31, %v5047_v59  ;;  %v1506_v8 = vmul.f32 %v5049_v34, %v3504_v47  ;;  %v1604_v41 = vmul.f32 %v5050_v55, %v5047_v59  ;;  %v1612_v52 = vmul.f32 %v5051_v9, %v3504_v47  ;;  %v3547_v31 = vpop.f32.mrf.mxu0 }
 0x124   :  { %5046 = vst [vmem:[#allocation52_spill] sm:$0xff] %v3508_v32  ;;  %v3522_v46 = vadd.f32 %v1105_v22, %v1104_v43  ;;  %v3524_v38 = vadd.f32 %v1119_v16, %v1118_v63  ;;  %v1678_v17 = vmul.f32 %v5049_v34, %v5052_v11  ;;  %v1682_v49 = vmul.f32 %v3450_v10, %v5053_v37  ;;  %v5057_v43 = vld [vmem:[#allocation21_spill] sm:$0xff] }
 0x125   :  { %v1133_v13 = vrot.slane %v1132_v57, 1  ;;  %v1500_v56 = vadd.f32 %v1498_v60, %v5054_v42  ;;  %v1606_v25 = vadd.f32 %v1604_v41, %v5055_v40  ;;  %v1686_v15 = vmul.f32 %v5051_v9, %v5056_v2 }
 0x126   :  { %v1680_v24 = vadd.f32 %v1678_v17, %v3504_v47  ;;  %v1684_v50 = vadd.f32 %v1682_v49, %v5057_v43  ;;  %v1690_v63 = vmul.f32 %v3453_v19, %v5047_v59  ;;  %v1694_v27 = vmul.f32 %v3456_v23, %v5057_v43  ;;  %v3562_v17 = vpop.f32.mrf.mxu3 }
 0x127   :  { %v1147_v0 = vrot.slane %v3510_v6, 1  ;;  %v1508_v30 = vadd.f32 %v1506_v8, %v1500_v56  ;;  %v1614_v33 = vadd.f32 %v1612_v52, %v1606_v25  ;;  %v1768_v20 = vmul.f32 %v3492_v62, %v5053_v37  ;;  %5061 = vst [vmem:[#allocation28_spill] sm:$0xff] %v3562_v17 }
 0x128   :  { %v1688_v35 = vadd.f32 %v1686_v15, %v1680_v24  ;;  %v1692_v3 = vadd.f32 %v1690_v63, %v1684_v50  ;;  %v1698_v22 = vmul.f32 %v3456_v23, %v3504_v47  ;;  %v1776_v16 = vmul.f32 %v3494_v53, %v5047_v59 }
 0x129   :  { %v1770_v60 = vadd.f32 %v1768_v20, %v3490_v12  ;;  %v3552_v41 = vmul.f32 %v3492_v62, %v3547_v31  ;;  %v3556_v8 = vmul.f32 %v3494_v53, %v3547_v31  ;;  %v3560_v52 = vmul.f32 %v3496_v1, %v3547_v31  ;;  %v5067_v20 = vld [vmem:[#allocation22_spill] sm:$0xff] }
 0x12a   :  { %v3564_v49 = vmax.f32 %v1050_v28, 0.0  ;;  %v3566_v42 = vadd.f32 %v1694_v27, %v1688_v35  ;;  %v1700_v56 = vadd.f32 %v1698_v22, %v1692_v3  ;;  %v1784_v40 = vmul.f32 %v3496_v1, %v3504_v47  ;;  %v5068_v22 = vld [vmem:[#allocation29_spill] sm:$0xff] }
 0x12b   :  { %5058 = vst [vmem:[#allocation16_spill] sm:$0xff] %v3552_v41  ;;  %v1778_v25 = vadd.f32 %v1776_v16, %v1770_v60  ;;  %v3572_v15 = vmul.f32 %v3498_v45, %v3547_v31  ;;  %v3576_v24 = vmul.f32 %v3500_v44, %v3547_v31  ;;  %v3580_v50 = vmul.f32 %v3502_v39, %v3547_v31 }
 0x12c   :  { %5059 = vst [vmem:[#allocation14_spill] sm:$0xff] %v3556_v8  ;;  %v3582_v28 = vmax.f32 %v1064_v18, 0.0  ;;  %v3586_v63 = vmul.f32 %v3506_v29, %v3547_v31  ;;  %v3590_v27 = vmul.f32 %v3508_v32, %v3547_v31  ;;  %v1514_v35 = vmul.f32 %v5067_v20, %v3562_v17 }
 0x12d   :  { %5060 = vst [vmem:[#allocation18_spill] sm:$0xff] %v3560_v52  ;;  %v1786_v3 = vadd.f32 %v1784_v40, %v1778_v25  ;;  %v1620_v16 = vmul.f32 %v5068_v22, %v3562_v17  ;;  %v1706_v60 = vmul.f32 %v3459_v4, %v3562_v17  ;;  %v1764_v18 = vmul.f32 %v5067_v20, %v5052_v11 }
 0x12e   :  { %5062 = vst [vmem:[#allocation39_spill] sm:$0xff] %v3572_v15  ;;  %v3602_v15 = vmax.f32 %v1078_v51, 0.0  ;;  %v1516_v52 = vadd.f32 %v1514_v35, %v1508_v30  ;;  %v1772_v8 = vmul.f32 %v5068_v22, %v5056_v2  ;;  %v1780_v40 = vmul.f32 %v3459_v4, %v5057_v43  ;;  %v5071_v51 = vld [vmem:[#allocation30_spill] sm:$0xff] }
 0x12f   :  { %5063 = vst [vmem:[#allocation40_spill] sm:$0xff] %v3576_v24  ;;  %v3600_v24 = vpop.f32.mrf.mxu2  ;;  %v1622_v25 = vadd.f32 %v1620_v16, %v1614_v33  ;;  %v1708_v41 = vadd.f32 %v1706_v60, %v1700_v56  ;;  %v1792_v32 = vmul.f32 %v3498_v45, %v3562_v17  ;;  %v1850_v56 = vmul.f32 %v5070_v61, %v5052_v11  ;;  %v3621_v16 = vpop.f32.mrf.mxu1 }
 0x130   :  { %5064 = vst [vmem:[#allocation53_spill] sm:$0xff] %v3580_v50  ;;  %v1522_v50 = vmul.f32 %v5070_v61, %v3600_v24  ;;  %v1628_v30 = vmul.f32 %v5071_v51, %v3600_v24  ;;  %v1714_v35 = vmul.f32 %v3461_v5, %v3600_v24  ;;  %v1800_v33 = vmul.f32 %v3500_v44, %v3600_v24 }
 0x131   :  { %5065 = vst [vmem:[#allocation54_spill] sm:$0xff] %v3586_v63  ;;  %v1134_v63 = vadd.f32 %v1133_v13, %v1132_v57  ;;  %v1794_v26 = vadd.f32 %v1792_v32, %v1786_v3  ;;  %v1852_v32 = vadd.f32 %v1850_v56, %v3600_v24  ;;  %v1148_v3 = vadd.f32 %v1147_v0, %v3510_v6  ;;  %v5083_v0 = vld [vmem:[#allocation41_spill] sm:$0xff] }
 0x132   :  { %5066 = vst [vmem:[#allocation55_spill] sm:$0xff] %v3590_v27  ;;  %v1766_v27 = vadd.f32 %v1764_v18, %v3562_v17  ;;  %v3623_v57 = vadd.f32 %v1522_v50, %v1516_v52  ;;  %v3625_v13 = vadd.f32 %v1628_v30, %v1622_v25  ;;  %v3627_v60 = vadd.f32 %v1714_v35, %v1708_v41  ;;  %v5078_v52 = vld [vmem:[#allocation36_spill] sm:$0xff]  ;;  %v5079_v25 = vld [vmem:[#allocation45_spill] sm:$0xff] }
 0x133   :  { %5069 = vst [vmem:[#allocation22_spill] sm:$0xff] %v3600_v24  ;;  %v1858_v18 = vmul.f32 %v5071_v51, %v5056_v2  ;;  %v1501_v50 = vadd.f32 %v5078_v52, %v5077_v58  ;;  %v1507_v41 = vmul.f32 %v5049_v34, %v3621_v16  ;;  %v5080_v30 = vld [vmem:[#allocation37_spill] sm:$0xff]  ;;  %v3651_v6 = vmax.f32 %v3522_v46, 0.0 }
 0x134   :  { %v1774_v29 = vadd.f32 %v1772_v8, %v1766_v27  ;;  %5072 = vst [vmem:[#allocation29_spill] sm:$0xff] %v3621_v16  ;;  %v3631_v8 = vadd.f32 %v1800_v33, %v1794_v26  ;;  %v1866_v27 = vmul.f32 %v3461_v5, %v5057_v43  ;;  %v1607_v35 = vadd.f32 %v5080_v30, %v5079_v25  ;;  %v5081_v33 = vld [vmem:[#allocation12_spill] sm:$0xff] }
 0x135   :  { %5073 = vst [vmem:[#allocation23_spill] sm:$0xff] %v3623_v57  ;;  %v1860_v26 = vadd.f32 %v1858_v18, %v1852_v32  ;;  %v1679_v56 = vmul.f32 %v5049_v34, %v5081_v33  ;;  %v3654_v58 = vmax.f32 %v3524_v38, 0.0  ;;  %v1769_v52 = vmul.f32 %v3492_v62, %v5083_v0  ;;  %v5086_v32 = vld [vmem:[#allocation20_spill] sm:$0xff] }
 0x136   :  { %5074 = vst [vmem:[#allocation30_spill] sm:$0xff] %v3625_v13  ;;  %v1782_v39 = vadd.f32 %v1780_v40, %v1774_v29  ;;  %v3644_v29 = vmax.f32 %v3512_v36, 0.0  ;;  %v1613_v40 = vmul.f32 %v5051_v9, %v3621_v16  ;;  %v3658_v25 = vadd.f32 %v1507_v41, %v1501_v50  ;;  %v5089_v41 = vld [vmem:[#allocation17_spill] sm:$0xff] }
 0x137   :  { %5075 = vst [vmem:[#allocation56_spill] sm:$0xff] %v3627_v60  ;;  %v1868_v36 = vadd.f32 %v1866_v27, %v1860_v26  ;;  %v1681_v18 = vadd.f32 %v1679_v56, %v3621_v16  ;;  %v3665_v34 = vmax.f32 %v1134_v63, 0.0  ;;  %v3667_v46 = vmax.f32 %v1148_v3, 0.0  ;;  %v410_v60 = vpop.f32.mrf.mxu0  ;;  %v5091_v63 = vld [vmem:[#allocation38_spill] sm:$0xff] }
 0x138   :  { %5076 = vst [vmem:[#allocation57_spill] sm:$0xff] %v3631_v8  ;;  %v3660_v30 = vadd.f32 %v1613_v40, %v1607_v35  ;;  %v1687_v8 = vmul.f32 %v5051_v9, %v5086_v32  ;;  %v1502_v38 = vmul.f32 %v3450_v10, %v5057_v43  ;;  %v1510_v50 = vmul.f32 %v3492_v62, %v3490_v12  ;;  %v5092_v40 = vld [vmem:[#allocation27_spill] sm:$0xff] }
 0x139   :  { %5082 = vst [vmem:[#allocation44_spill] sm:$0xff] %v3654_v58  ;;  %v1777_v27 = vmul.f32 %v3494_v53, %v5089_v41  ;;  %v1683_v35 = vmul.f32 %v3450_v10, %v5083_v0  ;;  %v1518_v9 = vmul.f32 %v3564_v49, %v410_v60  ;;  %v1594_v56 = vadd.f32 %v5092_v40, %v5047_v59 }
 0x13a   :  { %5084 = vst [vmem:[#allocation36_spill] sm:$0xff] %v3658_v25  ;;  %v3677_v26 = vadd.f32 %v1687_v8, %v1681_v18  ;;  %v1504_v3 = vadd.f32 %v1502_v38, %v5091_v63  ;;  %v1600_v13 = vmul.f32 %v5050_v55, %v5056_v2  ;;  %v1608_v62 = vmul.f32 %v3453_v19, %v5057_v43 }
 0x13b   :  { %5085 = vst [vmem:[#allocation45_spill] sm:$0xff] %v3660_v30  ;;  %v1771_v57 = vadd.f32 %v1769_v52, %v3547_v31  ;;  %v1616_v10 = vmul.f32 %v3494_v53, %v3490_v12  ;;  %v1624_v8 = vmul.f32 %v3582_v28, %v410_v60  ;;  %v1702_v18 = vmul.f32 %v3496_v1, %v3490_v12 }
 0x13c   :  { %5087 = vst [vmem:[#allocation37_spill] sm:$0xff] %v3665_v34  ;;  %v1512_v38 = vadd.f32 %v1510_v50, %v1504_v3  ;;  %v1602_v63 = vadd.f32 %v1600_v13, %v1594_v56  ;;  %v1710_v40 = vmul.f32 %v3602_v15, %v410_v60  ;;  %v1788_v55 = vmul.f32 %v3498_v45, %v3490_v12  ;;  %v3713_v56 = vpop.f32.mrf.mxu3 }
 0x13d   :  { %5088 = vst [vmem:[#allocation58_spill] sm:$0xff] %v3667_v46  ;;  %v1704_v25 = vadd.f32 %v1702_v18, %v3566_v42  ;;  %v1796_v31 = vmul.f32 %v3644_v29, %v410_v60  ;;  %v1854_v53 = vmul.f32 %v3564_v49, %v5053_v37  ;;  %v1874_v13 = vmul.f32 %v3500_v44, %v3490_v12 }
 0x13e   :  { %5090 = vst [vmem:[#allocation59_spill] sm:$0xff] %v3677_v26  ;;  %v5093_v26 = vld [vmem:[#allocation15_spill] sm:$0xff]  ;;  %v3701_v52 = vadd.f32 %v1518_v9, %v1512_v38  ;;  %v1610_v43 = vadd.f32 %v1608_v62, %v1602_v63  ;;  %v1790_v2 = vadd.f32 %v1788_v55, %v1782_v39  ;;  %v1691_v50 = vmul.f32 %v3453_v19, %v5089_v41 }
 0x13f   :  { %v1685_v30 = vadd.f32 %v1683_v35, %v5093_v26  ;;  %v3707_v3 = vadd.f32 %v1710_v40, %v1704_v25  ;;  %v1882_v35 = vmul.f32 %v3651_v6, %v410_v60  ;;  %v3711_v42 = vmul.f32 %v3654_v58, %v410_v60  ;;  %5097 = vst [vmem:[#allocation61_spill] sm:$0xff] %v3713_v56  ;;  %v3723_v40 = vpop.f32.mrf.mxu2  ;;  %v2364_v26 = vld [vmem:[%s4815_s1 + $0xa8] sm:$0xff] }
 0x140   :  { %5094 = vst [vmem:[#allocation38_spill] sm:$0xff] %v3701_v52  ;;  %v1618_v18 = vadd.f32 %v1616_v10, %v1610_v43  ;;  %v3715_v9 = vadd.f32 %v1796_v31, %v1790_v2  ;;  %v1876_v62 = vadd.f32 %v1874_v13, %v1868_v36  ;;  %v3718_v39 = vmul.f32 %v3665_v34, %v410_v60  ;;  %v2357_v52 = vld [vmem:[%s4815_s1 + $0x80] sm:$0xff] }
 0x141   :  { %5095 = vst [vmem:[#allocation27_spill] sm:$0xff] %v3707_v3  ;;  %v1779_v38 = vadd.f32 %v1777_v27, %v1771_v57  ;;  %v1693_v63 = vadd.f32 %v1691_v50, %v1685_v30  ;;  %v1856_v55 = vadd.f32 %v1854_v53, %v410_v60  ;;  %v3721_v25 = vmul.f32 %v3667_v46, %v410_v60  ;;  %v413_v30 = vpop.f32.mrf.mxu0  ;;  %v433_v27 = vpop.f32.mrf.mxu1 }
 0x142   :  { %5096 = vst [vmem:[#allocation60_spill] sm:$0xff] %v3711_v42  ;;  %v1870_v42 = vmul.f32 %v3602_v15, %v3504_v47  ;;  %v3727_v3 = vadd.f32 %v1624_v8, %v1618_v18  ;;  %v3729_v10 = vadd.f32 %v1882_v35, %v1876_v62  ;;  %v1765_v2 = vmul.f32 %v5067_v20, %v5081_v33 }
 0x143   :  { %5098 = vst [vmem:[#allocation62_spill] sm:$0xff] %v3715_v9  ;;  %v3735_v43 = vmul.f32 %v3644_v29, %v3562_v17  ;;  %v1699_v57 = vmul.f32 %v3456_v23, %v3621_v16  ;;  %v1785_v60 = vmul.f32 %v3496_v1, %v3621_v16  ;;  %v1862_v36 = vmul.f32 %v3582_v28, %v5047_v59  ;;  %v2361_v59 = vld [vmem:[%s4815_s1 + $0x48] sm:$0xff] }
 0x144   :  { %5099 = vst [vmem:[#allocation63_spill] sm:$0xff] %v3718_v39  ;;  %v3745_v8 = vmul.f32 %v3651_v6, %v3600_v24  ;;  %v3749_v31 = vmul.f32 %v3602_v15, %v3621_v16  ;;  %v1767_v53 = vadd.f32 %v1765_v2, %v3713_v56  ;;  %v1773_v13 = vmul.f32 %v5068_v22, %v5086_v32 }
 0x145   :  { %5100 = vst [vmem:[#allocation64_spill] sm:$0xff] %v3721_v25  ;;  %v3754_v50 = vadd.f32 %v1699_v57, %v1693_v63  ;;  %v3756_v1 = vadd.f32 %v1785_v60, %v1779_v38  ;;  %v1864_v35 = vadd.f32 %v1862_v36, %v1856_v55  ;;  %v1851_v18 = vmul.f32 %v5070_v61, %v5081_v33  ;;  %v2366_v33 = vld [vmem:[%s4815_s1 + $0xe8] sm:$0xff] }
 0x146   :  { %5101 = vst [vmem:[#allocation65_spill] sm:$0xff] %v3723_v40  ;;  %v3760_v62 = vadd.f32 %v1773_v13, %v1767_v53  ;;  %v3763_v25 = vmul.f32 %v3564_v49, %v413_v30  ;;  %v3766_v39 = vmul.f32 %v3582_v28, %v413_v30  ;;  %v3769_v2 = vmul.f32 %v3602_v15, %v413_v30 }
 0x147   :  { %5102 = vst [vmem:[#allocation66_spill] sm:$0xff] %v3727_v3  ;;  %v1853_v63 = vadd.f32 %v1851_v18, %v3723_v40  ;;  %v1859_v38 = vmul.f32 %v5071_v51, %v5086_v32  ;;  %v3775_v55 = vmul.f32 %v3644_v29, %v413_v30  ;;  %v1855_v57 = vmul.f32 %v3564_v49, %v5083_v0  ;;  %v2365_v32 = vld [vmem:[%s4815_s1 + $0xc8] sm:$0xff] }
 0x148   :  { %5103 = vst [vmem:[#allocation67_spill] sm:$0xff] %v3729_v10  ;;  %v3780_v60 = vmul.f32 %v3651_v6, %v413_v30  ;;  %v3783_v36 = vmul.f32 %v3654_v58, %v413_v30  ;;  %v3786_v15 = vmul.f32 %v3665_v34, %v413_v30  ;;  %v3789_v53 = vmul.f32 %v3667_v46, %v413_v30 }
 0x149   :  { %5104 = vst [vmem:[#allocation68_spill] sm:$0xff] %v3735_v43  ;;  %v3793_v13 = vmul.f32 %v5067_v20, %v3713_v56  ;;  %v3797_v18 = vmul.f32 %v5068_v22, %v3713_v56  ;;  %v3801_v49 = vmul.f32 %v3459_v4, %v3713_v56  ;;  %v3803_v10 = vadd.f32 %v1859_v38, %v1853_v63  ;;  %v2354_v38 = vld [vmem:[%s4815_s1 + $0x20] sm:$0xff] }
 0x14a   :  { %5105 = vst [vmem:[#allocation69_spill] sm:$0xff] %v3745_v8  ;;  %v3805_v9 = vadd.f32 %v1870_v42, %v1864_v35  ;;  %v3813_v20 = vmul.f32 %v3644_v29, %v3713_v56  ;;  %v3817_v22 = vmul.f32 %v5070_v61, %v3723_v40  ;;  %v3821_v63 = vmul.f32 %v5071_v51, %v3723_v40  ;;  %v549_v35 = vpop.f32.mrf.mxu2  ;;  %v2353_v51 = vld [vmem:[%s4815_s1] sm:$0xff] }
 0x14b   :  { %5106 = vst [vmem:[#allocation70_spill] sm:$0xff] %v3749_v31  ;;  %v3825_v42 = vmul.f32 %v3461_v5, %v3723_v40  ;;  %v3833_v29 = vmul.f32 %v3651_v6, %v3723_v40  ;;  %v1863_v61 = vmul.f32 %v3582_v28, %v5089_v41  ;;  %v2356_v6 = vld [vmem:[%s4815_s1 + $0x60] sm:$0xff]  ;;  %v1206_v12 = vmul.f32 %v2357_v52, %v433_v27 }
 0x14c   :  { %5107 = vst [vmem:[#allocation71_spill] sm:$0xff] %v3754_v50  ;;  %v1192_v28 = vmul.f32 %v2356_v6, %v433_v27  ;;  %v1388_v41 = vmul.f32 %v2354_v38, %v549_v35 }
 0x14d   :  { %5108 = vst [vmem:[#allocation72_spill] sm:$0xff] %v3756_v1 }
 0x14e   :  { %5109 = vst [vmem:[#allocation73_spill] sm:$0xff] %v3760_v62  ;;  %v2359_v62 = vld [vmem:[%s4815_s1 + $0xc0] sm:$0xff] }
 0x14f   :  { %5110 = vst [vmem:[#allocation74_spill] sm:$0xff] %v3763_v25  ;;  %v1458_v1 = vmul.f32 %v2359_v62, %v549_v35 }
 0x150   :  { %5111 = vst [vmem:[#allocation75_spill] sm:$0xff] %v3766_v39  ;;  %v2360_v39 = vld [vmem:[%s4815_s1 + $0xe0] sm:$0xff] }
 0x151   :  { %5112 = vst [vmem:[#allocation76_spill] sm:$0xff] %v3769_v2  ;;  %v1234_v2 = vmul.f32 %v2359_v62, %v433_v27  ;;  %v1248_v25 = vmul.f32 %v2360_v39, %v433_v27 }
 0x152   :  { %5113 = vst [vmem:[#allocation77_spill] sm:$0xff] %v3775_v55  ;;  %v552_v58 = vpop.f32.mrf.mxu2 }
 0x153   :  { %5114 = vst [vmem:[#allocation78_spill] sm:$0xff] %v3780_v60  ;;  %v2358_v60 = vld [vmem:[%s4815_s1 + $0xa0] sm:$0xff] }
 0x154   :  { %5115 = vst [vmem:[#allocation79_spill] sm:$0xff] %v3783_v36  ;;  %v491_v36 = vpop.f32.mrf.mxu3  ;;  %v1220_v55 = vmul.f32 %v2358_v60, %v433_v27 }
 0x155   :  { %5116 = vst [vmem:[#allocation80_spill] sm:$0xff] %v3786_v15  ;;  %v1857_v15 = vadd.f32 %v1855_v57, %v413_v30  ;;  %v1150_v30 = vmul.f32 %v2353_v51, %v433_v27  ;;  %v1164_v57 = vmul.f32 %v2354_v38, %v433_v27  ;;  %v1262_v4 = vmul.f32 %v2353_v51, %v491_v36 }
 0x156   :  { %5117 = vst [vmem:[#allocation81_spill] sm:$0xff] %v3789_v53  ;;  %v3809_v53 = vmul.f32 %v3498_v45, %v3713_v56  ;;  %v3829_v45 = vmul.f32 %v3500_v44, %v3723_v40  ;;  %v2355_v44 = vld [vmem:[%s4815_s1 + $0x40] sm:$0xff]  ;;  %v1276_v23 = vmul.f32 %v2354_v38, %v491_v36  ;;  %v1304_v24 = vmul.f32 %v2356_v6, %v491_v36  ;;  %v2363_v56 = vld [vmem:[%s4815_s1 + $0x88] sm:$0xff] }
 0x157   :  { %5118 = vst [vmem:[#allocation82_spill] sm:$0xff] %v3793_v13  ;;  %v1178_v3 = vmul.f32 %v2355_v44, %v433_v27  ;;  %v3855_v5 = vadd.f32 %v1863_v61, %v1857_v15  ;;  %v1290_v19 = vmul.f32 %v2355_v44, %v491_v36  ;;  %v1318_v17 = vmul.f32 %v2357_v52, %v491_v36  ;;  %v5131_v15 = vld [vmem:[#allocation42_spill] sm:$0xff]  ;;  %v2362_v27 = vld [vmem:[%s4815_s1 + $0x68] sm:$0xff] }
 0x158   :  { %5119 = vst [vmem:[#allocation83_spill] sm:$0xff] %v3797_v18  ;;  %v1332_v47 = vmul.f32 %v2358_v60, %v491_v36  ;;  %v1346_v8 = vmul.f32 %v2359_v62, %v491_v36  ;;  %v1360_v43 = vmul.f32 %v2360_v39, %v491_v36  ;;  %v1374_v36 = vmul.f32 %v2353_v51, %v549_v35 }
 0x159   :  { %5120 = vst [vmem:[#allocation84_spill] sm:$0xff] %v3801_v49  ;;  %v1402_v31 = vmul.f32 %v2355_v44, %v549_v35 }
 0x15a   :  { %5121 = vst [vmem:[#allocation85_spill] sm:$0xff] %v3803_v10  ;;  %v436_v10 = vpop.f32.mrf.mxu1 }
 0x15b   :  { %5122 = vst [vmem:[#allocation86_spill] sm:$0xff] %v3805_v9  ;;  %v1151_v61 = vmul.f32 %v5131_v15, %v436_v10  ;;  %v5132_v9 = vld [vmem:[#allocation43_spill] sm:$0xff]  ;;  %v1179_v40 = vmul.f32 %v2361_v59, %v436_v10  ;;  %v1193_v34 = vmul.f32 %v2362_v27, %v436_v10  ;;  %v1207_v16 = vmul.f32 %v2363_v56, %v436_v10 }
 0x15c   :  { %5123 = vst [vmem:[#allocation87_spill] sm:$0xff] %v3809_v53  ;;  %v1165_v46 = vmul.f32 %v5132_v9, %v436_v10  ;;  %v494_v51 = vpop.f32.mrf.mxu3  ;;  %v1444_v53 = vmul.f32 %v2358_v60, %v549_v35 }
 0x15d   :  { %5124 = vst [vmem:[#allocation88_spill] sm:$0xff] %v3813_v20  ;;  %v1235_v20 = vmul.f32 %v2365_v32, %v436_v10  ;;  %v3883_v49 = vadd.f32 %v1151_v61, %v1150_v30  ;;  %v3889_v18 = vadd.f32 %v1193_v34, %v1192_v28  ;;  %v3891_v13 = vadd.f32 %v1207_v16, %v1206_v12  ;;  %v2367_v12 = vld [vmem:[%s4815_s1 + $0x8] sm:$0xff] }
 0x15e   :  { %5125 = vst [vmem:[#allocation89_spill] sm:$0xff] %v3817_v22  ;;  %v3885_v50 = vadd.f32 %v1165_v46, %v1164_v57  ;;  %v3887_v22 = vadd.f32 %v1179_v40, %v1178_v3  ;;  %v1263_v62 = vmul.f32 %v5131_v15, %v494_v51  ;;  %v1291_v60 = vmul.f32 %v2361_v59, %v494_v51 }
 0x15f   :  { %5126 = vst [vmem:[#allocation90_spill] sm:$0xff] %v3821_v63  ;;  %v1472_v63 = vmul.f32 %v2360_v39, %v549_v35  ;;  %v3895_v38 = vadd.f32 %v1235_v20, %v1234_v2  ;;  %v1277_v39 = vmul.f32 %v5132_v9, %v494_v51  ;;  %v1305_v46 = vmul.f32 %v2362_v27, %v494_v51 }
 0x160   :  { %5127 = vst [vmem:[#allocation91_spill] sm:$0xff] %v3825_v42  ;;  %v1430_v42 = vmul.f32 %v2357_v52, %v549_v35  ;;  %v1333_v3 = vmul.f32 %v2364_v26, %v494_v51  ;;  %v1347_v40 = vmul.f32 %v2365_v32, %v494_v51  ;;  %v1361_v34 = vmul.f32 %v2366_v33, %v494_v51 }
 0x161   :  { %5128 = vst [vmem:[#allocation92_spill] sm:$0xff] %v3829_v45  ;;  %v1249_v45 = vmul.f32 %v2366_v33, %v436_v10  ;;  %v1375_v16 = vmul.f32 %v2367_v12, %v552_v58  ;;  %v1417_v20 = vmul.f32 %v2362_v27, %v552_v58  ;;  %v1266_v9 = vadd.f32 %v1263_v62, %v1262_v4  ;;  %v2374_v62 = vld [vmem:[%s4815_s1 + $0x50] sm:$0xff] }
 0x162   :  { %5129 = vst [vmem:[#allocation93_spill] sm:$0xff] %v3833_v29  ;;  %v1221_v29 = vmul.f32 %v2364_v26, %v436_v10  ;;  %v1459_v30 = vmul.f32 %v2365_v32, %v552_v58  ;;  %v1473_v57 = vmul.f32 %v2366_v33, %v552_v58  ;;  %v439_v44 = vpop.f32.mrf.mxu1  ;;  %v1294_v28 = vadd.f32 %v1291_v60, %v1290_v19  ;;  %v2375_v60 = vld [vmem:[%s4815_s1 + $0x70] sm:$0xff] }
 0x163   :  { %5130 = vst [vmem:[#allocation94_spill] sm:$0xff] %v3855_v5  ;;  %v1416_v5 = vmul.f32 %v2356_v6, %v549_v35  ;;  %v3897_v52 = vadd.f32 %v1249_v45, %v1248_v25  ;;  %v1319_v35 = vmul.f32 %v2363_v56, %v494_v51  ;;  %v2368_v25 = vld [vmem:[%s4815_s1 + $0x28] sm:$0xff]  ;;  %v1431_v45 = vmul.f32 %v2363_v56, %v552_v58 }
 0x164   :  { %v3893_v10 = vadd.f32 %v1221_v29, %v1220_v55  ;;  %v1389_v2 = vmul.f32 %v2368_v25, %v552_v58  ;;  %v1403_v55 = vmul.f32 %v2361_v59, %v552_v58  ;;  %v1445_v29 = vmul.f32 %v2364_v26, %v552_v58  ;;  %v497_v32 = vpop.f32.mrf.mxu3  ;;  %v5133_v58 = vld [vmem:[#allocation10_spill] sm:$0xff] }
 0x165   :  { %v1280_v6 = vadd.f32 %v1277_v39, %v1276_v23  ;;  %v1308_v15 = vadd.f32 %v1305_v46, %v1304_v24  ;;  %v1322_v61 = vadd.f32 %v1319_v35, %v1318_v17  ;;  %v1336_v51 = vadd.f32 %v1333_v3, %v1332_v47  ;;  %v2369_v47 = vld [vmem:[%s4815_s1 + $0x10] sm:$0xff]  ;;  %v5134_v26 = vld [vmem:[#allocation46_spill] sm:$0xff] }
 0x166   :  { %v1350_v0 = vadd.f32 %v1347_v40, %v1346_v8  ;;  %v1364_v12 = vadd.f32 %v1361_v34, %v1360_v43  ;;  %v3907_v11 = vadd.f32 %v1375_v16, %v1374_v36  ;;  %v3909_v37 = vadd.f32 %v1389_v2, %v1388_v41  ;;  %v2370_v24 = vld [vmem:[%s4815_s1 + $0x30] sm:$0xff] }
 0x167   :  { %v3911_v25 = vadd.f32 %v1403_v55, %v1402_v31  ;;  %v3913_v59 = vadd.f32 %v1417_v20, %v1416_v5  ;;  %v3915_v4 = vadd.f32 %v1431_v45, %v1430_v42  ;;  %v3917_v33 = vadd.f32 %v1445_v29, %v1444_v53  ;;  %v3935_v8 = vld [vmem:[%s4815_s1 + $0xb0] sm:$0xff]  ;;  %v3965_v29 = vpop.f32.mrf.mxu2 }
 0x168   :  { %v3919_v23 = vadd.f32 %v1459_v30, %v1458_v1  ;;  %v3921_v19 = vadd.f32 %v1473_v57, %v1472_v63  ;;  %v1152_v17 = vmul.f32 %v2369_v47, %v439_v44  ;;  %v1166_v5 = vmul.f32 %v2370_v24, %v439_v44  ;;  %v3941_v1 = vld [vmem:[%s4815_s1 + $0xd0] sm:$0xff] }
 0x169   :  { %v1180_v41 = vmul.f32 %v5133_v58, %v439_v44  ;;  %v1194_v56 = vmul.f32 %v5134_v26, %v439_v44  ;;  %v1208_v43 = vmul.f32 %v3355_v54, %v439_v44  ;;  %v1222_v31 = vmul.f32 %v3935_v8, %v439_v44  ;;  %v3947_v63 = vld [vmem:[%s4815_s1 + $0xf0] sm:$0xff] }
 0x16a   :  { %v1236_v53 = vmul.f32 %v3941_v1, %v439_v44  ;;  %v1250_v42 = vmul.f32 %v3947_v63, %v439_v44  ;;  %v1264_v27 = vmul.f32 %v2369_v47, %v497_v32  ;;  %v1278_v36 = vmul.f32 %v2370_v24, %v497_v32 }
 0x16b   :  { %v1292_v39 = vmul.f32 %v2374_v62, %v497_v32  ;;  %v1306_v46 = vmul.f32 %v2375_v60, %v497_v32  ;;  %v1320_v35 = vmul.f32 %v3355_v54, %v497_v32  ;;  %v1155_v3 = vadd.f32 %v3883_v49, %v1152_v17  ;;  %v442_v17 = vpop.f32.mrf.mxu1 }
 0x16c   :  { %v1334_v40 = vmul.f32 %v3935_v8, %v497_v32  ;;  %v1348_v34 = vmul.f32 %v3941_v1, %v497_v32  ;;  %v1362_v16 = vmul.f32 %v3947_v63, %v497_v32  ;;  %v1169_v2 = vadd.f32 %v3885_v50, %v1166_v5 }
 0x16d   :  { %v1183_v55 = vadd.f32 %v3887_v22, %v1180_v41  ;;  %v1197_v20 = vadd.f32 %v3889_v18, %v1194_v56  ;;  %v1211_v45 = vadd.f32 %v3891_v13, %v1208_v43  ;;  %v1225_v30 = vadd.f32 %v3893_v10, %v1222_v31 }
 0x16e   :  { %v1239_v49 = vadd.f32 %v3895_v38, %v1236_v53  ;;  %v1253_v57 = vadd.f32 %v3897_v52, %v1250_v42  ;;  %v3970_v44 = vadd.f32 %v1266_v9, %v1264_v27  ;;  %v3972_v32 = vadd.f32 %v1280_v6, %v1278_v36 }
 0x16f   :  { %v3974_v50 = vadd.f32 %v1294_v28, %v1292_v39  ;;  %v3976_v22 = vadd.f32 %v1308_v15, %v1306_v46  ;;  %v3978_v18 = vadd.f32 %v1322_v61, %v1320_v35  ;;  %v3980_v13 = vadd.f32 %v1336_v51, %v1334_v40  ;;  %v3999_v28 = vld [vmem:[%s4815_s1 + $0x18] sm:$0xff] }
 0x170   :  { %v3982_v5 = vadd.f32 %v1350_v0, %v1348_v34  ;;  %v3984_v10 = vadd.f32 %v1364_v12, %v1362_v16  ;;  %v1376_v38 = vmul.f32 %v2369_v47, %v3965_v29  ;;  %v3988_v52 = vmul.f32 %v2370_v24, %v3965_v29  ;;  %v4005_v15 = vld [vmem:[%s4815_s1 + $0x38] sm:$0xff] }
 0x171   :  { %5135 = vst [vmem:[#allocation42_spill] sm:$0xff] %v3980_v13  ;;  %v3991_v9 = vmul.f32 %v2374_v62, %v3965_v29  ;;  %v3994_v6 = vmul.f32 %v2375_v60, %v3965_v29  ;;  %v1153_v0 = vmul.f32 %v3999_v28, %v442_v17  ;;  %v1167_v61 = vmul.f32 %v4005_v15, %v442_v17  ;;  %v4011_v51 = vld [vmem:[%s4815_s1 + $0x58] sm:$0xff] }
 0x172   :  { %5136 = vst [vmem:[#allocation43_spill] sm:$0xff] %v3982_v5  ;;  %v1181_v12 = vmul.f32 %v4011_v51, %v442_v17  ;;  %v4017_v47 = vld [vmem:[%s4815_s1 + $0x78] sm:$0xff]  ;;  %v1209_v58 = vmul.f32 %v3414_v7, %v442_v17  ;;  %v1223_v26 = vmul.f32 %v3420_v14, %v442_v17  ;;  %v1237_v56 = vmul.f32 %v3431_v21, %v442_v17 }
 0x173   :  { %5137 = vst [vmem:[#allocation10_spill] sm:$0xff] %v3984_v10  ;;  %v1195_v24 = vmul.f32 %v4017_v47, %v442_v17  ;;  %v1156_v41 = vadd.f32 %v1155_v3, %v1153_v0  ;;  %v1251_v43 = vmul.f32 %v3437_v48, %v442_v17  ;;  %v1170_v31 = vadd.f32 %v1169_v2, %v1167_v61 }
 0x174   :  { %v1184_v53 = vadd.f32 %v1183_v55, %v1181_v12  ;;  %v1212_v27 = vadd.f32 %v1211_v45, %v1209_v58  ;;  %v1226_v62 = vadd.f32 %v1225_v30, %v1223_v26  ;;  %v1240_v39 = vadd.f32 %v1239_v49, %v1237_v56 }
 0x175   :  { %v1198_v42 = vadd.f32 %v1197_v20, %v1195_v24  ;;  %v1157_v36 = vrot.slane %v1156_v41, 4  ;;  %v1254_v60 = vadd.f32 %v1253_v57, %v1251_v43  ;;  %v1171_v46 = vrot.slane %v1170_v31, 4 }
 0x176   :  { %v1185_v35 = vrot.slane %v1184_v53, 4  ;;  %v1213_v34 = vrot.slane %v1212_v27, 4  ;;  %v1227_v3 = vrot.slane %v1226_v62, 4  ;;  %v1241_v0 = vrot.slane %v1240_v39, 4 }
 0x177   :  { %v1199_v40 = vrot.slane %v1198_v42, 4  ;;  %v1158_v16 = vadd.f32 %v1157_v36, %v1156_v41  ;;  %v1255_v14 = vrot.slane %v1254_v60, 4  ;;  %v1172_v10 = vadd.f32 %v1171_v46, %v1170_v31 }
 0x178   :  { %v1186_v5 = vadd.f32 %v1185_v35, %v1184_v53  ;;  %v1214_v17 = vadd.f32 %v1213_v34, %v1212_v27  ;;  %v1228_v55 = vadd.f32 %v1227_v3, %v1226_v62  ;;  %v1242_v20 = vadd.f32 %v1241_v0, %v1240_v39 }
 0x179   :  { %v1200_v13 = vadd.f32 %v1199_v40, %v1198_v42  ;;  %v1159_v2 = vrot.slane %v1158_v16, 2  ;;  %v1256_v45 = vadd.f32 %v1255_v14, %v1254_v60  ;;  %v1173_v61 = vrot.slane %v1172_v10, 2  ;;  %v4080_v14 = vld [vmem:[%s4815_s1 + $0xb8] sm:$0xff] }
 0x17a   :  { %v1187_v30 = vrot.slane %v1186_v5, 2  ;;  %v1215_v57 = vrot.slane %v1214_v17, 2  ;;  %v1229_v24 = vrot.slane %v1228_v55, 2  ;;  %v1243_v58 = vrot.slane %v1242_v20, 2 }
 0x17b   :  { %v1201_v49 = vrot.slane %v1200_v13, 2  ;;  %v1160_v12 = vadd.f32 %v1159_v2, %v1158_v16  ;;  %v1257_v26 = vrot.slane %v1256_v45, 2  ;;  %v1432_v41 = vmul.f32 %v3355_v54, %v3965_v29 }
 0x17c   :  { %v1174_v56 = vadd.f32 %v1173_v61, %v1172_v10  ;;  %v1188_v43 = vadd.f32 %v1187_v30, %v1186_v5  ;;  %v1446_v53 = vmul.f32 %v3935_v8, %v3965_v29  ;;  %v1460_v42 = vmul.f32 %v3941_v1, %v3965_v29  ;;  %v5138_v30 = vld [vmem:[#allocation42_spill] sm:$0xff] }
 0x17d   :  { %v1202_v31 = vadd.f32 %v1201_v49, %v1200_v13  ;;  %v1474_v27 = vmul.f32 %v3947_v63, %v3965_v29  ;;  %v4032_v36 = vadd.f32 %v1215_v57, %v1214_v17  ;;  %v1161_v62 = vrot.slane %v1160_v12, 1  ;;  %v5139_v57 = vld [vmem:[#allocation43_spill] sm:$0xff] }
 0x17e   :  { %v4034_v39 = vadd.f32 %v1229_v24, %v1228_v55  ;;  %v4036_v60 = vadd.f32 %v1243_v58, %v1242_v20  ;;  %v4038_v54 = vadd.f32 %v1257_v26, %v1256_v45  ;;  %v4041_v13 = vadd.f32 %v3907_v11, %v1376_v38  ;;  %v500_v11 = vpop.f32.mrf.mxu3  ;;  %v5140_v24 = vld [vmem:[#allocation10_spill] sm:$0xff] }
 0x17f   :  { %v1175_v5 = vrot.slane %v1174_v56, 1  ;;  %v1189_v8 = vrot.slane %v1188_v43, 1  ;;  %v1203_v10 = vrot.slane %v1202_v31, 1  ;;  %v4045_v1 = vadd.f32 %v3909_v37, %v3988_v52 }
 0x180   :  { %v4049_v63 = vadd.f32 %v3911_v25, %v3991_v9  ;;  %v4053_v29 = vadd.f32 %v3913_v59, %v3994_v6  ;;  %v4056_v46 = vadd.f32 %v3915_v4, %v1432_v41  ;;  %v4059_v38 = vadd.f32 %v3917_v33, %v1446_v53 }
 0x181   :  { %v4062_v35 = vadd.f32 %v3919_v23, %v1460_v42  ;;  %v4065_v37 = vadd.f32 %v3921_v19, %v1474_v27  ;;  %v1217_v25 = vrot.slane %v4032_v36, 1  ;;  %v1162_v52 = vadd.f32 %v1161_v62, %v1160_v12 }
 0x182   :  { %v1231_v9 = vrot.slane %v4034_v39, 1  ;;  %v1245_v59 = vrot.slane %v4036_v60, 1  ;;  %v1259_v4 = vrot.slane %v4038_v54, 1  ;;  %v1176_v6 = vadd.f32 %v1175_v5, %v1174_v56 }
 0x183   :  { %v1190_v40 = vadd.f32 %v1189_v8, %v1188_v43  ;;  %v1204_v34 = vadd.f32 %v1203_v10, %v1202_v31  ;;  %v1265_v33 = vmul.f32 %v3999_v28, %v500_v11  ;;  %v1279_v23 = vmul.f32 %v4005_v15, %v500_v11 }
 0x184   :  { %v1293_v16 = vmul.f32 %v4011_v51, %v500_v11  ;;  %v1307_v19 = vmul.f32 %v4017_v47, %v500_v11  ;;  %v1321_v3 = vmul.f32 %v3414_v7, %v500_v11  ;;  %v1335_v17 = vmul.f32 %v4080_v14, %v500_v11 }
 0x185   :  { %v1268_v0 = vadd.f32 %v3970_v44, %v1265_v33  ;;  %v1349_v2 = vmul.f32 %v3431_v21, %v500_v11  ;;  %v1363_v55 = vmul.f32 %v3437_v48, %v500_v11  ;;  %v1282_v20 = vadd.f32 %v3972_v32, %v1279_v23  ;;  %v4092_v23 = vpop.f32.mrf.mxu0 }
 0x186   :  { %v1296_v45 = vadd.f32 %v3974_v50, %v1293_v16  ;;  %v1310_v61 = vadd.f32 %v3976_v22, %v1307_v19  ;;  %v1324_v7 = vadd.f32 %v3978_v18, %v1321_v3  ;;  %v1338_v49 = vadd.f32 %v5138_v30, %v1335_v17  ;;  %5141 = vst [vmem:[#allocation46_spill] sm:$0xff] %v4092_v23  ;;  %v5184_v23 = vld [vmem:[#allocation45_spill] sm:$0xff] }
 0x187   :  { %v1269_v44 = vrot.slane %v1268_v0, 4  ;;  %v1352_v12 = vadd.f32 %v5139_v57, %v1349_v2  ;;  %v1366_v58 = vadd.f32 %v5140_v24, %v1363_v55  ;;  %v1283_v26 = vrot.slane %v1282_v20, 4 }
 0x188   :  { %v1297_v41 = vrot.slane %v1296_v45, 4  ;;  %v1311_v21 = vrot.slane %v1310_v61, 4  ;;  %v1325_v56 = vrot.slane %v1324_v7, 4  ;;  %v1339_v43 = vrot.slane %v1338_v49, 4 }
 0x189   :  { %v1270_v48 = vadd.f32 %v1269_v44, %v1268_v0  ;;  %v1353_v32 = vrot.slane %v1352_v12, 4  ;;  %v1367_v31 = vrot.slane %v1366_v58, 4  ;;  %v1284_v50 = vadd.f32 %v1283_v26, %v1282_v20 }
 0x18a   :  { %v1298_v53 = vadd.f32 %v1297_v41, %v1296_v45  ;;  %v1312_v22 = vadd.f32 %v1311_v21, %v1310_v61  ;;  %v1326_v42 = vadd.f32 %v1325_v56, %v1324_v7  ;;  %v1340_v27 = vadd.f32 %v1339_v43, %v1338_v49  ;;  %v5145_v21 = vld [vmem:[#allocation33_spill] sm:$0xff] }
 0x18b   :  { %v1271_v18 = vrot.slane %v1270_v48, 2  ;;  %v1354_v62 = vadd.f32 %v1353_v32, %v1352_v12  ;;  %v1368_v5 = vadd.f32 %v1367_v31, %v1366_v58  ;;  %v1285_v8 = vrot.slane %v1284_v50, 2 }
 0x18c   :  { %v1299_v10 = vrot.slane %v1298_v53, 2  ;;  %v1313_v11 = vrot.slane %v1312_v22, 2  ;;  %v1327_v33 = vrot.slane %v1326_v42, 2  ;;  %v1341_v19 = vrot.slane %v1340_v27, 2 }
 0x18d   :  { %v1272_v16 = vadd.f32 %v1271_v18, %v1270_v48  ;;  %v1355_v3 = vrot.slane %v1354_v62, 2  ;;  %v1369_v0 = vrot.slane %v1368_v5, 2  ;;  %v1218_v17 = vadd.f32 %v1217_v25, %v4032_v36 }
 0x18e   :  { %v1286_v2 = vadd.f32 %v1285_v8, %v1284_v50  ;;  %v1300_v55 = vadd.f32 %v1299_v10, %v1298_v53  ;;  %v1314_v20 = vadd.f32 %v1313_v11, %v1312_v22  ;;  %v4095_v45 = vmax.f32 %v1162_v52, 0.0 }
 0x18f   :  { %v1232_v61 = vadd.f32 %v1231_v9, %v4034_v39  ;;  %v1246_v7 = vadd.f32 %v1245_v59, %v4036_v60  ;;  %v4099_v44 = vadd.f32 %v1327_v33, %v1326_v42  ;;  %v1273_v30 = vrot.slane %v1272_v16, 1  ;;  %v558_v59 = vpop.f32.mrf.mxu2  ;;  %v2381_v42 = vld [vmem:[%s4815_s1 + $0x98] sm:$0xff] }
 0x190   :  { %5142 = vst [vmem:[#allocation42_spill] sm:$0xff] %v4095_v45  ;;  %v4101_v49 = vadd.f32 %v1341_v19, %v1340_v27  ;;  %v4103_v57 = vadd.f32 %v1355_v3, %v1354_v62  ;;  %v4105_v12 = vadd.f32 %v1369_v0, %v1368_v5  ;;  %v4108_v36 = vadd.f32 %v1259_v4, %v4038_v54  ;;  %v4145_v27 = vpop.f32.mrf.mxu0 }
 0x191   :  { %v1287_v25 = vrot.slane %v1286_v2, 1  ;;  %v1301_v24 = vrot.slane %v1300_v55, 1  ;;  %v1315_v52 = vrot.slane %v1314_v20, 1  ;;  %v4110_v58 = vmax.f32 %v1176_v6, 0.0  ;;  %5147 = vst [vmem:[#allocation95_spill] sm:$0xff] %v4145_v27 }
 0x192   :  { %v4112_v39 = vmax.f32 %v1190_v40, 0.0  ;;  %v4114_v60 = vmax.f32 %v1204_v34, 0.0  ;;  %v4116_v9 = vmax.f32 %v1218_v17, 0.0  ;;  %v4118_v26 = vmax.f32 %v1232_v61, 0.0 }
 0x193   :  { %v4120_v41 = vmax.f32 %v1246_v7, 0.0  ;;  %v4124_v54 = vmul.f32 %v4095_v45, %v5145_v21  ;;  %v1329_v4 = vrot.slane %v4099_v44, 1  ;;  %v4127_v56 = vadd.f32 %v1273_v30, %v1272_v16 }
 0x194   :  { %5143 = vst [vmem:[#allocation43_spill] sm:$0xff] %v4118_v26  ;;  %v1343_v6 = vrot.slane %v4101_v49, 1  ;;  %v1357_v40 = vrot.slane %v4103_v57, 1  ;;  %v1371_v34 = vrot.slane %v4105_v12, 1  ;;  %v4132_v48 = vadd.f32 %v1287_v25, %v1286_v2 }
 0x195   :  { %5144 = vst [vmem:[#allocation10_spill] sm:$0xff] %v4120_v41  ;;  %v4134_v43 = vadd.f32 %v1301_v24, %v1300_v55  ;;  %v4136_v32 = vadd.f32 %v1315_v52, %v1314_v20  ;;  %v1377_v31 = vmul.f32 %v3999_v28, %v558_v59  ;;  %v1391_v50 = vmul.f32 %v4005_v15, %v558_v59  ;;  %v2382_v28 = vld [vmem:[%s4815_s1 + $0xd8] sm:$0xff] }
 0x196   :  { %5146 = vst [vmem:[#allocation33_spill] sm:$0xff] %v4124_v54  ;;  %v1405_v53 = vmul.f32 %v4011_v51, %v558_v59  ;;  %v1419_v22 = vmul.f32 %v4017_v47, %v558_v59  ;;  %v1433_v18 = vmul.f32 %v2381_v42, %v558_v59  ;;  %v1447_v5 = vmul.f32 %v4080_v14, %v558_v59  ;;  %v2383_v51 = vld [vmem:[%s4815_s1 + $0xf8] sm:$0xff] }
 0x197   :  { %v1380_v62 = vadd.f32 %v4041_v13, %v1377_v31  ;;  %v1461_v15 = vmul.f32 %v2382_v28, %v558_v59  ;;  %v1475_v47 = vmul.f32 %v2383_v51, %v558_v59  ;;  %v1394_v8 = vadd.f32 %v4045_v1, %v1391_v50 }
 0x198   :  { %v1408_v10 = vadd.f32 %v4049_v63, %v1405_v53  ;;  %v1422_v11 = vadd.f32 %v4053_v29, %v1419_v22  ;;  %v1436_v13 = vadd.f32 %v4056_v46, %v1433_v18  ;;  %v1450_v14 = vadd.f32 %v4059_v38, %v1447_v5  ;;  %v4162_v28 = vpop.f32.mrf.mxu0 }
 0x199   :  { %v1381_v33 = vrot.slane %v1380_v62, 4  ;;  %v1464_v16 = vadd.f32 %v4062_v35, %v1461_v15  ;;  %v1478_v19 = vadd.f32 %v4065_v37, %v1475_v47  ;;  %v1395_v3 = vrot.slane %v1394_v8, 4  ;;  %5148 = vst [vmem:[#allocation96_spill] sm:$0xff] %v4162_v28  ;;  %v5183_v28 = vld [vmem:[#allocation82_spill] sm:$0xff] }
 0x19a   :  { %v1409_v0 = vrot.slane %v1408_v10, 4  ;;  %v1423_v17 = vrot.slane %v1422_v11, 4  ;;  %v1437_v2 = vrot.slane %v1436_v13, 4  ;;  %v1451_v20 = vrot.slane %v1450_v14, 4 }
 0x19b   :  { %v1382_v55 = vadd.f32 %v1381_v33, %v1380_v62  ;;  %v1465_v1 = vrot.slane %v1464_v16, 4  ;;  %v1479_v61 = vrot.slane %v1478_v19, 4  ;;  %v1396_v63 = vadd.f32 %v1395_v3, %v1394_v8 }
 0x19c   :  { %v1410_v7 = vadd.f32 %v1409_v0, %v1408_v10  ;;  %v1424_v29 = vadd.f32 %v1423_v17, %v1422_v11  ;;  %v1438_v30 = vadd.f32 %v1437_v2, %v1436_v13  ;;  %v1452_v25 = vadd.f32 %v1451_v20, %v1450_v14  ;;  %v4167_v14 = vpop.f32.mrf.mxu1 }
 0x19d   :  { %v1383_v46 = vrot.slane %v1382_v55, 2  ;;  %v1466_v24 = vadd.f32 %v1465_v1, %v1464_v16  ;;  %v1480_v38 = vadd.f32 %v1479_v61, %v1478_v19  ;;  %v1397_v52 = vrot.slane %v1396_v63, 2 }
 0x19e   :  { %v1411_v35 = vrot.slane %v1410_v7, 2  ;;  %v1425_v59 = vrot.slane %v1424_v29, 2  ;;  %v1439_v37 = vrot.slane %v1438_v30, 2  ;;  %v1453_v50 = vrot.slane %v1452_v25, 2 }
 0x19f   :  { %v1384_v31 = vadd.f32 %v1383_v46, %v1382_v55  ;;  %v1467_v53 = vrot.slane %v1466_v24, 2  ;;  %v1481_v22 = vrot.slane %v1480_v38, 2  ;;  %v1398_v42 = vadd.f32 %v1397_v52, %v1396_v63 }
 0x1a0   :  { %v1412_v18 = vadd.f32 %v1411_v35, %v1410_v7  ;;  %v1426_v62 = vadd.f32 %v1425_v59, %v1424_v29  ;;  %v1440_v5 = vadd.f32 %v1439_v37, %v1438_v30  ;;  %v1454_v51 = vadd.f32 %v1453_v50, %v1452_v25  ;;  %v5156_v7 = vld [vmem:[#allocation11_spill] sm:$0xff]  ;;  %v5157_v29 = vld [vmem:[#allocation24_spill] sm:$0xff] }
 0x1a1   :  { %v1385_v15 = vrot.slane %v1384_v31, 1  ;;  %v1468_v47 = vadd.f32 %v1467_v53, %v1466_v24  ;;  %v1482_v8 = vadd.f32 %v1481_v22, %v1480_v38  ;;  %v1330_v10 = vadd.f32 %v1329_v4, %v4099_v44  ;;  %v5160_v38 = vld [vmem:[#allocation41_spill] sm:$0xff]  ;;  %v5161_v35 = vld [vmem:[#allocation31_spill] sm:$0xff] }
 0x1a2   :  { %v1344_v11 = vadd.f32 %v1343_v6, %v4101_v49  ;;  %v1358_v13 = vadd.f32 %v1357_v40, %v4103_v57  ;;  %v1399_v33 = vrot.slane %v1398_v42, 1  ;;  %v4170_v16 = vmax.f32 %v4127_v56, 0.0  ;;  %v5163_v37 = vld [vmem:[#allocation47_spill] sm:$0xff] }
 0x1a3   :  { %v1413_v19 = vrot.slane %v1412_v18, 1  ;;  %v1455_v3 = vrot.slane %v1454_v51, 1  ;;  %v1469_v0 = vrot.slane %v1468_v47, 1  ;;  %v4175_v17 = vadd.f32 %v1371_v34, %v4105_v12  ;;  %v5165_v53 = vld [vmem:[#allocation19_spill] sm:$0xff] }
 0x1a4   :  { %5149 = vst [vmem:[#allocation97_spill] sm:$0xff] %v4170_v16  ;;  %v1386_v2 = vadd.f32 %v1385_v15, %v1384_v31  ;;  %v1427_v44 = vrot.slane %v1426_v62, 1  ;;  %v1441_v4 = vrot.slane %v1440_v5, 1  ;;  %v4178_v49 = vmax.f32 %v4132_v48, 0.0  ;;  %v5170_v15 = vld [vmem:[#allocation44_spill] sm:$0xff] }
 0x1a5   :  { %v4181_v57 = vmax.f32 %v4134_v43, 0.0  ;;  %v1400_v6 = vadd.f32 %v1399_v33, %v1398_v42  ;;  %v1483_v56 = vrot.slane %v1482_v8, 1  ;;  %v4184_v40 = vmax.f32 %v4136_v32, 0.0 }
 0x1a6   :  { %v4186_v55 = vmax.f32 %v1330_v10, 0.0  ;;  %v4188_v20 = vmax.f32 %v1344_v11, 0.0  ;;  %v4190_v12 = vmax.f32 %v1358_v13, 0.0  ;;  %v4194_v34 = vmul.f32 %v4170_v16, %v5145_v21  ;;  %v5173_v11 = vld [vmem:[#allocation21_spill] sm:$0xff] }
 0x1a7   :  { %v4196_v48 = vadd.f32 %v1413_v19, %v1412_v18  ;;  %v1456_v1 = vadd.f32 %v1455_v3, %v1454_v51  ;;  %v1470_v43 = vadd.f32 %v1469_v0, %v1468_v47  ;;  %v4198_v61 = vmax.f32 %v1386_v2, 0.0  ;;  %v4239_v47 = vpop.f32.mrf.mxu0  ;;  %v5175_v19 = vld [vmem:[#allocation25_spill] sm:$0xff]  ;;  %v4251_v0 = vpop.f32.mrf.mxu2 }
 0x1a8   :  { %5150 = vst [vmem:[#allocation98_spill] sm:$0xff] %v4186_v55  ;;  %v4200_v63 = vadd.f32 %v1427_v44, %v1426_v62  ;;  %v4202_v32 = vadd.f32 %v1441_v4, %v1440_v5  ;;  %v1936_v30 = vmul.f32 %v5157_v29, %v5156_v7  ;;  %v4206_v46 = vmax.f32 %v1400_v6, 0.0  ;;  %v5168_v62 = vld [vmem:[#allocation49_spill] sm:$0xff]  ;;  %v4253_v2 = vpop.f32.mrf.mxu1  ;;  %v5177_v4 = vld [vmem:[#allocation32_spill] sm:$0xff] }
 0x1a9   :  { %5151 = vst [vmem:[#allocation99_spill] sm:$0xff] %v4188_v20  ;;  %v4208_v25 = vadd.f32 %v1483_v56, %v1482_v8  ;;  %v4212_v24 = vmul.f32 %v5157_v29, %v4167_v14  ;;  %v2027_v52 = vmul.f32 %v4170_v16, %v5160_v38  ;;  %v4218_v59 = vmul.f32 %v5161_v35, %v4167_v14  ;;  %v4241_v8 = vpop.f32.mrf.mxu3  ;;  %v5178_v56 = vld [vmem:[#allocation48_spill] sm:$0xff]  ;;  %v5181_v16 = vld [vmem:[#allocation34_spill] sm:$0xff] }
 0x1aa   :  { %5152 = vst [vmem:[#allocation100_spill] sm:$0xff] %v4190_v12  ;;  %v4222_v31 = vmul.f32 %v5163_v37, %v4167_v14  ;;  %v1938_v50 = vadd.f32 %v1936_v30, %v4167_v14  ;;  %v1944_v22 = vmul.f32 %v5161_v35, %v5165_v53  ;;  %v4227_v42 = vmax.f32 %v1456_v1, 0.0 }
 0x1ab   :  { %5153 = vst [vmem:[#allocation101_spill] sm:$0xff] %v4194_v34  ;;  %v4229_v18 = vmax.f32 %v1470_v43, 0.0  ;;  %v4233_v5 = vmul.f32 %v5168_v62, %v4167_v14  ;;  %v4237_v51 = vmul.f32 %v5170_v15, %v4167_v14  ;;  %v1952_v13 = vmul.f32 %v5163_v37, %v5173_v11  ;;  %v5179_v43 = vld [vmem:[#allocation26_spill] sm:$0xff]  ;;  %v5182_v34 = vld [vmem:[#allocation36_spill] sm:$0xff] }
 0x1ac   :  { %5154 = vst [vmem:[#allocation102_spill] sm:$0xff] %v4198_v61  ;;  %v1946_v10 = vadd.f32 %v1944_v22, %v1938_v50  ;;  %v4247_v33 = vmul.f32 %v4118_v26, %v4167_v14  ;;  %v2022_v3 = vmul.f32 %v5175_v19, %v5156_v7  ;;  %v2029_v44 = vadd.f32 %v2027_v52, %v4239_v47 }
 0x1ad   :  { %5155 = vst [vmem:[#allocation103_spill] sm:$0xff] %v4200_v63  ;;  %v2030_v6 = vmul.f32 %v5177_v4, %v5165_v53  ;;  %v2038_v1 = vmul.f32 %v5178_v56, %v5173_v11  ;;  %v2108_v30 = vmul.f32 %v5179_v43, %v5156_v7  ;;  %v1517_v54 = vadd.f32 %v5183_v28, %v5182_v34  ;;  %v5185_v11 = vld [vmem:[#allocation83_spill] sm:$0xff]  ;;  %v5197_v63 = vld [vmem:[#allocation17_spill] sm:$0xff] }
 0x1ae   :  { %5158 = vst [vmem:[#allocation11_spill] sm:$0xff] %v4206_v46  ;;  %v4262_v50 = vadd.f32 %v1952_v13, %v1946_v10  ;;  %v2024_v22 = vadd.f32 %v2022_v3, %v4241_v8  ;;  %v1637_v7 = vmul.f32 %v5161_v35, %v4253_v2  ;;  %v5186_v13 = vld [vmem:[#allocation89_spill] sm:$0xff]  ;;  %v1723_v28 = vmul.f32 %v5163_v37, %v4253_v2 }
 0x1af   :  { %5159 = vst [vmem:[#allocation24_spill] sm:$0xff] %v4212_v24  ;;  %v2110_v52 = vadd.f32 %v2108_v30, %v4251_v0  ;;  %v1525_v3 = vadd.f32 %v5186_v13, %v1517_v54  ;;  %v5190_v30 = vld [vmem:[#allocation90_spill] sm:$0xff]  ;;  %v5194_v54 = vld [vmem:[#allocation91_spill] sm:$0xff] }
 0x1b0   :  { %5162 = vst [vmem:[#allocation41_spill] sm:$0xff] %v4218_v59  ;;  %v2032_v10 = vadd.f32 %v2030_v6, %v2024_v22  ;;  %v5191_v59 = vld [vmem:[#allocation72_spill] sm:$0xff] }
 0x1b1   :  { %5164 = vst [vmem:[#allocation31_spill] sm:$0xff] %v4222_v31 }
 0x1b2   :  { %5166 = vst [vmem:[#allocation47_spill] sm:$0xff] %v4227_v42 }
 0x1b3   :  { %5167 = vst [vmem:[#allocation19_spill] sm:$0xff] %v4229_v18 }
 0x1b4   :  { %5169 = vst [vmem:[#allocation104_spill] sm:$0xff] %v4233_v5  ;;  %v5188_v5 = vld [vmem:[#allocation84_spill] sm:$0xff] }
 0x1b5   :  { %5171 = vst [vmem:[#allocation44_spill] sm:$0xff] %v4237_v51  ;;  %v1623_v51 = vadd.f32 %v5185_v11, %v5184_v23  ;;  %v1809_v23 = vmul.f32 %v5168_v62, %v4253_v2  ;;  %v4288_v11 = vadd.f32 %v2038_v1, %v2032_v10  ;;  %v5200_v1 = vld [vmem:[#allocation88_spill] sm:$0xff]  ;;  %v1895_v10 = vmul.f32 %v5170_v15, %v4253_v2 }
 0x1b6   :  { %5172 = vst [vmem:[#allocation105_spill] sm:$0xff] %v4239_v47  ;;  %v1531_v47 = vmul.f32 %v5157_v29, %v4253_v2  ;;  %v1949_v15 = vmul.f32 %v4110_v58, %v5197_v63 }
 0x1b7   :  { %5174 = vst [vmem:[#allocation106_spill] sm:$0xff] %v4247_v33  ;;  %v2116_v33 = vmul.f32 %v5181_v16, %v5165_v53  ;;  %v1631_v31 = vadd.f32 %v5190_v30, %v1623_v51  ;;  %v5198_v51 = vld [vmem:[#allocation92_spill] sm:$0xff] }
 0x1b8   :  { %5176 = vst [vmem:[#allocation25_spill] sm:$0xff] %v4251_v0  ;;  %v5192_v0 = vld [vmem:[#allocation87_spill] sm:$0xff]  ;;  %v4290_v6 = vadd.f32 %v1531_v47, %v1525_v3  ;;  %v1941_v3 = vmul.f32 %v4095_v45, %v5160_v38  ;;  %v5215_v45 = vld [vmem:[#allocation65_spill] sm:$0xff] }
 0x1b9   :  { %5180 = vst [vmem:[#allocation32_spill] sm:$0xff] %v4262_v50  ;;  %v5187_v50 = vld [vmem:[#allocation71_spill] sm:$0xff]  ;;  %v4281_v34 = vadd.f32 %v2116_v33, %v2110_v52  ;;  %v1795_v24 = vadd.f32 %v5192_v0, %v5191_v59  ;;  %v2035_v33 = vmul.f32 %v4178_v49, %v5197_v63  ;;  %v4297_v52 = vadd.f32 %v1637_v7, %v1631_v31  ;;  %v5199_v59 = vld [vmem:[#allocation12_spill] sm:$0xff] }
 0x1ba   :  { %v1709_v53 = vadd.f32 %v5188_v5, %v5187_v50  ;;  %5193 = vst [vmem:[#allocation26_spill] sm:$0xff] %v4288_v11  ;;  %v5195_v5 = vld [vmem:[#allocation94_spill] sm:$0xff]  ;;  %v1937_v0 = vmul.f32 %v5157_v29, %v5199_v59  ;;  %v5201_v7 = vld [vmem:[#allocation20_spill] sm:$0xff]  ;;  %v4316_v29 = vmul.f32 %v4188_v20, %v4167_v14  ;;  %v2059_v62 = vmul.f32 %v4186_v55, %v5215_v45 }
 0x1bb   :  { %5189 = vst [vmem:[#allocation48_spill] sm:$0xff] %v4281_v34  ;;  %v5196_v50 = vld [vmem:[#allocation70_spill] sm:$0xff]  ;;  %v1803_v30 = vadd.f32 %v5198_v51, %v1795_v24  ;;  %v1945_v24 = vmul.f32 %v5161_v35, %v5201_v7  ;;  %v5206_v35 = vld [vmem:[#allocation29_spill] sm:$0xff]  ;;  %v4332_v51 = vmul.f32 %v5175_v19, %v4241_v8 }
 0x1bc   :  { %v1717_v22 = vadd.f32 %v5194_v54, %v1709_v53  ;;  %v1873_v13 = vadd.f32 %v5196_v50, %v5195_v5  ;;  %v2037_v53 = vadd.f32 %v2035_v33, %v2029_v44  ;;  %v1939_v31 = vadd.f32 %v1937_v0, %v4253_v2  ;;  %5202 = vst [vmem:[#allocation34_spill] sm:$0xff] %v4316_v29  ;;  %v5205_v50 = vld [vmem:[#allocation15_spill] sm:$0xff] }
 0x1bd   :  { %v4309_v54 = vadd.f32 %v1809_v23, %v1803_v30  ;;  %v1943_v5 = vadd.f32 %v1941_v3, %v4145_v27  ;;  %v4324_v44 = vmul.f32 %v4227_v42, %v4167_v14  ;;  %v2043_v33 = vmul.f32 %v4181_v57, %v5206_v35 }
 0x1be   :  { %v4302_v34 = vadd.f32 %v1723_v28, %v1717_v22  ;;  %v1881_v47 = vadd.f32 %v5200_v1, %v1873_v13  ;;  %v5203_v28 = vld [vmem:[#allocation93_spill] sm:$0xff]  ;;  %v1947_v23 = vadd.f32 %v1945_v24, %v1939_v31  ;;  %v1953_v13 = vmul.f32 %v5163_v37, %v5205_v50  ;;  %v4344_v24 = vpop.f32.mrf.mxu0 }
 0x1bf   :  { %5204 = vst [vmem:[#allocation36_spill] sm:$0xff] %v4324_v44  ;;  %v1951_v0 = vadd.f32 %v1949_v15, %v1943_v5  ;;  %v1957_v1 = vmul.f32 %v4112_v39, %v5206_v35  ;;  %v4340_v14 = vmul.f32 %v5177_v4, %v4241_v8  ;;  %v2045_v3 = vadd.f32 %v2043_v33, %v2037_v53  ;;  %v5207_v37 = vld [vmem:[#allocation61_spill] sm:$0xff]  ;;  %v5209_v15 = vld [vmem:[#allocation51_spill] sm:$0xff]  ;;  %v506_v44 = vpop.f32.mrf.mxu3 }
 0x1c0   :  { %v1889_v22 = vadd.f32 %v5203_v28, %v1881_v47  ;;  %v1955_v47 = vadd.f32 %v1953_v13, %v1947_v23  ;;  %v2051_v31 = vmul.f32 %v4184_v40, %v5207_v37  ;;  %5208 = vst [vmem:[#allocation82_spill] sm:$0xff] %v4344_v24  ;;  %v4348_v28 = vmul.f32 %v5178_v56, %v4241_v8  ;;  %v5210_v53 = vld [vmem:[#allocation37_spill] sm:$0xff] }
 0x1c1   :  { %v2112_v5 = vmul.f32 %v4198_v61, %v5145_v21  ;;  %v4356_v23 = vmul.f32 %v5209_v15, %v4241_v8  ;;  %v4360_v13 = vmul.f32 %v5210_v53, %v4241_v8  ;;  %v5211_v33 = vld [vmem:[#allocation53_spill] sm:$0xff]  ;;  %v4377_v29 = vmul.f32 %v4229_v18, %v4241_v8 }
 0x1c2   :  { %v4334_v30 = vadd.f32 %v1895_v10, %v1889_v22  ;;  %v1959_v10 = vadd.f32 %v1957_v1, %v1951_v0  ;;  %v1965_v22 = vmul.f32 %v4114_v60, %v5207_v37  ;;  %v4363_v11 = vadd.f32 %v5211_v33, %v1955_v47 }
 0x1c3   :  { %v2053_v27 = vadd.f32 %v2051_v31, %v2045_v3  ;;  %v4367_v0 = vmul.f32 %v4120_v41, %v4241_v8  ;;  %v4371_v1 = vmul.f32 %v4190_v12, %v4241_v8  ;;  %5216 = vst [vmem:[#allocation71_spill] sm:$0xff] %v4377_v29  ;;  %v1973_v47 = vmul.f32 %v4116_v9, %v5215_v45  ;;  %v5218_v29 = vld [vmem:[#allocation13_spill] sm:$0xff] }
 0x1c4   :  { %5212 = vst [vmem:[#allocation45_spill] sm:$0xff] %v4363_v11  ;;  %v1967_v21 = vadd.f32 %v1965_v22, %v1959_v10  ;;  %v1981_v3 = vmul.f32 %v4118_v26, %v4253_v2  ;;  %v2023_v31 = vmul.f32 %v5175_v19, %v5199_v59  ;;  %v2067_v10 = vmul.f32 %v4188_v20, %v4253_v2 }
 0x1c5   :  { %5213 = vst [vmem:[#allocation83_spill] sm:$0xff] %v4367_v0  ;;  %v2061_v33 = vadd.f32 %v2059_v62, %v2053_v27  ;;  %v4389_v22 = vmul.f32 %v4227_v42, %v4253_v2  ;;  %v2114_v8 = vadd.f32 %v2112_v5, %v4344_v24  ;;  %v2031_v26 = vmul.f32 %v5177_v4, %v5201_v7 }
 0x1c6   :  { %5214 = vst [vmem:[#allocation89_spill] sm:$0xff] %v4371_v1  ;;  %v1975_v11 = vadd.f32 %v1973_v47, %v1967_v21  ;;  %v2120_v1 = vmul.f32 %v4206_v46, %v5218_v29  ;;  %v2025_v45 = vadd.f32 %v2023_v31, %v506_v44  ;;  %v1539_v55 = vmul.f32 %v5175_v19, %v506_v44 }
 0x1c7   :  { %5217 = vst [vmem:[#allocation84_spill] sm:$0xff] %v4389_v22  ;;  %v1645_v27 = vmul.f32 %v5177_v4, %v506_v44  ;;  %v1731_v62 = vmul.f32 %v5178_v56, %v506_v44  ;;  %v4400_v20 = vmul.f32 %v5209_v15, %v506_v44  ;;  %v4403_v2 = vmul.f32 %v5210_v53, %v506_v44  ;;  %v564_v15 = vpop.f32.mrf.mxu2 }
 0x1c8   :  { %v4406_v5 = vmul.f32 %v4120_v41, %v506_v44  ;;  %v2033_v21 = vadd.f32 %v2031_v26, %v2025_v45  ;;  %v2039_v47 = vmul.f32 %v5178_v56, %v5205_v50  ;;  %v4410_v31 = vadd.f32 %v2067_v10, %v2061_v33  ;;  %v5221_v41 = vld [vmem:[#allocation9_spill] sm:$0xff]  ;;  %v4427_v26 = vpop.f32.mrf.mxu0  ;;  %v4429_v56 = vpop.permute.xlu1 %1575 }
 0x1c9   :  { %v4412_v19 = vadd.f32 %v2120_v1, %v2114_v8  ;;  %v4415_v4 = vmul.f32 %v4190_v12, %v506_v44  ;;  %v4418_v24 = vmul.f32 %v4229_v18, %v506_v44  ;;  %v4420_v53 = vadd.f32 %v1981_v3, %v1975_v11  ;;  %5222 = vst [vmem:[#allocation87_spill] sm:$0xff] %v4427_v26  ;;  %v5227_v8 = vld [vmem:[#allocation103_spill] sm:$0xff] }
 0x1ca   :  { %v2041_v22 = vadd.f32 %v2039_v47, %v2033_v21  ;;  %v4423_v0 = vmax.f32 %v5221_v41, 0.0  ;;  %v2109_v45 = vmul.f32 %v5179_v43, %v5199_v59  ;;  %v4432_v1 = vmax.f32 %v4108_v36, 0.0  ;;  %v5224_v41 = vld [vmem:[#allocation54_spill] sm:$0xff] }
 0x1cb   :  { %5219 = vst [vmem:[#allocation90_spill] sm:$0xff] %v4412_v19  ;;  %v4435_v44 = vmax.f32 %v4175_v17, 0.0  ;;  %v4438_v11 = vmax.f32 %v4196_v48, 0.0  ;;  %v4441_v3 = vmax.f32 %v4202_v32, 0.0  ;;  %v4447_v59 = vmax.f32 %v4208_v25, 0.0 }
 0x1cc   :  { %5220 = vst [vmem:[#allocation72_spill] sm:$0xff] %v4418_v24  ;;  %v4444_v33 = vadd.f32 %v5224_v41, %v2041_v22  ;;  %v2111_v10 = vadd.f32 %v2109_v45, %v564_v15  ;;  %v2117_v36 = vmul.f32 %v5181_v16, %v5201_v7  ;;  %v4452_v21 = vmax.f32 %v5227_v8, 0.0  ;;  %v5231_v8 = vld [vmem:[#allocation52_spill] sm:$0xff]  ;;  %v5234_v24 = vld [vmem:[#allocation55_spill] sm:$0xff] }
 0x1cd   :  { %5223 = vst [vmem:[#allocation91_spill] sm:$0xff] %v4441_v3  ;;  %v4456_v17 = vmul.f32 %v4438_v11, %v4427_v26  ;;  %v4460_v48 = vmul.f32 %v4441_v3, %v4427_v26  ;;  %v4464_v32 = vmul.f32 %v4227_v42, %v4427_v26  ;;  %v1547_v25 = vmul.f32 %v5179_v43, %v564_v15 }
 0x1ce   :  { %5225 = vst [vmem:[#allocation94_spill] sm:$0xff] %v4444_v33  ;;  %v2119_v22 = vadd.f32 %v2117_v36, %v2111_v10  ;;  %v2125_v7 = vmul.f32 %v4423_v0, %v5205_v50  ;;  %v2113_v47 = vmul.f32 %v4198_v61, %v5160_v38  ;;  %v1653_v45 = vmul.f32 %v5181_v16, %v564_v15  ;;  %v5232_v33 = vld [vmem:[#allocation58_spill] sm:$0xff] }
 0x1cf   :  { %5226 = vst [vmem:[#allocation70_spill] sm:$0xff] %v4447_v59  ;;  %v1739_v41 = vmul.f32 %v4423_v0, %v564_v15  ;;  %v1825_v12 = vmul.f32 %v5231_v8, %v564_v15  ;;  %v4476_v42 = vmul.f32 %v4432_v1, %v564_v15  ;;  %v2121_v36 = vmul.f32 %v4206_v46, %v5197_v63  ;;  %v5237_v46 = vld [vmem:[#allocation25_spill] sm:$0xff] }
 0x1d0   :  { %5228 = vst [vmem:[#allocation17_spill] sm:$0xff] %v4456_v17  ;;  %v2115_v10 = vadd.f32 %v2113_v47, %v4427_v26  ;;  %v4482_v17 = vmul.f32 %v4435_v44, %v564_v15  ;;  %v4485_v38 = vmul.f32 %v4447_v59, %v564_v15  ;;  %v2129_v18 = vmul.f32 %v4438_v11, %v5206_v35  ;;  %v5236_v47 = vld [vmem:[#allocation24_spill] sm:$0xff] }
 0x1d1   :  { %5229 = vst [vmem:[#allocation92_spill] sm:$0xff] %v4460_v48  ;;  %v1911_v48 = vmul.f32 %v5232_v33, %v564_v15  ;;  %v2137_v61 = vmul.f32 %v4452_v21, %v5207_v37  ;;  %v1541_v63 = vadd.f32 %v1539_v55, %v4290_v6  ;;  %v1546_v3 = vmul.f32 %v5179_v43, %v5237_v46  ;;  %v5238_v15 = vld [vmem:[#allocation30_spill] sm:$0xff] }
 0x1d2   :  { %5230 = vst [vmem:[#allocation12_spill] sm:$0xff] %v4464_v32  ;;  %v2127_v32 = vadd.f32 %v2125_v7, %v2119_v22  ;;  %v2123_v22 = vadd.f32 %v2121_v36, %v2115_v10  ;;  %v5235_v7 = vld [vmem:[#allocation23_spill] sm:$0xff]  ;;  %v1647_v35 = vadd.f32 %v1645_v27, %v4297_v52  ;;  %v1652_v37 = vmul.f32 %v5181_v16, %v5237_v46  ;;  %v5240_v10 = vld [vmem:[#allocation56_spill] sm:$0xff] }
 0x1d3   :  { %5233 = vst [vmem:[#allocation88_spill] sm:$0xff] %v4485_v38  ;;  %v1532_v26 = vadd.f32 %v5236_v47, %v5235_v7  ;;  %v5239_v38 = vld [vmem:[#allocation41_spill] sm:$0xff]  ;;  %v5241_v36 = vld [vmem:[#allocation31_spill] sm:$0xff]  ;;  %v4507_v47 = vpop.permute.xlu1 %1580  ;;  %v1733_v6 = vadd.f32 %v1731_v62, %v4302_v34  ;;  %v1738_v52 = vmul.f32 %v4423_v0, %v5237_v46  ;;  %v1819_v34 = vadd.f32 %v4400_v20, %v4309_v54 }
 0x1d4   :  { %v4492_v50 = vadd.f32 %v5234_v24, %v2127_v32  ;;  %v1638_v59 = vadd.f32 %v5239_v38, %v5238_v15  ;;  %v2131_v19 = vadd.f32 %v2129_v18, %v2123_v22  ;;  %v1549_v32 = vadd.f32 %v1547_v25, %v1541_v63  ;;  %v5242_v22 = vld [vmem:[#allocation57_spill] sm:$0xff]  ;;  %v5243_v63 = vld [vmem:[#allocation104_spill] sm:$0xff] }
 0x1d5   :  { %v1540_v24 = vadd.f32 %v4332_v51, %v1532_v26  ;;  %v1724_v7 = vadd.f32 %v5241_v36, %v5240_v10  ;;  %v1655_v43 = vadd.f32 %v1653_v45, %v1647_v35  ;;  %v1741_v38 = vadd.f32 %v1739_v41, %v1733_v6  ;;  %v5245_v36 = vld [vmem:[#allocation68_spill] sm:$0xff] }
 0x1d6   :  { %v1646_v55 = vadd.f32 %v4340_v14, %v1638_v59  ;;  %v4513_v27 = vadd.f32 %v2137_v61, %v2131_v19  ;;  %v1553_v18 = vmax.f32 %v1549_v32, 0.0  ;;  %v1810_v15 = vadd.f32 %v5243_v63, %v5242_v22  ;;  %v5244_v32 = vld [vmem:[#allocation86_spill] sm:$0xff]  ;;  %v5247_v63 = vld [vmem:[#allocation44_spill] sm:$0xff] }
 0x1d7   :  { %v1548_v16 = vadd.f32 %v1546_v3, %v1540_v24  ;;  %v1732_v51 = vadd.f32 %v4348_v28, %v1724_v7  ;;  %v1659_v25 = vmax.f32 %v1655_v43, 0.0  ;;  %v1745_v19 = vmax.f32 %v1741_v38, 0.0 }
 0x1d8   :  { %v1654_v26 = vadd.f32 %v1652_v37, %v1646_v55  ;;  %v1584_v14 = vmul.f32 %v4507_v47, %v1553_v18  ;;  %v1818_v3 = vadd.f32 %v4356_v23, %v1810_v15  ;;  %v1824_v41 = vmul.f32 %v5231_v8, %v5237_v46  ;;  %v5248_v15 = vld [vmem:[#allocation46_spill] sm:$0xff] }
 0x1d9   :  { %v1552_v10 = vmax.f32 %v1548_v16, 0.0  ;;  %v1740_v59 = vadd.f32 %v1738_v52, %v1732_v51  ;;  %v1670_v61 = vmul.f32 %v1659_v25, %v4507_v47  ;;  %v1827_v35 = vadd.f32 %v1825_v12, %v1819_v34  ;;  %v5246_v52 = vld [vmem:[#allocation69_spill] sm:$0xff] }
 0x1da   :  { %v1658_v62 = vmax.f32 %v1654_v26, 0.0  ;;  %v1756_v24 = vmul.f32 %v1745_v19, %v4507_v47  ;;  %v1880_v20 = vadd.f32 %v5245_v36, %v5244_v32  ;;  %v1905_v54 = vadd.f32 %v4403_v2, %v4334_v30  ;;  %v5251_v36 = vld [vmem:[#allocation28_spill] sm:$0xff] }
 0x1db   :  { %v1583_v28 = vmul.f32 %v4429_v56, %v1552_v10  ;;  %v1744_v45 = vmax.f32 %v1740_v59, 0.0  ;;  %v1826_v55 = vadd.f32 %v1824_v41, %v1818_v3  ;;  %v1831_v43 = vmax.f32 %v1827_v35, 0.0  ;;  %v5249_v10 = vld [vmem:[#allocation33_spill] sm:$0xff]  ;;  %v5250_v3 = vld [vmem:[#allocation50_spill] sm:$0xff] }
 0x1dc   :  { %v1669_v37 = vmul.f32 %v1658_v62, %v4429_v56  ;;  %v1888_v16 = vadd.f32 %v5246_v52, %v1880_v20  ;;  %v1910_v12 = vmul.f32 %v5232_v33, %v5237_v46  ;;  %v1913_v18 = vadd.f32 %v1911_v48, %v1905_v54  ;;  %v5252_v54 = vld [vmem:[#allocation22_spill] sm:$0xff] }
 0x1dd   :  { %v1585_v7 = vadd.f32 %v1584_v14, %v1583_v28  ;;  %v1755_v23 = vmul.f32 %v1744_v45, %v4429_v56  ;;  %v1830_v25 = vmax.f32 %v1826_v55, 0.0  ;;  %v1842_v38 = vmul.f32 %v1831_v43, %v4507_v47 }
 0x1de   :  { %v1671_v6 = vadd.f32 %v1670_v61, %v1669_v37  ;;  %v1896_v30 = vadd.f32 %v5247_v63, %v1888_v16  ;;  %v1917_v2 = vmax.f32 %v1913_v18, 0.0  ;;  %v1942_v14 = vadd.f32 %v5249_v10, %v5248_v15 }
 0x1df   :  { %v1586_v51 = vrot.slane %v1585_v7, 4  ;;  %v1757_v26 = vadd.f32 %v1756_v24, %v1755_v23  ;;  %v1841_v62 = vmul.f32 %v1830_v25, %v4429_v56  ;;  %v1948_v33 = vmul.f32 %v4110_v58, %v5218_v29 }
 0x1e0   :  { %v1672_v22 = vrot.slane %v1671_v6, 4  ;;  %v1904_v61 = vadd.f32 %v4360_v13, %v1896_v30  ;;  %v1928_v19 = vmul.f32 %v1917_v2, %v4507_v47  ;;  %v1956_v28 = vmul.f32 %v4112_v39, %v5250_v3  ;;  %v5253_v30 = vld [vmem:[#allocation96_spill] sm:$0xff]  ;;  %v5254_v2 = vld [vmem:[#allocation101_spill] sm:$0xff] }
 0x1e1   :  { %v1587_v59 = vadd.f32 %v1586_v51, %v1585_v7  ;;  %v1758_v34 = vrot.slane %v1757_v26, 4  ;;  %v1843_v35 = vadd.f32 %v1842_v38, %v1841_v62  ;;  %v1950_v37 = vadd.f32 %v1948_v33, %v1942_v14 }
 0x1e2   :  { %v1673_v48 = vadd.f32 %v1672_v22, %v1671_v6  ;;  %v1912_v32 = vadd.f32 %v1910_v12, %v1904_v61  ;;  %v1964_v20 = vmul.f32 %v4114_v60, %v5251_v36  ;;  %v1972_v7 = vmul.f32 %v4116_v9, %v5252_v54 }
 0x1e3   :  { %v1588_v45 = vrot.slane %v1587_v59, 2  ;;  %v1759_v41 = vadd.f32 %v1758_v34, %v1757_v26  ;;  %v1844_v13 = vrot.slane %v1843_v35, 4  ;;  %v1958_v43 = vadd.f32 %v1956_v28, %v1950_v37 }
 0x1e4   :  { %v1674_v24 = vrot.slane %v1673_v48, 2  ;;  %v1916_v52 = vmax.f32 %v1912_v32, 0.0  ;;  %v1991_v16 = vadd.f32 %v4406_v5, %v4420_v53  ;;  %v1996_v18 = vmul.f32 %v4432_v1, %v5237_v46 }
 0x1e5   :  { %v1589_v23 = vadd.f32 %v1588_v45, %v1587_v59  ;;  %v1760_v55 = vrot.slane %v1759_v41, 2  ;;  %v1845_v26 = vadd.f32 %v1844_v13, %v1843_v35  ;;  %v1966_v25 = vadd.f32 %v1964_v20, %v1958_v43  ;;  %v5255_v45 = vld [vmem:[#allocation106_spill] sm:$0xff]  ;;  %v5256_v20 = vld [vmem:[#allocation83_spill] sm:$0xff] }
 0x1e6   :  { %v1675_v6 = vadd.f32 %v1674_v24, %v1673_v48  ;;  %v1927_v22 = vmul.f32 %v1916_v52, %v4429_v56  ;;  %v1999_v63 = vadd.f32 %v4476_v42, %v1991_v16  ;;  %v2028_v10 = vadd.f32 %v5254_v2, %v5253_v30 }
 0x1e7   :  { %v1590_v12 = vrot.slane %v1589_v23, 1  ;;  %v1761_v51 = vadd.f32 %v1760_v55, %v1759_v41  ;;  %v1846_v53 = vrot.slane %v1845_v26, 2  ;;  %v1974_v59 = vadd.f32 %v1972_v7, %v1966_v25 }
 0x1e8   :  { %v1676_v38 = vrot.slane %v1675_v6, 1  ;;  %v1929_v62 = vadd.f32 %v1928_v19, %v1927_v22  ;;  %v2003_v33 = vmax.f32 %v1999_v63, 0.0  ;;  %v2034_v48 = vmul.f32 %v4178_v49, %v5218_v29  ;;  %v5257_v29 = vld [vmem:[#allocation98_spill] sm:$0xff] }
 0x1e9   :  { %v1591_v14 = vadd.f32 %v1590_v12, %v1589_v23  ;;  %v1762_v5 = vrot.slane %v1761_v51, 1  ;;  %v1847_v28 = vadd.f32 %v1846_v53, %v1845_v26  ;;  %v1982_v41 = vadd.f32 %v5255_v45, %v1974_v59  ;;  %v5258_v22 = vld [vmem:[#allocation90_spill] sm:$0xff] }
 0x1ea   :  { %v1677_v34 = vadd.f32 %v1676_v38, %v1675_v6  ;;  %v2042_v42 = vmul.f32 %v4181_v57, %v5250_v3  ;;  %v1930_v35 = vrot.slane %v1929_v62, 4  ;;  %v2014_v37 = vmul.f32 %v2003_v33, %v4507_v47 }
 0x1eb   :  { %v1763_v61 = vadd.f32 %v1762_v5, %v1761_v51  ;;  %v2036_v24 = vadd.f32 %v2034_v48, %v2028_v10  ;;  %v2050_v32 = vmul.f32 %v4184_v40, %v5251_v36  ;;  %v1848_v19 = vrot.slane %v1847_v28, 1  ;;  %v5260_v5 = vld [vmem:[#allocation65_spill] sm:$0xff] }
 0x1ec   :  { %v1990_v7 = vadd.f32 %v5256_v20, %v1982_v41  ;;  %v2058_v23 = vmul.f32 %v5257_v29, %v5252_v54  ;;  %v2077_v55 = vadd.f32 %v4415_v4, %v4410_v31  ;;  %v1931_v13 = vadd.f32 %v1930_v35, %v1929_v62  ;;  %v5259_v31 = vld [vmem:[#allocation91_spill] sm:$0xff]  ;;  %v5262_v41 = vld [vmem:[#allocation34_spill] sm:$0xff] }
 0x1ed   :  { %v2044_v43 = vadd.f32 %v2042_v42, %v2036_v24  ;;  %v2082_v6 = vmul.f32 %v4435_v44, %v5237_v46  ;;  %v2128_v52 = vmul.f32 %v4438_v11, %v5250_v3  ;;  %v1849_v16 = vadd.f32 %v1848_v19, %v1847_v28  ;;  %v5261_v3 = vld [vmem:[#allocation70_spill] sm:$0xff]  ;;  %v5264_v20 = vld [vmem:[#allocation15_spill] sm:$0xff] }
 0x1ee   :  { %v1998_v12 = vadd.f32 %v1996_v18, %v1990_v7  ;;  %v2085_v51 = vadd.f32 %v4482_v17, %v2077_v55  ;;  %v2136_v26 = vmul.f32 %v4452_v21, %v5251_v36  ;;  %v1932_v25 = vrot.slane %v1931_v13, 2  ;;  %v5265_v7 = vld [vmem:[#allocation6_spill] sm:$0xff] }
 0x1ef   :  { %v2052_v38 = vadd.f32 %v2050_v32, %v2044_v43  ;;  %v2130_v63 = vadd.f32 %v2128_v52, %v5258_v22  ;;  %v2144_v4 = vmul.f32 %v5259_v31, %v5252_v54  ;;  %v2145_v53 = vmul.f32 %v5259_v31, %v5260_v5  ;;  %v5263_v32 = vld [vmem:[#allocation84_spill] sm:$0xff]  ;;  %v5269_v52 = vld [vmem:[#allocation3_spill] sm:$0xff] }
 0x1f0   :  { %v2002_v2 = vmax.f32 %v1998_v12, 0.0  ;;  %v2089_v10 = vmax.f32 %v2085_v51, 0.0  ;;  %v2168_v18 = vmul.f32 %v5261_v3, %v5237_v46  ;;  %v1933_v59 = vadd.f32 %v1932_v25, %v1931_v13  ;;  %v5267_v13 = vld [vmem:[#allocation89_spill] sm:$0xff]  ;;  %v5268_v43 = vld [vmem:[#allocation36_spill] sm:$0xff]  ;;  %v5274_v5 = vld [vmem:[#allocation59_spill] sm:$0xff] }
 0x1f1   :  { %v2060_v17 = vadd.f32 %v2058_v23, %v2052_v38  ;;  %v2138_v62 = vadd.f32 %v2136_v26, %v2130_v63  ;;  %v2208_v36 = vsel %vm2194_vm1, %v1591_v14, %v1677_v34  ;;  %v2147_v28 = vadd.f32 %v2145_v53, %v4513_v27  ;;  %v5266_v34 = vld [vmem:[#allocation8_spill] sm:$0xff]  ;;  %v5272_v38 = vld [vmem:[#allocation35_spill] sm:$0xff] }
 0x1f2   :  { %v2013_v33 = vmul.f32 %v2002_v2, %v4429_v56  ;;  %v2100_v48 = vmul.f32 %v2089_v10, %v4507_v47  ;;  %v2209_v54 = vsel %vm2196_vm2, %v2208_v36, %v1763_v61  ;;  %v1934_v45 = vrot.slane %v1933_v59, 1  ;;  %v5270_v26 = vld [vmem:[#allocation72_spill] sm:$0xff] }
 0x1f3   :  { %v2068_v42 = vadd.f32 %v5262_v41, %v2060_v17  ;;  %v2146_v35 = vadd.f32 %v2144_v4, %v2138_v62  ;;  %v2210_v24 = vsel %vm2198_vm3, %v2209_v54, %v1849_v16  ;;  %v2155_v19 = vadd.f32 %v5263_v32, %v2147_v28  ;;  %v5273_v4 = vld [vmem:[#allocation71_spill] sm:$0xff]  ;;  %v5275_v17 = vld [vmem:[#allocation88_spill] sm:$0xff]  ;;  %v5277_v28 = vld [vmem:[#allocation14_spill] sm:$0xff] }
 0x1f4   :  { %v2015_v46 = vadd.f32 %v2014_v37, %v2013_v33  ;;  %v1503_v14 = vmul.f32 %v5265_v7, %v5264_v20  ;;  %v1609_v23 = vmul.f32 %v5266_v34, %v5264_v20  ;;  %v1935_v55 = vadd.f32 %v1934_v45, %v1933_v59  ;;  %v5271_v37 = vld [vmem:[#allocation2_spill] sm:$0xff]  ;;  %v5276_v36 = vld [vmem:[#allocation16_spill] sm:$0xff]  ;;  %v5279_v32 = vld [vmem:[#allocation5_spill] sm:$0xff] }
 0x1f5   :  { %v2076_v27 = vadd.f32 %v5267_v13, %v2068_v42  ;;  %v2154_v61 = vadd.f32 %v5268_v43, %v2146_v35  ;;  %v1695_v12 = vmul.f32 %v5269_v52, %v5264_v20  ;;  %v2163_v16 = vadd.f32 %v5270_v26, %v2155_v19  ;;  %v5278_v42 = vld [vmem:[#allocation18_spill] sm:$0xff]  ;;  %v5281_v34 = vld [vmem:[#allocation75_spill] sm:$0xff]  ;;  %v5282_v13 = vld [vmem:[#allocation76_spill] sm:$0xff] }
 0x1f6   :  { %v2016_v51 = vrot.slane %v2015_v46, 4  ;;  %v1505_v25 = vadd.f32 %v1503_v14, %v5271_v37  ;;  %v1611_v22 = vadd.f32 %v1609_v23, %v5272_v38  ;;  %v2211_v10 = vsel %vm2200_vm4, %v2210_v24, %v1935_v55  ;;  %v5280_v14 = vld [vmem:[#allocation74_spill] sm:$0xff]  ;;  %v5283_v43 = vld [vmem:[#allocation73_spill] sm:$0xff]  ;;  %v5285_v37 = vld [vmem:[#allocation39_spill] sm:$0xff] }
 0x1f7   :  { %v2084_v63 = vadd.f32 %v2082_v6, %v2076_v27  ;;  %v2162_v2 = vadd.f32 %v5273_v4, %v2154_v61  ;;  %v1697_v53 = vadd.f32 %v1695_v12, %v5274_v5  ;;  %v2171_v62 = vadd.f32 %v5275_v17, %v2163_v16  ;;  %v5284_v12 = vld [vmem:[#allocation7_spill] sm:$0xff]  ;;  %v5287_v5 = vld [vmem:[#allocation77_spill] sm:$0xff] }
 0x1f8   :  { %v2017_v59 = vadd.f32 %v2016_v51, %v2015_v46  ;;  %v1513_v33 = vadd.f32 %v5276_v36, %v1505_v25  ;;  %v1619_v54 = vadd.f32 %v5277_v28, %v1611_v22  ;;  %v1781_v6 = vmul.f32 %v5279_v32, %v5264_v20  ;;  %v5286_v22 = vld [vmem:[#allocation85_spill] sm:$0xff]  ;;  %v5288_v17 = vld [vmem:[#allocation87_spill] sm:$0xff] }
 0x1f9   :  { %v2088_v45 = vmax.f32 %v2084_v63, 0.0  ;;  %v2170_v41 = vadd.f32 %v2168_v18, %v2162_v2  ;;  %v1705_v35 = vadd.f32 %v5278_v42, %v1697_v53  ;;  %v2175_v7 = vmax.f32 %v2171_v62, 0.0  ;;  %v5293_v42 = vld [vmem:[#allocation78_spill] sm:$0xff] }
 0x1fa   :  { %v2018_v19 = vrot.slane %v2017_v59, 2  ;;  %v1521_v24 = vadd.f32 %v5280_v14, %v1513_v33  ;;  %v1627_v23 = vadd.f32 %v5281_v34, %v1619_v54  ;;  %v1783_v61 = vadd.f32 %v1781_v6, %v5283_v43  ;;  %v5292_v54 = vld [vmem:[#allocation19_spill] sm:$0xff]  ;;  %v5296_v34 = vld [vmem:[#allocation42_spill] sm:$0xff] }
 0x1fb   :  { %v2099_v46 = vmul.f32 %v2088_v45, %v4429_v56  ;;  %v2174_v55 = vmax.f32 %v2170_v41, 0.0  ;;  %v1713_v27 = vadd.f32 %v5282_v13, %v1705_v35  ;;  %v2186_v18 = vmul.f32 %v2175_v7, %v4507_v47  ;;  %v5290_v47 = vld [vmem:[#allocation40_spill] sm:$0xff]  ;;  %v5295_v7 = vld [vmem:[#allocation49_spill] sm:$0xff] }
 0x1fc   :  { %v2019_v52 = vadd.f32 %v2018_v19, %v2017_v59  ;;  %v1867_v51 = vmul.f32 %v5284_v12, %v5264_v20  ;;  %v1791_v25 = vadd.f32 %v5285_v37, %v1783_v61  ;;  %v5289_v59 = vld [vmem:[#allocation102_spill] sm:$0xff]  ;;  %v5291_v20 = vld [vmem:[#allocation11_spill] sm:$0xff]  ;;  %v4639_v45 = vmul.f32 %v5292_v54, %v5288_v17  ;;  %v5294_v19 = vld [vmem:[#allocation4_spill] sm:$0xff] }
 0x1fd   :  { %v2101_v26 = vadd.f32 %v2100_v48, %v2099_v46  ;;  %v2185_v16 = vmul.f32 %v2174_v55, %v4429_v56  ;;  %v1543_v62 = vmul.f32 %v5289_v59, %v5288_v17  ;;  %v1649_v48 = vmul.f32 %v5291_v20, %v5288_v17  ;;  %v5297_v55 = vld [vmem:[#allocation95_spill] sm:$0xff]  ;;  %v5298_v37 = vld [vmem:[#allocation38_spill] sm:$0xff] }
 0x1fe   :  { %v2020_v38 = vrot.slane %v2019_v52, 1  ;;  %v1869_v63 = vadd.f32 %v1867_v51, %v5286_v22  ;;  %v4626_v53 = vadd.f32 %v5287_v5, %v1791_v25  ;;  %v4635_v56 = vmul.f32 %v4452_v21, %v5288_v17  ;;  %v5301_v5 = vld [vmem:[#allocation27_spill] sm:$0xff] }
 0x1ff   :  { %v2102_v4 = vrot.slane %v2101_v26, 4  ;;  %v2187_v2 = vadd.f32 %v2186_v18, %v2185_v16  ;;  %v1960_v14 = vmul.f32 %v5295_v7, %v5294_v19  ;;  %v1526_v46 = vmul.f32 %v5296_v34, %v5248_v15 }
 0x200   :  { %v1877_v36 = vadd.f32 %v5290_v47, %v1869_v63  ;;  %v2021_v41 = vadd.f32 %v2020_v38, %v2019_v52  ;;  %v1527_v13 = vmul.f32 %v5296_v34, %v5297_v55  ;;  %v1632_v43 = vmul.f32 %v4110_v58, %v5248_v15  ;;  %v4654_v52 = vpop.permute.xlu0 %1556  ;;  %v5299_v38 = vld [vmem:[#allocation51_spill] sm:$0xff]  ;;  %v5300_v63 = vld [vmem:[#allocation21_spill] sm:$0xff] }
 0x201   :  { %v2103_v33 = vadd.f32 %v2102_v4, %v2101_v26  ;;  %v2188_v28 = vrot.slane %v2187_v2, 4  ;;  %v1633_v61 = vmul.f32 %v4110_v58, %v5297_v55  ;;  %v1718_v51 = vmul.f32 %v4112_v39, %v5248_v15 }
 0x202   :  { %v4642_v35 = vadd.f32 %v5293_v42, %v1877_v36  ;;  %v1719_v26 = vmul.f32 %v4112_v39, %v5297_v55  ;;  %v2212_v16 = vsel %vm2202_vm5, %v2211_v10, %v2021_v41  ;;  %v1528_v25 = vadd.f32 %v1526_v46, %v5298_v37  ;;  %v5303_v10 = vld [vmem:[#allocation32_spill] sm:$0xff] }
 0x203   :  { %v2104_v32 = vrot.slane %v2103_v33, 2  ;;  %v2189_v6 = vadd.f32 %v2188_v28, %v2187_v2  ;;  %v4664_v22 = vmul.f32 %v5299_v38, %v5294_v19  ;;  %v4668_v58 = vmul.f32 %v4423_v0, %v5300_v63  ;;  %v5302_v28 = vld [vmem:[#allocation66_spill] sm:$0xff] }
 0x204   :  { %v1720_v47 = vadd.f32 %v1718_v51, %v5301_v5  ;;  %v1721_v36 = vadd.f32 %v1719_v26, %v1713_v27  ;;  %v1634_v39 = vadd.f32 %v1632_v43, %v5302_v28  ;;  %v1635_v42 = vadd.f32 %v1633_v61, %v1627_v23  ;;  %v5306_v27 = vld [vmem:[#allocation82_spill] sm:$0xff] }
 0x205   :  { %v2105_v18 = vadd.f32 %v2104_v32, %v2103_v33  ;;  %v2190_v12 = vrot.slane %v2189_v6, 2  ;;  %v1529_v33 = vadd.f32 %v1527_v13, %v1521_v24  ;;  %v4673_v41 = vadd.f32 %v1960_v14, %v5303_v10 }
 0x206   :  { %v1804_v34 = vmul.f32 %v4114_v60, %v5248_v15  ;;  %v1805_v0 = vmul.f32 %v4114_v60, %v5297_v55  ;;  %v1542_v23 = vmul.f32 %v5289_v59, %v5306_v27  ;;  %v1640_v14 = vmul.f32 %v4178_v49, %v5253_v30 }
 0x207   :  { %v2106_v4 = vrot.slane %v2105_v18, 1  ;;  %v2191_v2 = vadd.f32 %v2190_v12, %v2189_v6  ;;  %v5304_v6 = vld [vmem:[#allocation97_spill] sm:$0xff]  ;;  %v1648_v60 = vmul.f32 %v5291_v20, %v5306_v27  ;;  %v1726_v37 = vmul.f32 %v4181_v57, %v5253_v30 }
 0x208   :  { %v1534_v46 = vmul.f32 %v5304_v6, %v5253_v30  ;;  %v5305_v12 = vld [vmem:[#allocation105_spill] sm:$0xff]  ;;  %v1642_v26 = vadd.f32 %v1640_v14, %v1634_v39  ;;  %v4699_v20 = vpop.permute.xlu0 %1561  ;;  %v5307_v39 = vld [vmem:[#allocation62_spill] sm:$0xff] }
 0x209   :  { %v2107_v32 = vadd.f32 %v2106_v4, %v2105_v18  ;;  %v2192_v7 = vrot.slane %v2191_v2, 1  ;;  %v1535_v24 = vmul.f32 %v5304_v6, %v5305_v12  ;;  %v1641_v61 = vmul.f32 %v4178_v49, %v5305_v12 }
 0x20a   :  { %v1536_v18 = vadd.f32 %v1534_v46, %v1528_v25  ;;  %v1727_v63 = vmul.f32 %v4181_v57, %v5305_v12  ;;  %v1650_v5 = vadd.f32 %v1648_v60, %v1642_v26  ;;  %v1806_v10 = vadd.f32 %v1804_v34, %v5307_v39 }
 0x20b   :  { %v2193_v13 = vadd.f32 %v2192_v7, %v2191_v2  ;;  %v2213_v43 = vsel %vm2204_vm6, %v2212_v16, %v2107_v32  ;;  %v1537_v51 = vadd.f32 %v1535_v24, %v1529_v33  ;;  %v1643_v38 = vadd.f32 %v1641_v61, %v1635_v42  ;;  %v5308_v24 = vld [vmem:[#allocation17_spill] sm:$0xff] }
 0x20c   :  { %v1734_v16 = vmul.f32 %v4438_v11, %v5306_v27  ;;  %v1544_v49 = vadd.f32 %v1542_v23, %v1536_v18  ;;  %v1728_v33 = vadd.f32 %v1726_v37, %v1720_v47  ;;  %v1729_v28 = vadd.f32 %v1727_v63, %v1721_v36 }
 0x20d   :  { %v2214_v59 = vsel %vm2206_vm7, %v2213_v43, %v2193_v13  ;;  %v1545_v2 = vadd.f32 %v1543_v62, %v1537_v51  ;;  %v1651_v25 = vadd.f32 %v1649_v48, %v1643_v38  ;;  %v1656_v6 = vmax.f32 %v1650_v5, 0.0 }
 0x20e   :  { %v2233_v4 = vrot.slane %v2214_v59, 4  ;;  %v1550_v7 = vmax.f32 %v1544_v49, 0.0  ;;  %v1736_v57 = vadd.f32 %v1734_v16, %v1728_v33  ;;  %v1737_v14 = vadd.f32 %v5308_v24, %v1729_v28  ;;  %v5309_v28 = vld [vmem:[#allocation67_spill] sm:$0xff] }
 0x20f   :  { %v1551_v42 = vmax.f32 %v1545_v2, 0.0  ;;  %v1657_v46 = vmax.f32 %v1651_v25, 0.0  ;;  %v1807_v11 = vadd.f32 %v1805_v0, %v4626_v53  ;;  %v1660_v48 = vmul.f32 %v1656_v6, %v4654_v52 }
 0x210   :  { %v2234_v32 = vmax.f32 %v2214_v59, %v2233_v4  ;;  %v1564_v62 = vmul.f32 %v4654_v52, %v1550_v7  ;;  %v1742_v36 = vmax.f32 %v1736_v57, 0.0  ;;  %v1743_v34 = vmax.f32 %v1737_v14, 0.0 }
 0x211   :  { %v1565_v13 = vmul.f32 %v4699_v20, %v1551_v42  ;;  %v1661_v47 = vmul.f32 %v1657_v46, %v4699_v20  ;;  %v1812_v43 = vmul.f32 %v4184_v40, %v5253_v30  ;;  %v1813_v18 = vmul.f32 %v4184_v40, %v5305_v12 }
 0x212   :  { %v2235_v23 = vrot.slane %v2234_v32, 2  ;;  %v1820_v53 = vmul.f32 %v4452_v21, %v5306_v27  ;;  %v1746_v51 = vmul.f32 %v1742_v36, %v4654_v52  ;;  %v1747_v26 = vmul.f32 %v1743_v34, %v4699_v20 }
 0x213   :  { %v1566_v60 = vadd.f32 %v1565_v13, %v1564_v62  ;;  %v1662_v0 = vadd.f32 %v1661_v47, %v1660_v48  ;;  %v1814_v37 = vadd.f32 %v1812_v43, %v1806_v10  ;;  %v1815_v16 = vadd.f32 %v1813_v18, %v1807_v11 }
 0x214   :  { %v2236_v61 = vmax.f32 %v2234_v32, %v2235_v23  ;;  %v1890_v4 = vmul.f32 %v4116_v9, %v5248_v15  ;;  %v1748_v2 = vadd.f32 %v1747_v26, %v1746_v51  ;;  %v1891_v40 = vmul.f32 %v4116_v9, %v5297_v55 }
 0x215   :  { %v1567_v63 = vrot.slane %v1566_v60, 4  ;;  %v1663_v49 = vrot.slane %v1662_v0, 4  ;;  %v1822_v5 = vadd.f32 %v1820_v53, %v1814_v37  ;;  %v1823_v33 = vadd.f32 %v4635_v56, %v1815_v16  ;;  %v5312_v37 = vld [vmem:[#allocation45_spill] sm:$0xff]  ;;  %v5314_v16 = vld [vmem:[#allocation43_spill] sm:$0xff] }
 0x216   :  { %v2237_v38 = vrot.slane %v2236_v61, 1  ;;  %v1892_v39 = vadd.f32 %v1890_v4, %v5309_v28  ;;  %v1749_v10 = vrot.slane %v1748_v2, 4  ;;  %v1893_v42 = vadd.f32 %v1891_v40, %v4642_v35 }
 0x217   :  { %v1568_v21 = vadd.f32 %v1567_v63, %v1566_v60  ;;  %v1664_v32 = vadd.f32 %v1663_v49, %v1662_v0  ;;  %v1828_v7 = vmax.f32 %v1822_v5, 0.0  ;;  %v1829_v57 = vmax.f32 %v1823_v33, 0.0  ;;  %v5311_v0 = vld [vmem:[#allocation92_spill] sm:$0xff]  ;;  %v5315_v33 = vld [vmem:[#allocation99_spill] sm:$0xff] }
 0x218   :  { %v2238_v25 = vmax.f32 %v2236_v61, %v2237_v38  ;;  %v1898_v24 = vmul.f32 %v5257_v29, %v5253_v30  ;;  %v1750_v11 = vadd.f32 %v1749_v10, %v1748_v2  ;;  %v1899_v56 = vmul.f32 %v5257_v29, %v5305_v12  ;;  %v5310_v61 = vld [vmem:[#allocation60_spill] sm:$0xff]  ;;  %v5313_v38 = vld [vmem:[#allocation79_spill] sm:$0xff] }
 0x219   :  { %v1569_v46 = vrot.slane %v1568_v21, 2  ;;  %v1665_v14 = vrot.slane %v1664_v32, 2  ;;  %v1832_v9 = vmul.f32 %v1828_v7, %v4654_v52  ;;  %v1833_v13 = vmul.f32 %v1829_v57, %v4699_v20 }
 0x21a   :  { %v2239_v6 = vsub.f32 %v2214_v59, %v2238_v25  ;;  %v1900_v48 = vadd.f32 %v1898_v24, %v1892_v39  ;;  %v1751_v35 = vrot.slane %v1750_v11, 2  ;;  %v1901_v59 = vadd.f32 %v1899_v56, %v1893_v42  ;;  %v5318_v56 = vld [vmem:[#allocation94_spill] sm:$0xff] }
 0x21b   :  { %v1570_v62 = vadd.f32 %v1569_v46, %v1568_v21  ;;  %v1666_v47 = vadd.f32 %v1665_v14, %v1664_v32  ;;  %v1906_v36 = vmul.f32 %v5259_v31, %v5306_v27  ;;  %v1834_v43 = vadd.f32 %v1833_v13, %v1832_v9  ;;  %v5316_v46 = vld [vmem:[#allocation47_spill] sm:$0xff] }
 0x21c   :  { %v2240_v23 = vmul.f32 1.442695, %v2239_v6  ;;  %v1970_v60 = vadd.f32 %v5310_v61, %v4673_v41  ;;  %v1752_v53 = vadd.f32 %v1751_v35, %v1750_v11  ;;  %v1909_v51 = vadd.f32 %v5311_v0, %v1901_v59  ;;  %v5317_v11 = vld [vmem:[#allocation26_spill] sm:$0xff] }
 0x21d   :  { %v1571_v34 = vrot.slane %v1570_v62, 1  ;;  %v1667_v18 = vrot.slane %v1666_v47, 1  ;;  %v1908_v29 = vadd.f32 %v1906_v36, %v1900_v48  ;;  %v1835_v26 = vrot.slane %v1834_v43, 4  ;;  %v5320_v35 = vld [vmem:[#allocation10_spill] sm:$0xff] }
 0x21e   :  { %2330 = vpow2.f32 %v2240_v23  ;;  %v1971_v63 = vadd.f32 %v5313_v38, %v5312_v37  ;;  %v1976_v4 = vmul.f32 %v5314_v16, %v5248_v15  ;;  %v2132_v31 = vmul.f32 %v5231_v8, %v5294_v19  ;;  %v5319_v23 = vld [vmem:[#allocation80_spill] sm:$0xff] }
 0x21f   :  { %v4740_v49 = vadd.f32 %v1571_v34, %v1570_v62  ;;  %v4742_v2 = vadd.f32 %v1667_v18, %v1666_v47  ;;  %v1914_v41 = vmax.f32 %v1908_v29, 0.0  ;;  %v1915_v5 = vmax.f32 %v1909_v51, 0.0  ;;  %v5322_v29 = vld [vmem:[#allocation12_spill] sm:$0xff] }
 0x220   :  { %v1836_v40 = vadd.f32 %v1835_v26, %v1834_v43  ;;  %v1977_v25 = vmul.f32 %v5314_v16, %v5297_v55  ;;  %v1978_v21 = vadd.f32 %v1976_v4, %v1970_v60  ;;  %v1984_v28 = vmul.f32 %v5315_v33, %v5253_v30  ;;  %v5321_v43 = vld [vmem:[#allocation63_spill] sm:$0xff]  ;;  %v5323_v51 = vld [vmem:[#allocation100_spill] sm:$0xff] }
 0x221   :  { %v1753_v39 = vrot.slane %v1752_v53, 1  ;;  %v1918_v32 = vmul.f32 %v1914_v41, %v4654_v52  ;;  %v1919_v10 = vmul.f32 %v1915_v5, %v4699_v20  ;;  %v1985_v8 = vmul.f32 %v5315_v33, %v5305_v12 }
 0x222   :  { %v1837_v7 = vrot.slane %v1836_v40, 2  ;;  %v1979_v42 = vadd.f32 %v1977_v25, %v1971_v63  ;;  %v1986_v6 = vadd.f32 %v1984_v28, %v1978_v21  ;;  %v1992_v57 = vmul.f32 %v5316_v46, %v5306_v27 }
 0x223   :  { %v1920_v14 = vadd.f32 %v1919_v10, %v1918_v32  ;;  %v2048_v9 = vadd.f32 %v4664_v22, %v5317_v11  ;;  %v2057_v62 = vadd.f32 %v5319_v23, %v5318_v56  ;;  %v2062_v59 = vmul.f32 %v5320_v35, %v5248_v15  ;;  %v5324_v32 = vld [vmem:[#allocation48_spill] sm:$0xff] }
 0x224   :  { %v4752_v19 = vpop.eup %2330  ;;  %v1838_v13 = vadd.f32 %v1837_v7, %v1836_v40  ;;  %v1987_v48 = vadd.f32 %v1985_v8, %v1979_v42  ;;  %v1994_v47 = vadd.f32 %v1992_v57, %v1986_v6  ;;  %v2063_v60 = vmul.f32 %v5320_v35, %v5297_v55  ;;  %v5325_v8 = vld [vmem:[#allocation81_spill] sm:$0xff] }
 0x225   :  { %v2242_v24 = vrot.slane %v4752_v19, 4  ;;  %v1921_v34 = vrot.slane %v1920_v14, 4  ;;  %v2056_v61 = vadd.f32 %v5321_v43, %v2048_v9  ;;  %v1754_v18 = vadd.f32 %v1753_v39, %v1752_v53 }
 0x226   :  { %v1995_v22 = vadd.f32 %v5322_v29, %v1987_v48  ;;  %v2000_v0 = vmax.f32 %v1994_v47, 0.0  ;;  %v2070_v26 = vmul.f32 %v5323_v51, %v5253_v30  ;;  %v2065_v16 = vadd.f32 %v2063_v60, %v2057_v62  ;;  %v5326_v48 = vld [vmem:[#allocation64_spill] sm:$0xff] }
 0x227   :  { %v2243_v36 = vadd.f32 %v4752_v19, %v2242_v24  ;;  %v1922_v38 = vadd.f32 %v1921_v34, %v1920_v14  ;;  %v2064_v63 = vadd.f32 %v2062_v59, %v2056_v61  ;;  %v1839_v4 = vrot.slane %v1838_v13, 1 }
 0x228   :  { %v2001_v41 = vmax.f32 %v1995_v22, 0.0  ;;  %v2004_v5 = vmul.f32 %v2000_v0, %v4654_v52  ;;  %v2071_v40 = vmul.f32 %v5323_v51, %v5305_v12  ;;  %v2078_v33 = vmul.f32 %v5292_v54, %v5306_v27 }
 0x229   :  { %v2244_v37 = vrot.slane %v2243_v36, 2  ;;  %v1923_v21 = vrot.slane %v1922_v38, 2  ;;  %v2072_v53 = vadd.f32 %v2070_v26, %v2064_v63  ;;  %v2126_v10 = vadd.f32 %v4668_v58, %v5324_v32 }
 0x22a   :  { %v2005_v28 = vmul.f32 %v2001_v41, %v4699_v20  ;;  %v2073_v39 = vadd.f32 %v2071_v40, %v2065_v16  ;;  %v2143_v7 = vadd.f32 %v5325_v8, %v4492_v50  ;;  %v2148_v57 = vmul.f32 %v4432_v1, %v5248_v15 }
 0x22b   :  { %v2245_v25 = vadd.f32 %v2244_v37, %v2243_v36  ;;  %v1924_v6 = vadd.f32 %v1923_v21, %v1922_v38  ;;  %v2080_v46 = vadd.f32 %v2078_v33, %v2072_v53  ;;  %v2134_v11 = vadd.f32 %v2132_v31, %v2126_v10 }
 0x22c   :  { %v2006_v24 = vadd.f32 %v2005_v28, %v2004_v5  ;;  %v2081_v14 = vadd.f32 %v4639_v45, %v2073_v39  ;;  %v2149_v54 = vmul.f32 %v4432_v1, %v5297_v55  ;;  %v2156_v58 = vmul.f32 %v4435_v44, %v5253_v30 }
 0x22d   :  { %v2246_v42 = vrot.slane %v2245_v25, 1  ;;  %v1925_v56 = vrot.slane %v1924_v6, 1  ;;  %v2086_v23 = vmax.f32 %v2080_v46, 0.0  ;;  %v2142_v47 = vadd.f32 %v5326_v48, %v2134_v11 }
 0x22e   :  { %v2007_v50 = vrot.slane %v2006_v24, 4  ;;  %v2087_v62 = vmax.f32 %v2081_v14, 0.0  ;;  %v2151_v35 = vadd.f32 %v2149_v54, %v2143_v7  ;;  %v2165_v15 = vmul.f32 %v5261_v3, %v5288_v17 }
 0x22f   :  { %v2247_v9 = vadd.f32 %v2246_v42, %v2245_v25  ;;  %v1840_v45 = vadd.f32 %v1839_v4, %v1838_v13  ;;  %v2157_v31 = vmul.f32 %v4435_v44, %v5305_v12  ;;  %v2090_v55 = vmul.f32 %v2086_v23, %v4654_v52 }
 0x230   :  { %v2008_v1 = vadd.f32 %v2007_v50, %v2006_v24  ;;  %v2091_v59 = vmul.f32 %v2087_v62, %v4699_v20  ;;  %v2150_v36 = vadd.f32 %v2148_v57, %v2142_v47  ;;  %v1926_v30 = vadd.f32 %v1925_v56, %v1924_v6 }
 0x231   :  { %2332 = vrcp.f32 %v2247_v9  ;;  %v2159_v34 = vadd.f32 %v2157_v31, %v2151_v35  ;;  %v2164_v43 = vmul.f32 %v5261_v3, %v5306_v27  ;;  %v2195_v17 = vsel %vm2194_vm1, %v4740_v49, %v4742_v2 }
 0x232   :  { %v2009_v61 = vrot.slane %v2008_v1, 2  ;;  %v2092_v13 = vadd.f32 %v2091_v59, %v2090_v55  ;;  %v2158_v60 = vadd.f32 %v2156_v58, %v2150_v36  ;;  %v2197_v44 = vsel %vm2196_vm2, %v2195_v17, %v1754_v18 }
 0x233   :  { %v2167_v12 = vadd.f32 %v2165_v15, %v2159_v34  ;;  %v2199_v29 = vsel %vm2198_vm3, %v2197_v44, %v1840_v45 }
 0x234   :  { %v2010_v22 = vadd.f32 %v2009_v61, %v2008_v1  ;;  %v2093_v0 = vrot.slane %v2092_v13, 4  ;;  %v2166_v51 = vadd.f32 %v2164_v43, %v2158_v60  ;;  %v2201_v26 = vsel %vm2200_vm4, %v2199_v29, %v1926_v30 }
 0x235   :  { %v2173_v38 = vmax.f32 %v2167_v12, 0.0 }
 0x236   :  { %v2011_v27 = vrot.slane %v2010_v22, 1  ;;  %v2094_v63 = vadd.f32 %v2093_v0, %v2092_v13  ;;  %v2172_v49 = vmax.f32 %v2166_v51, 0.0 }
 0x237   :  { %v2333_v37 = vpop.eup %2332  ;;  %v2177_v2 = vmul.f32 %v2173_v38, %v4699_v20 }
 0x238   :  { %v2249_v3 = vmul.f32 %v2333_v37, %v4752_v19  ;;  %v2012_v18 = vadd.f32 %v2011_v27, %v2010_v22  ;;  %v2095_v16 = vrot.slane %v2094_v63, 2  ;;  %v2176_v4 = vmul.f32 %v2172_v49, %v4654_v52 }
 0x23a   :  { %2250 = vst [vmem:[%s4820_s7] sm:$0xff] %v2249_v3  ;;  %v2096_v41 = vadd.f32 %v2095_v16, %v2094_v63  ;;  %v2178_v5 = vadd.f32 %v2177_v2, %v2176_v4  ;;  %v2203_v40 = vsel %vm2202_vm5, %v2201_v26, %v2012_v18 }
 0x23c   :  { %v2097_v25 = vrot.slane %v2096_v41, 1  ;;  %v2179_v21 = vrot.slane %v2178_v5, 4 }
 0x23e   :  { %v2098_v19 = vadd.f32 %v2097_v25, %v2096_v41  ;;  %v2180_v53 = vadd.f32 %v2179_v21, %v2178_v5 }
 0x240   :  { %v2181_v33 = vrot.slane %v2180_v53, 2  ;;  %v2205_v28 = vsel %vm2204_vm6, %v2203_v40, %v2098_v19 }
 0x242   :  { %v2182_v20 = vadd.f32 %v2181_v33, %v2180_v53 }
 0x244   :  { %v2183_v39 = vrot.slane %v2182_v20, 1 }
 0x246   :  { %v2184_v32 = vadd.f32 %v2183_v39, %v2182_v20 }
 0x248   :  { %v2207_v10 = vsel %vm2206_vm7, %v2205_v28, %v2184_v32 }
 0x249   :  { %v2215_v8 = vrot.slane %v2207_v10, 4 }
 0x24b   :  { %v2216_v7 = vmax.f32 %v2207_v10, %v2215_v8 }
 0x24d   :  { %v2217_v42 = vrot.slane %v2216_v7, 2 }
 0x24f   :  { %v2218_v52 = vmax.f32 %v2216_v7, %v2217_v42 }
 0x251   :  { %v2219_v6 = vrot.slane %v2218_v52, 1 }
 0x253   :  { %v2220_v46 = vmax.f32 %v2218_v52, %v2219_v6 }
 0x255   :  { %v2221_v57 = vsub.f32 %v2207_v10, %v2220_v46 }
 0x257   :  { %v2222_v24 = vmul.f32 1.442695, %v2221_v57 }
 0x259   :  { %2334 = vpow2.f32 %v2222_v24 }
 0x25f   :  { %v2335_v14 = vpop.eup %2334 }
 0x260   :  { %v2224_v11 = vrot.slane %v2335_v14, 4 }
 0x262   :  { %v2225_v54 = vadd.f32 %v2335_v14, %v2224_v11 }
 0x264   :  { %v2226_v9 = vrot.slane %v2225_v54, 2 }
 0x266   :  { %v2227_v56 = vadd.f32 %v2226_v9, %v2225_v54 }
 0x268   :  { %v2228_v23 = vrot.slane %v2227_v56, 1 }
 0x26a   :  { %v2229_v58 = vadd.f32 %v2228_v23, %v2227_v56 }
 0x26c   :  { %2336 = vrcp.f32 %v2229_v58 }
 0x272   :  { %v2337_v50 = vpop.eup %2336 }
 0x273   :  { %v2231_v62 = vmul.f32 %v2337_v50, %v2335_v14 }
 0x275   :  { %2232 = vst [vmem:[%s4821_s6] sm:$0xff] %v2231_v62 }

</bundles_post_ra>
